<compile_context>
chip_gen: v7x
topology: tpu7x:2x2x1
jax: 0.10.0
libtpu: 0.0.40
codegen_flags: <defaults>
</compile_context>

<pallas_src>
import functools

import jax
import jax.numpy as jnp
from jax.experimental import pallas as pl
from jax.experimental.pallas import tpu as pltpu


# ----------------------------- fused Pallas kernel -----------------------------

def _encoder_kernel(xe_ref, xo_ref,
                    w1_ref, b1_ref, s1_ref, t1_ref,
                    w2_ref, b2_ref, s2_ref, t2_ref,
                    w3_ref, b3_ref, s3_ref, t3_ref,
                    wfc_ref, bfc_ref,
                    out_ref,
                    a2_ref, a3_ref,
                    *, L):
    """Whole VibrationEncoder forward for one batch element (grid over batch)."""
    Lh1 = L // 4     # positions after conv1 + maxpool1
    Lh2 = L // 16    # positions after conv2 + maxpool2
    Lo3 = L // 32    # positions after conv3

    # ---- Block 1: Conv1d(1->16, k=64, s=2, p=31) + bias -> ReLU -> BN -> MaxPool(2,2)
    # xe/xo hold the padded signal grouped by 4 consecutive samples (group views
    # at offsets 0 and 2), so the im2col rows of the even / odd conv-output
    # positions are plain stride-1 slices; piece i covers taps k = 4i..4i+3.
    pe = jnp.concatenate([xe_ref[0, pl.ds(i, Lh1), :] for i in range(16)], axis=1)
    po = jnp.concatenate([xo_ref[0, pl.ds(i, Lh1), :] for i in range(16)], axis=1)
    p1 = jnp.concatenate([pe, po], axis=0)                       # (2*Lh1, 64)
    y1 = jnp.dot(p1, w1_ref[...], preferred_element_type=jnp.float32) + b1_ref[...]
    y1 = jnp.maximum(y1, 0.0) * s1_ref[...] + t1_ref[...]
    h1 = jnp.maximum(y1[:Lh1, :], y1[Lh1:, :])                   # (Lh1, 16)

    # stage block-1 output as a padded, channels-last activation for conv2
    z15 = jnp.zeros((15, 16), jnp.float32)
    a2_ref[...] = jnp.concatenate([z15, h1, z15], axis=0)        # (Lh1 + 30, 16)

    # ---- Block 2: Conv1d(16->32, k=32, s=2, p=15) + bias -> ReLU -> BN -> MaxPool(2,2)
    # tap k of the even (odd) output positions = rows k (k+2), k+4, ... of a2
    pe = jnp.concatenate(
        [a2_ref[pl.ds(k, Lh2, stride=4), :] for k in range(32)], axis=1)
    po = jnp.concatenate(
        [a2_ref[pl.ds(k + 2, Lh2, stride=4), :] for k in range(32)], axis=1)
    p2 = jnp.concatenate([pe, po], axis=0)                       # (2*Lh2, 512)
    y2 = jnp.dot(p2, w2_ref[...], preferred_element_type=jnp.float32) + b2_ref[...]
    y2 = jnp.maximum(y2, 0.0) * s2_ref[...] + t2_ref[...]
    h2 = jnp.maximum(y2[:Lh2, :], y2[Lh2:, :])                   # (Lh2, 32)

    z7 = jnp.zeros((7, 32), jnp.float32)
    a3_ref[...] = jnp.concatenate([z7, h2, z7], axis=0)          # (Lh2 + 14, 32)

    # ---- Block 3: Conv1d(32->64, k=16, s=2, p=7) + bias -> ReLU -> BN
    p3 = jnp.concatenate(
        [a3_ref[pl.ds(k, Lo3, stride=2), :] for k in range(16)], axis=1)
    y3 = jnp.dot(p3, w3_ref[...], preferred_element_type=jnp.float32) + b3_ref[...]
    y3 = jnp.maximum(y3, 0.0) * s3_ref[...] + t3_ref[...]        # (Lo3, 64)

    # ---- AdaptiveAvgPool1d(1) (in-kernel mean) + Linear(64 -> emb)
    pooled = jnp.mean(y3, axis=0, keepdims=True)                 # (1, 64)
    out = jnp.dot(pooled, wfc_ref[...],
                  preferred_element_type=jnp.float32) + bfc_ref[...]
    out_ref[0] = out                                             # (1, emb) lane-dense


# ----------------------------- wrapper -----------------------------

def _conv_weight_cols(w):
    """PyTorch (Cout, Cin, K) -> (K*Cin, Cout) with k-major / cin-minor rows
    (matches the in-kernel patch column order)."""
    cout = w.shape[0]
    return jnp.transpose(w, (2, 1, 0)).reshape(-1, cout)


def _bn_fold(gamma, beta, mean, var, eps=1e-5):
    scale = gamma / jnp.sqrt(var + eps)
    shift = beta - mean * scale
    return scale[None, :], shift[None, :]


def vibration_encoder_forward(x, params):
    """x: (B, 1, L) float32 (PyTorch NCL). Returns (B, embedding_dim)."""
    B, cin, L = x.shape
    assert cin == 1 and L % 32 == 0 and L >= 64, (cin, L)
    emb = params['wfc'].shape[0]
    Lh1, Lh2 = L // 4, L // 16
    G = L // 4 + 16                                   # groups of 4 padded samples

    # conv1 input: zero-pad (pad=31) once, then expose two duplication-free
    # "grouped by 4" views (offsets 0 and 2) so the kernel builds the stride-2
    # even/odd patches with stride-1 reads.  This is a pure reshape, NOT im2col.
    x2 = x.reshape(B, L)
    xp = jnp.pad(x2, ((0, 0), (31, 4 * G + 2 - (L + 31))))
    xe = xp[:, 0:4 * G].reshape(B, G, 4)
    xo = xp[:, 2:4 * G + 2].reshape(B, G, 4)

    w1 = _conv_weight_cols(params['w1'])              # (64, 16)
    w2 = _conv_weight_cols(params['w2'])              # (512, 32)
    w3 = _conv_weight_cols(params['w3'])              # (512, 64)
    wfc = params['wfc'].T                             # (64, emb)
    b1, b2, b3 = (params[k][None, :] for k in ('b1', 'b2', 'b3'))
    bfc = params['bfc'][None, :]
    s1, t1 = _bn_fold(params['gamma1'], params['beta1'], params['mean1'], params['var1'])
    s2, t2 = _bn_fold(params['gamma2'], params['beta2'], params['mean2'], params['var2'])
    s3, t3 = _bn_fold(params['gamma3'], params['beta3'], params['mean3'], params['var3'])

    def full(a):                                      # whole array, VMEM-resident
        nd = a.ndim
        return pl.BlockSpec(a.shape, lambda b, _n=nd: (0,) * _n)

    out = pl.pallas_call(
        functools.partial(_encoder_kernel, L=L),
        out_shape=jax.ShapeDtypeStruct((B, 1, emb), jnp.float32),
        grid=(B,),
        in_specs=[
            pl.BlockSpec((1, G, 4), lambda b: (b, 0, 0)),
            pl.BlockSpec((1, G, 4), lambda b: (b, 0, 0)),
            full(w1), full(b1), full(s1), full(t1),
            full(w2), full(b2), full(s2), full(t2),
            full(w3), full(b3), full(s3), full(t3),
            full(wfc), full(bfc),
        ],
        out_specs=pl.BlockSpec((1, 1, emb), lambda b: (b, 0, 0)),
        scratch_shapes=[pltpu.VMEM((Lh1 + 30, 16), jnp.float32),
                        pltpu.VMEM((Lh2 + 14, 32), jnp.float32)],
        compiler_params=pltpu.CompilerParams(
            dimension_semantics=("parallel",)),
    )(xe, xo, w1, b1, s1, t1, w2, b2, s2, t2, w3, b3, s3, t3, wfc, bfc)
    return out.reshape(B, emb)


# ----------------------------- params (PyTorch-style init) -----------------------------

def init_params(key, embedding_dim=128):
    ks = jax.random.split(key, 8)

    def u(k, shape, fan_in):
        bound = 1.0 / (fan_in ** 0.5)
        return jax.random.uniform(k, shape, jnp.float32, -bound, bound)

    p = {}
    p['w1'] = u(ks[0], (16, 1, 64), 1 * 64);   p['b1'] = u(ks[1], (16,), 1 * 64)
    p['w2'] = u(ks[2], (32, 16, 32), 16 * 32); p['b2'] = u(ks[3], (32,), 16 * 32)
    p['w3'] = u(ks[4], (64, 32, 16), 32 * 16); p['b3'] = u(ks[5], (64,), 32 * 16)
    p['wfc'] = u(ks[6], (embedding_dim, 64), 64)
    p['bfc'] = u(ks[7], (embedding_dim,), 64)
    for i, c in zip((1, 2, 3), (16, 32, 64)):   # PyTorch BatchNorm1d default init
        p[f'gamma{i}'] = jnp.ones((c,), jnp.float32)
        p[f'beta{i}'] = jnp.zeros((c,), jnp.float32)
        p[f'mean{i}'] = jnp.zeros((c,), jnp.float32)
        p[f'var{i}'] = jnp.ones((c,), jnp.float32)
    return p


# ----------------------------- pure-JAX reference -----------------------------

def ref_forward(x, params):
    prec = jax.lax.Precision.HIGHEST

    def conv1d(x, w, b, stride, pad):
        y = jax.lax.conv_general_dilated(
            x, w, window_strides=(stride,), padding=[(pad, pad)],
            dimension_numbers=('NCH', 'OIH', 'NCH'), precision=prec)
        return y + b[None, :, None]

    def bn(x, g, bta, m, v, eps=1e-5):
        s = g / jnp.sqrt(v + eps)
        return x * s[None, :, None] + (bta - m * s)[None, :, None]

    def maxpool2(x):
        B, C, L = x.shape
        return x.reshape(B, C, L // 2, 2).max(axis=-1)

    h = maxpool2(bn(jax.nn.relu(conv1d(x, params['w1'], params['b1'], 2, 31)),
                    params['gamma1'], params['beta1'], params['mean1'], params['var1']))
    h = maxpool2(bn(jax.nn.relu(conv1d(h, params['w2'], params['b2'], 2, 15)),
                    params['gamma2'], params['beta2'], params['mean2'], params['var2']))
    h = bn(jax.nn.relu(conv1d(h, params['w3'], params['b3'], 2, 7)),
           params['gamma3'], params['beta3'], params['mean3'], params['var3'])
    h = h.mean(axis=-1)                               # AdaptiveAvgPool1d(1) + view
    return jnp.dot(h, params['wfc'].T, precision=prec) + params['bfc'][None, :]


# ----------------------------- main -----------------------------

if __name__ == "__main__":
    B, L, EMB = 2, 256, 128                           # small shapes; module default emb=512
    key = jax.random.PRNGKey(0)
    kx, kp = jax.random.split(key)
    x = jax.random.normal(kx, (B, 1, L), jnp.float32)
    params = init_params(kp, embedding_dim=EMB)

    out = vibration_encoder_forward(x, params)
    out = jax.block_until_ready(out)

    ref = ref_forward(x, params)
    assert out.shape == (B, EMB), out.shape
    max_err = float(jnp.max(jnp.abs(out - ref)))
    assert jnp.allclose(out, ref, rtol=2e-2, atol=2e-2), f"max_abs_err={max_err}"
    print("KERNEL_OK")
</pallas_src>

<mosaic_0001>
module attributes {stable_mosaic.version = 11 : i64} {
  func.func @_encoder_kernel(%arg0: i32, %arg1: memref<1x80x4xf32, #tpu.memory_space<vmem>>, %arg2: memref<1x80x4xf32, #tpu.memory_space<vmem>>, %arg3: memref<64x16xf32, #tpu.memory_space<vmem>>, %arg4: memref<1x16xf32, #tpu.memory_space<vmem>>, %arg5: memref<1x16xf32, #tpu.memory_space<vmem>>, %arg6: memref<1x16xf32, #tpu.memory_space<vmem>>, %arg7: memref<512x32xf32, #tpu.memory_space<vmem>>, %arg8: memref<1x32xf32, #tpu.memory_space<vmem>>, %arg9: memref<1x32xf32, #tpu.memory_space<vmem>>, %arg10: memref<1x32xf32, #tpu.memory_space<vmem>>, %arg11: memref<512x64xf32, #tpu.memory_space<vmem>>, %arg12: memref<1x64xf32, #tpu.memory_space<vmem>>, %arg13: memref<1x64xf32, #tpu.memory_space<vmem>>, %arg14: memref<1x64xf32, #tpu.memory_space<vmem>>, %arg15: memref<64x128xf32, #tpu.memory_space<vmem>>, %arg16: memref<1x128xf32, #tpu.memory_space<vmem>>, %arg17: memref<1x1x128xf32, #tpu.memory_space<vmem>>, %arg18: memref<94x16xf32, #tpu.memory_space<vmem>>, %arg19: memref<30x32xf32, #tpu.memory_space<vmem>>) attributes {dimension_semantics = [#tpu.dimension_semantics<parallel>], iteration_bounds = array<i64: 2>, scalar_prefetch = 0 : i64, scratch_operands = 2 : i64, tpu.core_type = #tpu.core_type<tc>, window_params = [{transform_indices = @transform_0, window_bounds = array<i64: 1, 80, 4>}, {transform_indices = @transform_1, window_bounds = array<i64: 1, 80, 4>}, {pipeline_mode = #tpu.pipeline_mode<synchronous>, transform_indices = @transform_2, window_bounds = array<i64: 64, 16>}, {pipeline_mode = #tpu.pipeline_mode<synchronous>, transform_indices = @transform_3, window_bounds = array<i64: 1, 16>}, {pipeline_mode = #tpu.pipeline_mode<synchronous>, transform_indices = @transform_4, window_bounds = array<i64: 1, 16>}, {pipeline_mode = #tpu.pipeline_mode<synchronous>, transform_indices = @transform_5, window_bounds = array<i64: 1, 16>}, {pipeline_mode = #tpu.pipeline_mode<synchronous>, transform_indices = @transform_6, window_bounds = array<i64: 512, 32>}, {pipeline_mode = #tpu.pipeline_mode<synchronous>, transform_indices = @transform_7, window_bounds = array<i64: 1, 32>}, {pipeline_mode = #tpu.pipeline_mode<synchronous>, transform_indices = @transform_8, window_bounds = array<i64: 1, 32>}, {pipeline_mode = #tpu.pipeline_mode<synchronous>, transform_indices = @transform_9, window_bounds = array<i64: 1, 32>}, {pipeline_mode = #tpu.pipeline_mode<synchronous>, transform_indices = @transform_10, window_bounds = array<i64: 512, 64>}, {pipeline_mode = #tpu.pipeline_mode<synchronous>, transform_indices = @transform_11, window_bounds = array<i64: 1, 64>}, {pipeline_mode = #tpu.pipeline_mode<synchronous>, transform_indices = @transform_12, window_bounds = array<i64: 1, 64>}, {pipeline_mode = #tpu.pipeline_mode<synchronous>, transform_indices = @transform_13, window_bounds = array<i64: 1, 64>}, {pipeline_mode = #tpu.pipeline_mode<synchronous>, transform_indices = @transform_14, window_bounds = array<i64: 64, 128>}, {pipeline_mode = #tpu.pipeline_mode<synchronous>, transform_indices = @transform_15, window_bounds = array<i64: 1, 128>}, {transform_indices = @transform_16, window_bounds = array<i64: 1, 1, 128>}]} {
    %c0 = arith.constant 0 : index
    %c0_0 = arith.constant 0 : index
    %c0_1 = arith.constant 0 : index
    %0 = vector.load %arg1[%c0, %c0_0, %c0_1] : memref<1x80x4xf32, #tpu.memory_space<vmem>>, vector<1x64x4xf32>
    %1 = vector.shape_cast %0 : vector<1x64x4xf32> to vector<64x4xf32>
    %c0_2 = arith.constant 0 : index
    %c1 = arith.constant 1 : index
    %c0_3 = arith.constant 0 : index
    %2 = vector.load %arg1[%c0_2, %c1, %c0_3] : memref<1x80x4xf32, #tpu.memory_space<vmem>>, vector<1x64x4xf32>
    %3 = vector.shape_cast %2 : vector<1x64x4xf32> to vector<64x4xf32>
    %c0_4 = arith.constant 0 : index
    %c2 = arith.constant 2 : index
    %c0_5 = arith.constant 0 : index
    %4 = vector.load %arg1[%c0_4, %c2, %c0_5] : memref<1x80x4xf32, #tpu.memory_space<vmem>>, vector<1x64x4xf32>
    %5 = vector.shape_cast %4 : vector<1x64x4xf32> to vector<64x4xf32>
    %c0_6 = arith.constant 0 : index
    %c3 = arith.constant 3 : index
    %c0_7 = arith.constant 0 : index
    %6 = vector.load %arg1[%c0_6, %c3, %c0_7] : memref<1x80x4xf32, #tpu.memory_space<vmem>>, vector<1x64x4xf32>
    %7 = vector.shape_cast %6 : vector<1x64x4xf32> to vector<64x4xf32>
    %c0_8 = arith.constant 0 : index
    %c4 = arith.constant 4 : index
    %c0_9 = arith.constant 0 : index
    %8 = vector.load %arg1[%c0_8, %c4, %c0_9] : memref<1x80x4xf32, #tpu.memory_space<vmem>>, vector<1x64x4xf32>
    %9 = vector.shape_cast %8 : vector<1x64x4xf32> to vector<64x4xf32>
    %c0_10 = arith.constant 0 : index
    %c5 = arith.constant 5 : index
    %c0_11 = arith.constant 0 : index
    %10 = vector.load %arg1[%c0_10, %c5, %c0_11] : memref<1x80x4xf32, #tpu.memory_space<vmem>>, vector<1x64x4xf32>
    %11 = vector.shape_cast %10 : vector<1x64x4xf32> to vector<64x4xf32>
    %c0_12 = arith.constant 0 : index
    %c6 = arith.constant 6 : index
    %c0_13 = arith.constant 0 : index
    %12 = vector.load %arg1[%c0_12, %c6, %c0_13] : memref<1x80x4xf32, #tpu.memory_space<vmem>>, vector<1x64x4xf32>
    %13 = vector.shape_cast %12 : vector<1x64x4xf32> to vector<64x4xf32>
    %c0_14 = arith.constant 0 : index
    %c7 = arith.constant 7 : index
    %c0_15 = arith.constant 0 : index
    %14 = vector.load %arg1[%c0_14, %c7, %c0_15] : memref<1x80x4xf32, #tpu.memory_space<vmem>>, vector<1x64x4xf32>
    %15 = vector.shape_cast %14 : vector<1x64x4xf32> to vector<64x4xf32>
    %c0_16 = arith.constant 0 : index
    %c8 = arith.constant 8 : index
    %c0_17 = arith.constant 0 : index
    %16 = vector.load %arg1[%c0_16, %c8, %c0_17] : memref<1x80x4xf32, #tpu.memory_space<vmem>>, vector<1x64x4xf32>
    %17 = vector.shape_cast %16 : vector<1x64x4xf32> to vector<64x4xf32>
    %c0_18 = arith.constant 0 : index
    %c9 = arith.constant 9 : index
    %c0_19 = arith.constant 0 : index
    %18 = vector.load %arg1[%c0_18, %c9, %c0_19] : memref<1x80x4xf32, #tpu.memory_space<vmem>>, vector<1x64x4xf32>
    %19 = vector.shape_cast %18 : vector<1x64x4xf32> to vector<64x4xf32>
    %c0_20 = arith.constant 0 : index
    %c10 = arith.constant 10 : index
    %c0_21 = arith.constant 0 : index
    %20 = vector.load %arg1[%c0_20, %c10, %c0_21] : memref<1x80x4xf32, #tpu.memory_space<vmem>>, vector<1x64x4xf32>
    %21 = vector.shape_cast %20 : vector<1x64x4xf32> to vector<64x4xf32>
    %c0_22 = arith.constant 0 : index
    %c11 = arith.constant 11 : index
    %c0_23 = arith.constant 0 : index
    %22 = vector.load %arg1[%c0_22, %c11, %c0_23] : memref<1x80x4xf32, #tpu.memory_space<vmem>>, vector<1x64x4xf32>
    %23 = vector.shape_cast %22 : vector<1x64x4xf32> to vector<64x4xf32>
    %c0_24 = arith.constant 0 : index
    %c12 = arith.constant 12 : index
    %c0_25 = arith.constant 0 : index
    %24 = vector.load %arg1[%c0_24, %c12, %c0_25] : memref<1x80x4xf32, #tpu.memory_space<vmem>>, vector<1x64x4xf32>
    %25 = vector.shape_cast %24 : vector<1x64x4xf32> to vector<64x4xf32>
    %c0_26 = arith.constant 0 : index
    %c13 = arith.constant 13 : index
    %c0_27 = arith.constant 0 : index
    %26 = vector.load %arg1[%c0_26, %c13, %c0_27] : memref<1x80x4xf32, #tpu.memory_space<vmem>>, vector<1x64x4xf32>
    %27 = vector.shape_cast %26 : vector<1x64x4xf32> to vector<64x4xf32>
    %c0_28 = arith.constant 0 : index
    %c14 = arith.constant 14 : index
    %c0_29 = arith.constant 0 : index
    %28 = vector.load %arg1[%c0_28, %c14, %c0_29] : memref<1x80x4xf32, #tpu.memory_space<vmem>>, vector<1x64x4xf32>
    %29 = vector.shape_cast %28 : vector<1x64x4xf32> to vector<64x4xf32>
    %c0_30 = arith.constant 0 : index
    %c15 = arith.constant 15 : index
    %c0_31 = arith.constant 0 : index
    %30 = vector.load %arg1[%c0_30, %c15, %c0_31] : memref<1x80x4xf32, #tpu.memory_space<vmem>>, vector<1x64x4xf32>
    %31 = vector.shape_cast %30 : vector<1x64x4xf32> to vector<64x4xf32>
    %32 = tpu.concatenate %1, %3, %5, %7, %9, %11, %13, %15, %17, %19, %21, %23, %25, %27, %29, %31 in 1 : vector<64x4xf32>, vector<64x4xf32>, vector<64x4xf32>, vector<64x4xf32>, vector<64x4xf32>, vector<64x4xf32>, vector<64x4xf32>, vector<64x4xf32>, vector<64x4xf32>, vector<64x4xf32>, vector<64x4xf32>, vector<64x4xf32>, vector<64x4xf32>, vector<64x4xf32>, vector<64x4xf32>, vector<64x4xf32> -> vector<64x64xf32>
    %c0_32 = arith.constant 0 : index
    %c0_33 = arith.constant 0 : index
    %c0_34 = arith.constant 0 : index
    %33 = vector.load %arg2[%c0_32, %c0_33, %c0_34] : memref<1x80x4xf32, #tpu.memory_space<vmem>>, vector<1x64x4xf32>
    %34 = vector.shape_cast %33 : vector<1x64x4xf32> to vector<64x4xf32>
    %c0_35 = arith.constant 0 : index
    %c1_36 = arith.constant 1 : index
    %c0_37 = arith.constant 0 : index
    %35 = vector.load %arg2[%c0_35, %c1_36, %c0_37] : memref<1x80x4xf32, #tpu.memory_space<vmem>>, vector<1x64x4xf32>
    %36 = vector.shape_cast %35 : vector<1x64x4xf32> to vector<64x4xf32>
    %c0_38 = arith.constant 0 : index
    %c2_39 = arith.constant 2 : index
    %c0_40 = arith.constant 0 : index
    %37 = vector.load %arg2[%c0_38, %c2_39, %c0_40] : memref<1x80x4xf32, #tpu.memory_space<vmem>>, vector<1x64x4xf32>
    %38 = vector.shape_cast %37 : vector<1x64x4xf32> to vector<64x4xf32>
    %c0_41 = arith.constant 0 : index
    %c3_42 = arith.constant 3 : index
    %c0_43 = arith.constant 0 : index
    %39 = vector.load %arg2[%c0_41, %c3_42, %c0_43] : memref<1x80x4xf32, #tpu.memory_space<vmem>>, vector<1x64x4xf32>
    %40 = vector.shape_cast %39 : vector<1x64x4xf32> to vector<64x4xf32>
    %c0_44 = arith.constant 0 : index
    %c4_45 = arith.constant 4 : index
    %c0_46 = arith.constant 0 : index
    %41 = vector.load %arg2[%c0_44, %c4_45, %c0_46] : memref<1x80x4xf32, #tpu.memory_space<vmem>>, vector<1x64x4xf32>
    %42 = vector.shape_cast %41 : vector<1x64x4xf32> to vector<64x4xf32>
    %c0_47 = arith.constant 0 : index
    %c5_48 = arith.constant 5 : index
    %c0_49 = arith.constant 0 : index
    %43 = vector.load %arg2[%c0_47, %c5_48, %c0_49] : memref<1x80x4xf32, #tpu.memory_space<vmem>>, vector<1x64x4xf32>
    %44 = vector.shape_cast %43 : vector<1x64x4xf32> to vector<64x4xf32>
    %c0_50 = arith.constant 0 : index
    %c6_51 = arith.constant 6 : index
    %c0_52 = arith.constant 0 : index
    %45 = vector.load %arg2[%c0_50, %c6_51, %c0_52] : memref<1x80x4xf32, #tpu.memory_space<vmem>>, vector<1x64x4xf32>
    %46 = vector.shape_cast %45 : vector<1x64x4xf32> to vector<64x4xf32>
    %c0_53 = arith.constant 0 : index
    %c7_54 = arith.constant 7 : index
    %c0_55 = arith.constant 0 : index
    %47 = vector.load %arg2[%c0_53, %c7_54, %c0_55] : memref<1x80x4xf32, #tpu.memory_space<vmem>>, vector<1x64x4xf32>
    %48 = vector.shape_cast %47 : vector<1x64x4xf32> to vector<64x4xf32>
    %c0_56 = arith.constant 0 : index
    %c8_57 = arith.constant 8 : index
    %c0_58 = arith.constant 0 : index
    %49 = vector.load %arg2[%c0_56, %c8_57, %c0_58] : memref<1x80x4xf32, #tpu.memory_space<vmem>>, vector<1x64x4xf32>
    %50 = vector.shape_cast %49 : vector<1x64x4xf32> to vector<64x4xf32>
    %c0_59 = arith.constant 0 : index
    %c9_60 = arith.constant 9 : index
    %c0_61 = arith.constant 0 : index
    %51 = vector.load %arg2[%c0_59, %c9_60, %c0_61] : memref<1x80x4xf32, #tpu.memory_space<vmem>>, vector<1x64x4xf32>
    %52 = vector.shape_cast %51 : vector<1x64x4xf32> to vector<64x4xf32>
    %c0_62 = arith.constant 0 : index
    %c10_63 = arith.constant 10 : index
    %c0_64 = arith.constant 0 : index
    %53 = vector.load %arg2[%c0_62, %c10_63, %c0_64] : memref<1x80x4xf32, #tpu.memory_space<vmem>>, vector<1x64x4xf32>
    %54 = vector.shape_cast %53 : vector<1x64x4xf32> to vector<64x4xf32>
    %c0_65 = arith.constant 0 : index
    %c11_66 = arith.constant 11 : index
    %c0_67 = arith.constant 0 : index
    %55 = vector.load %arg2[%c0_65, %c11_66, %c0_67] : memref<1x80x4xf32, #tpu.memory_space<vmem>>, vector<1x64x4xf32>
    %56 = vector.shape_cast %55 : vector<1x64x4xf32> to vector<64x4xf32>
    %c0_68 = arith.constant 0 : index
    %c12_69 = arith.constant 12 : index
    %c0_70 = arith.constant 0 : index
    %57 = vector.load %arg2[%c0_68, %c12_69, %c0_70] : memref<1x80x4xf32, #tpu.memory_space<vmem>>, vector<1x64x4xf32>
    %58 = vector.shape_cast %57 : vector<1x64x4xf32> to vector<64x4xf32>
    %c0_71 = arith.constant 0 : index
    %c13_72 = arith.constant 13 : index
    %c0_73 = arith.constant 0 : index
    %59 = vector.load %arg2[%c0_71, %c13_72, %c0_73] : memref<1x80x4xf32, #tpu.memory_space<vmem>>, vector<1x64x4xf32>
    %60 = vector.shape_cast %59 : vector<1x64x4xf32> to vector<64x4xf32>
    %c0_74 = arith.constant 0 : index
    %c14_75 = arith.constant 14 : index
    %c0_76 = arith.constant 0 : index
    %61 = vector.load %arg2[%c0_74, %c14_75, %c0_76] : memref<1x80x4xf32, #tpu.memory_space<vmem>>, vector<1x64x4xf32>
    %62 = vector.shape_cast %61 : vector<1x64x4xf32> to vector<64x4xf32>
    %c0_77 = arith.constant 0 : index
    %c15_78 = arith.constant 15 : index
    %c0_79 = arith.constant 0 : index
    %63 = vector.load %arg2[%c0_77, %c15_78, %c0_79] : memref<1x80x4xf32, #tpu.memory_space<vmem>>, vector<1x64x4xf32>
    %64 = vector.shape_cast %63 : vector<1x64x4xf32> to vector<64x4xf32>
    %65 = tpu.concatenate %34, %36, %38, %40, %42, %44, %46, %48, %50, %52, %54, %56, %58, %60, %62, %64 in 1 : vector<64x4xf32>, vector<64x4xf32>, vector<64x4xf32>, vector<64x4xf32>, vector<64x4xf32>, vector<64x4xf32>, vector<64x4xf32>, vector<64x4xf32>, vector<64x4xf32>, vector<64x4xf32>, vector<64x4xf32>, vector<64x4xf32>, vector<64x4xf32>, vector<64x4xf32>, vector<64x4xf32>, vector<64x4xf32> -> vector<64x64xf32>
    %66 = tpu.concatenate %32, %65 in 0 : vector<64x64xf32>, vector<64x64xf32> -> vector<128x64xf32>
    %c0_80 = arith.constant 0 : index
    %c0_81 = arith.constant 0 : index
    %67 = vector.load %arg3[%c0_80, %c0_81] : memref<64x16xf32, #tpu.memory_space<vmem>>, vector<64x16xf32>
    %cst = arith.constant dense<0.000000e+00> : vector<128x16xf32>
    %68 = tpu.matmul %66, %67, %cst {dimension_numbers = #tpu.dot_dimension_numbers<[1], [0], [0], [1], [0, 0, 1, 1], [], []>} : vector<128x64xf32>, vector<64x16xf32>, vector<128x16xf32> -> vector<128x16xf32>
    %c0_82 = arith.constant 0 : index
    %c0_83 = arith.constant 0 : index
    %69 = vector.load %arg4[%c0_82, %c0_83] : memref<1x16xf32, #tpu.memory_space<vmem>>, vector<1x16xf32>
    %70 = vector.broadcast %69 : vector<1x16xf32> to vector<128x16xf32>
    %71 = arith.addf %68, %70 : vector<128x16xf32>
    %cst_84 = arith.constant 0.000000e+00 : f32
    %72 = vector.broadcast %cst_84 : f32 to vector<128x16xf32>
    %73 = arith.maximumf %71, %72 : vector<128x16xf32>
    %c0_85 = arith.constant 0 : index
    %c0_86 = arith.constant 0 : index
    %74 = vector.load %arg5[%c0_85, %c0_86] : memref<1x16xf32, #tpu.memory_space<vmem>>, vector<1x16xf32>
    %75 = vector.broadcast %74 : vector<1x16xf32> to vector<128x16xf32>
    %76 = arith.mulf %73, %75 : vector<128x16xf32>
    %c0_87 = arith.constant 0 : index
    %c0_88 = arith.constant 0 : index
    %77 = vector.load %arg6[%c0_87, %c0_88] : memref<1x16xf32, #tpu.memory_space<vmem>>, vector<1x16xf32>
    %78 = vector.broadcast %77 : vector<1x16xf32> to vector<128x16xf32>
    %79 = arith.addf %76, %78 : vector<128x16xf32>
    %80 = vector.extract_strided_slice %79 {offsets = [0, 0], sizes = [64, 16], strides = [1, 1]} : vector<128x16xf32> to vector<64x16xf32>
    %81 = vector.extract_strided_slice %79 {offsets = [64, 0], sizes = [64, 16], strides = [1, 1]} : vector<128x16xf32> to vector<64x16xf32>
    %82 = arith.maximumf %80, %81 : vector<64x16xf32>
    %cst_89 = arith.constant 0.000000e+00 : f32
    %83 = vector.broadcast %cst_89 : f32 to vector<15x16xf32>
    %84 = tpu.concatenate %83, %82, %83 in 0 : vector<15x16xf32>, vector<64x16xf32>, vector<15x16xf32> -> vector<94x16xf32>
    %c0_90 = arith.constant 0 : index
    %c0_91 = arith.constant 0 : index
    %85 = vector.load %arg18[%c0_90, %c0_91] : memref<94x16xf32, #tpu.memory_space<vmem>>, vector<94x16xf32>
    tpu.vector_store %arg18[%c0_90, %c0_91], %84 {strides = array<i32>} : memref<94x16xf32, #tpu.memory_space<vmem>>, vector<94x16xf32>,
    %c0_92 = arith.constant 0 : index
    %c0_93 = arith.constant 0 : index
    %86 = tpu.strided_load %arg18[%c0_92, %c0_93] {strides = array<i32: 4, 1>} : memref<94x16xf32, #tpu.memory_space<vmem>>, vector<16x16xf32>
    %c1_94 = arith.constant 1 : index
    %c0_95 = arith.constant 0 : index
    %87 = tpu.strided_load %arg18[%c1_94, %c0_95] {strides = array<i32: 4, 1>} : memref<94x16xf32, #tpu.memory_space<vmem>>, vector<16x16xf32>
    %c2_96 = arith.constant 2 : index
    %c0_97 = arith.constant 0 : index
    %88 = tpu.strided_load %arg18[%c2_96, %c0_97] {strides = array<i32: 4, 1>} : memref<94x16xf32, #tpu.memory_space<vmem>>, vector<16x16xf32>
    %c3_98 = arith.constant 3 : index
    %c0_99 = arith.constant 0 : index
    %89 = tpu.strided_load %arg18[%c3_98, %c0_99] {strides = array<i32: 4, 1>} : memref<94x16xf32, #tpu.memory_space<vmem>>, vector<16x16xf32>
    %c4_100 = arith.constant 4 : index
    %c0_101 = arith.constant 0 : index
    %90 = tpu.strided_load %arg18[%c4_100, %c0_101] {strides = array<i32: 4, 1>} : memref<94x16xf32, #tpu.memory_space<vmem>>, vector<16x16xf32>
    %c5_102 = arith.constant 5 : index
    %c0_103 = arith.constant 0 : index
    %91 = tpu.strided_load %arg18[%c5_102, %c0_103] {strides = array<i32: 4, 1>} : memref<94x16xf32, #tpu.memory_space<vmem>>, vector<16x16xf32>
    %c6_104 = arith.constant 6 : index
    %c0_105 = arith.constant 0 : index
    %92 = tpu.strided_load %arg18[%c6_104, %c0_105] {strides = array<i32: 4, 1>} : memref<94x16xf32, #tpu.memory_space<vmem>>, vector<16x16xf32>
    %c7_106 = arith.constant 7 : index
    %c0_107 = arith.constant 0 : index
    %93 = tpu.strided_load %arg18[%c7_106, %c0_107] {strides = array<i32: 4, 1>} : memref<94x16xf32, #tpu.memory_space<vmem>>, vector<16x16xf32>
    %c8_108 = arith.constant 8 : index
    %c0_109 = arith.constant 0 : index
    %94 = tpu.strided_load %arg18[%c8_108, %c0_109] {strides = array<i32: 4, 1>} : memref<94x16xf32, #tpu.memory_space<vmem>>, vector<16x16xf32>
    %c9_110 = arith.constant 9 : index
    %c0_111 = arith.constant 0 : index
    %95 = tpu.strided_load %arg18[%c9_110, %c0_111] {strides = array<i32: 4, 1>} : memref<94x16xf32, #tpu.memory_space<vmem>>, vector<16x16xf32>
    %c10_112 = arith.constant 10 : index
    %c0_113 = arith.constant 0 : index
    %96 = tpu.strided_load %arg18[%c10_112, %c0_113] {strides = array<i32: 4, 1>} : memref<94x16xf32, #tpu.memory_space<vmem>>, vector<16x16xf32>
    %c11_114 = arith.constant 11 : index
    %c0_115 = arith.constant 0 : index
    %97 = tpu.strided_load %arg18[%c11_114, %c0_115] {strides = array<i32: 4, 1>} : memref<94x16xf32, #tpu.memory_space<vmem>>, vector<16x16xf32>
    %c12_116 = arith.constant 12 : index
    %c0_117 = arith.constant 0 : index
    %98 = tpu.strided_load %arg18[%c12_116, %c0_117] {strides = array<i32: 4, 1>} : memref<94x16xf32, #tpu.memory_space<vmem>>, vector<16x16xf32>
    %c13_118 = arith.constant 13 : index
    %c0_119 = arith.constant 0 : index
    %99 = tpu.strided_load %arg18[%c13_118, %c0_119] {strides = array<i32: 4, 1>} : memref<94x16xf32, #tpu.memory_space<vmem>>, vector<16x16xf32>
    %c14_120 = arith.constant 14 : index
    %c0_121 = arith.constant 0 : index
    %100 = tpu.strided_load %arg18[%c14_120, %c0_121] {strides = array<i32: 4, 1>} : memref<94x16xf32, #tpu.memory_space<vmem>>, vector<16x16xf32>
    %c15_122 = arith.constant 15 : index
    %c0_123 = arith.constant 0 : index
    %101 = tpu.strided_load %arg18[%c15_122, %c0_123] {strides = array<i32: 4, 1>} : memref<94x16xf32, #tpu.memory_space<vmem>>, vector<16x16xf32>
    %c16 = arith.constant 16 : index
    %c0_124 = arith.constant 0 : index
    %102 = tpu.strided_load %arg18[%c16, %c0_124] {strides = array<i32: 4, 1>} : memref<94x16xf32, #tpu.memory_space<vmem>>, vector<16x16xf32>
    %c17 = arith.constant 17 : index
    %c0_125 = arith.constant 0 : index
    %103 = tpu.strided_load %arg18[%c17, %c0_125] {strides = array<i32: 4, 1>} : memref<94x16xf32, #tpu.memory_space<vmem>>, vector<16x16xf32>
    %c18 = arith.constant 18 : index
    %c0_126 = arith.constant 0 : index
    %104 = tpu.strided_load %arg18[%c18, %c0_126] {strides = array<i32: 4, 1>} : memref<94x16xf32, #tpu.memory_space<vmem>>, vector<16x16xf32>
    %c19 = arith.constant 19 : index
    %c0_127 = arith.constant 0 : index
    %105 = tpu.strided_load %arg18[%c19, %c0_127] {strides = array<i32: 4, 1>} : memref<94x16xf32, #tpu.memory_space<vmem>>, vector<16x16xf32>
    %c20 = arith.constant 20 : index
    %c0_128 = arith.constant 0 : index
    %106 = tpu.strided_load %arg18[%c20, %c0_128] {strides = array<i32: 4, 1>} : memref<94x16xf32, #tpu.memory_space<vmem>>, vector<16x16xf32>
    %c21 = arith.constant 21 : index
    %c0_129 = arith.constant 0 : index
    %107 = tpu.strided_load %arg18[%c21, %c0_129] {strides = array<i32: 4, 1>} : memref<94x16xf32, #tpu.memory_space<vmem>>, vector<16x16xf32>
    %c22 = arith.constant 22 : index
    %c0_130 = arith.constant 0 : index
    %108 = tpu.strided_load %arg18[%c22, %c0_130] {strides = array<i32: 4, 1>} : memref<94x16xf32, #tpu.memory_space<vmem>>, vector<16x16xf32>
    %c23 = arith.constant 23 : index
    %c0_131 = arith.constant 0 : index
    %109 = tpu.strided_load %arg18[%c23, %c0_131] {strides = array<i32: 4, 1>} : memref<94x16xf32, #tpu.memory_space<vmem>>, vector<16x16xf32>
    %c24 = arith.constant 24 : index
    %c0_132 = arith.constant 0 : index
    %110 = tpu.strided_load %arg18[%c24, %c0_132] {strides = array<i32: 4, 1>} : memref<94x16xf32, #tpu.memory_space<vmem>>, vector<16x16xf32>
    %c25 = arith.constant 25 : index
    %c0_133 = arith.constant 0 : index
    %111 = tpu.strided_load %arg18[%c25, %c0_133] {strides = array<i32: 4, 1>} : memref<94x16xf32, #tpu.memory_space<vmem>>, vector<16x16xf32>
    %c26 = arith.constant 26 : index
    %c0_134 = arith.constant 0 : index
    %112 = tpu.strided_load %arg18[%c26, %c0_134] {strides = array<i32: 4, 1>} : memref<94x16xf32, #tpu.memory_space<vmem>>, vector<16x16xf32>
    %c27 = arith.constant 27 : index
    %c0_135 = arith.constant 0 : index
    %113 = tpu.strided_load %arg18[%c27, %c0_135] {strides = array<i32: 4, 1>} : memref<94x16xf32, #tpu.memory_space<vmem>>, vector<16x16xf32>
    %c28 = arith.constant 28 : index
    %c0_136 = arith.constant 0 : index
    %114 = tpu.strided_load %arg18[%c28, %c0_136] {strides = array<i32: 4, 1>} : memref<94x16xf32, #tpu.memory_space<vmem>>, vector<16x16xf32>
    %c29 = arith.constant 29 : index
    %c0_137 = arith.constant 0 : index
    %115 = tpu.strided_load %arg18[%c29, %c0_137] {strides = array<i32: 4, 1>} : memref<94x16xf32, #tpu.memory_space<vmem>>, vector<16x16xf32>
    %c30 = arith.constant 30 : index
    %c0_138 = arith.constant 0 : index
    %116 = tpu.strided_load %arg18[%c30, %c0_138] {strides = array<i32: 4, 1>} : memref<94x16xf32, #tpu.memory_space<vmem>>, vector<16x16xf32>
    %c31 = arith.constant 31 : index
    %c0_139 = arith.constant 0 : index
    %117 = tpu.strided_load %arg18[%c31, %c0_139] {strides = array<i32: 4, 1>} : memref<94x16xf32, #tpu.memory_space<vmem>>, vector<16x16xf32>
    %118 = tpu.concatenate %86, %87, %88, %89, %90, %91, %92, %93, %94, %95, %96, %97, %98, %99, %100, %101 in 1 : vector<16x16xf32>, vector<16x16xf32>, vector<16x16xf32>, vector<16x16xf32>, vector<16x16xf32>, vector<16x16xf32>, vector<16x16xf32>, vector<16x16xf32>, vector<16x16xf32>, vector<16x16xf32>, vector<16x16xf32>, vector<16x16xf32>, vector<16x16xf32>, vector<16x16xf32>, vector<16x16xf32>, vector<16x16xf32> -> vector<16x256xf32>
    %119 = tpu.concatenate %102, %103, %104, %105, %106, %107, %108, %109, %110, %111, %112, %113, %114, %115, %116, %117 in 1 : vector<16x16xf32>, vector<16x16xf32>, vector<16x16xf32>, vector<16x16xf32>, vector<16x16xf32>, vector<16x16xf32>, vector<16x16xf32>, vector<16x16xf32>, vector<16x16xf32>, vector<16x16xf32>, vector<16x16xf32>, vector<16x16xf32>, vector<16x16xf32>, vector<16x16xf32>, vector<16x16xf32>, vector<16x16xf32> -> vector<16x256xf32>
    %120 = tpu.concatenate %118, %119 in 1 : vector<16x256xf32>, vector<16x256xf32> -> vector<16x512xf32>
    %c2_140 = arith.constant 2 : index
    %c0_141 = arith.constant 0 : index
    %121 = tpu.strided_load %arg18[%c2_140, %c0_141] {strides = array<i32: 4, 1>} : memref<94x16xf32, #tpu.memory_space<vmem>>, vector<16x16xf32>
    %c3_142 = arith.constant 3 : index
    %c0_143 = arith.constant 0 : index
    %122 = tpu.strided_load %arg18[%c3_142, %c0_143] {strides = array<i32: 4, 1>} : memref<94x16xf32, #tpu.memory_space<vmem>>, vector<16x16xf32>
    %c4_144 = arith.constant 4 : index
    %c0_145 = arith.constant 0 : index
    %123 = tpu.strided_load %arg18[%c4_144, %c0_145] {strides = array<i32: 4, 1>} : memref<94x16xf32, #tpu.memory_space<vmem>>, vector<16x16xf32>
    %c5_146 = arith.constant 5 : index
    %c0_147 = arith.constant 0 : index
    %124 = tpu.strided_load %arg18[%c5_146, %c0_147] {strides = array<i32: 4, 1>} : memref<94x16xf32, #tpu.memory_space<vmem>>, vector<16x16xf32>
    %c6_148 = arith.constant 6 : index
    %c0_149 = arith.constant 0 : index
    %125 = tpu.strided_load %arg18[%c6_148, %c0_149] {strides = array<i32: 4, 1>} : memref<94x16xf32, #tpu.memory_space<vmem>>, vector<16x16xf32>
    %c7_150 = arith.constant 7 : index
    %c0_151 = arith.constant 0 : index
    %126 = tpu.strided_load %arg18[%c7_150, %c0_151] {strides = array<i32: 4, 1>} : memref<94x16xf32, #tpu.memory_space<vmem>>, vector<16x16xf32>
    %c8_152 = arith.constant 8 : index
    %c0_153 = arith.constant 0 : index
    %127 = tpu.strided_load %arg18[%c8_152, %c0_153] {strides = array<i32: 4, 1>} : memref<94x16xf32, #tpu.memory_space<vmem>>, vector<16x16xf32>
    %c9_154 = arith.constant 9 : index
    %c0_155 = arith.constant 0 : index
    %128 = tpu.strided_load %arg18[%c9_154, %c0_155] {strides = array<i32: 4, 1>} : memref<94x16xf32, #tpu.memory_space<vmem>>, vector<16x16xf32>
    %c10_156 = arith.constant 10 : index
    %c0_157 = arith.constant 0 : index
    %129 = tpu.strided_load %arg18[%c10_156, %c0_157] {strides = array<i32: 4, 1>} : memref<94x16xf32, #tpu.memory_space<vmem>>, vector<16x16xf32>
    %c11_158 = arith.constant 11 : index
    %c0_159 = arith.constant 0 : index
    %130 = tpu.strided_load %arg18[%c11_158, %c0_159] {strides = array<i32: 4, 1>} : memref<94x16xf32, #tpu.memory_space<vmem>>, vector<16x16xf32>
    %c12_160 = arith.constant 12 : index
    %c0_161 = arith.constant 0 : index
    %131 = tpu.strided_load %arg18[%c12_160, %c0_161] {strides = array<i32: 4, 1>} : memref<94x16xf32, #tpu.memory_space<vmem>>, vector<16x16xf32>
    %c13_162 = arith.constant 13 : index
    %c0_163 = arith.constant 0 : index
    %132 = tpu.strided_load %arg18[%c13_162, %c0_163] {strides = array<i32: 4, 1>} : memref<94x16xf32, #tpu.memory_space<vmem>>, vector<16x16xf32>
    %c14_164 = arith.constant 14 : index
    %c0_165 = arith.constant 0 : index
    %133 = tpu.strided_load %arg18[%c14_164, %c0_165] {strides = array<i32: 4, 1>} : memref<94x16xf32, #tpu.memory_space<vmem>>, vector<16x16xf32>
    %c15_166 = arith.constant 15 : index
    %c0_167 = arith.constant 0 : index
    %134 = tpu.strided_load %arg18[%c15_166, %c0_167] {strides = array<i32: 4, 1>} : memref<94x16xf32, #tpu.memory_space<vmem>>, vector<16x16xf32>
    %c16_168 = arith.constant 16 : index
    %c0_169 = arith.constant 0 : index
    %135 = tpu.strided_load %arg18[%c16_168, %c0_169] {strides = array<i32: 4, 1>} : memref<94x16xf32, #tpu.memory_space<vmem>>, vector<16x16xf32>
    %c17_170 = arith.constant 17 : index
    %c0_171 = arith.constant 0 : index
    %136 = tpu.strided_load %arg18[%c17_170, %c0_171] {strides = array<i32: 4, 1>} : memref<94x16xf32, #tpu.memory_space<vmem>>, vector<16x16xf32>
    %c18_172 = arith.constant 18 : index
    %c0_173 = arith.constant 0 : index
    %137 = tpu.strided_load %arg18[%c18_172, %c0_173] {strides = array<i32: 4, 1>} : memref<94x16xf32, #tpu.memory_space<vmem>>, vector<16x16xf32>
    %c19_174 = arith.constant 19 : index
    %c0_175 = arith.constant 0 : index
    %138 = tpu.strided_load %arg18[%c19_174, %c0_175] {strides = array<i32: 4, 1>} : memref<94x16xf32, #tpu.memory_space<vmem>>, vector<16x16xf32>
    %c20_176 = arith.constant 20 : index
    %c0_177 = arith.constant 0 : index
    %139 = tpu.strided_load %arg18[%c20_176, %c0_177] {strides = array<i32: 4, 1>} : memref<94x16xf32, #tpu.memory_space<vmem>>, vector<16x16xf32>
    %c21_178 = arith.constant 21 : index
    %c0_179 = arith.constant 0 : index
    %140 = tpu.strided_load %arg18[%c21_178, %c0_179] {strides = array<i32: 4, 1>} : memref<94x16xf32, #tpu.memory_space<vmem>>, vector<16x16xf32>
    %c22_180 = arith.constant 22 : index
    %c0_181 = arith.constant 0 : index
    %141 = tpu.strided_load %arg18[%c22_180, %c0_181] {strides = array<i32: 4, 1>} : memref<94x16xf32, #tpu.memory_space<vmem>>, vector<16x16xf32>
    %c23_182 = arith.constant 23 : index
    %c0_183 = arith.constant 0 : index
    %142 = tpu.strided_load %arg18[%c23_182, %c0_183] {strides = array<i32: 4, 1>} : memref<94x16xf32, #tpu.memory_space<vmem>>, vector<16x16xf32>
    %c24_184 = arith.constant 24 : index
    %c0_185 = arith.constant 0 : index
    %143 = tpu.strided_load %arg18[%c24_184, %c0_185] {strides = array<i32: 4, 1>} : memref<94x16xf32, #tpu.memory_space<vmem>>, vector<16x16xf32>
    %c25_186 = arith.constant 25 : index
    %c0_187 = arith.constant 0 : index
    %144 = tpu.strided_load %arg18[%c25_186, %c0_187] {strides = array<i32: 4, 1>} : memref<94x16xf32, #tpu.memory_space<vmem>>, vector<16x16xf32>
    %c26_188 = arith.constant 26 : index
    %c0_189 = arith.constant 0 : index
    %145 = tpu.strided_load %arg18[%c26_188, %c0_189] {strides = array<i32: 4, 1>} : memref<94x16xf32, #tpu.memory_space<vmem>>, vector<16x16xf32>
    %c27_190 = arith.constant 27 : index
    %c0_191 = arith.constant 0 : index
    %146 = tpu.strided_load %arg18[%c27_190, %c0_191] {strides = array<i32: 4, 1>} : memref<94x16xf32, #tpu.memory_space<vmem>>, vector<16x16xf32>
    %c28_192 = arith.constant 28 : index
    %c0_193 = arith.constant 0 : index
    %147 = tpu.strided_load %arg18[%c28_192, %c0_193] {strides = array<i32: 4, 1>} : memref<94x16xf32, #tpu.memory_space<vmem>>, vector<16x16xf32>
    %c29_194 = arith.constant 29 : index
    %c0_195 = arith.constant 0 : index
    %148 = tpu.strided_load %arg18[%c29_194, %c0_195] {strides = array<i32: 4, 1>} : memref<94x16xf32, #tpu.memory_space<vmem>>, vector<16x16xf32>
    %c30_196 = arith.constant 30 : index
    %c0_197 = arith.constant 0 : index
    %149 = tpu.strided_load %arg18[%c30_196, %c0_197] {strides = array<i32: 4, 1>} : memref<94x16xf32, #tpu.memory_space<vmem>>, vector<16x16xf32>
    %c31_198 = arith.constant 31 : index
    %c0_199 = arith.constant 0 : index
    %150 = tpu.strided_load %arg18[%c31_198, %c0_199] {strides = array<i32: 4, 1>} : memref<94x16xf32, #tpu.memory_space<vmem>>, vector<16x16xf32>
    %c32 = arith.constant 32 : index
    %c0_200 = arith.constant 0 : index
    %151 = tpu.strided_load %arg18[%c32, %c0_200] {strides = array<i32: 4, 1>} : memref<94x16xf32, #tpu.memory_space<vmem>>, vector<16x16xf32>
    %c33 = arith.constant 33 : index
    %c0_201 = arith.constant 0 : index
    %152 = tpu.strided_load %arg18[%c33, %c0_201] {strides = array<i32: 4, 1>} : memref<94x16xf32, #tpu.memory_space<vmem>>, vector<16x16xf32>
    %153 = tpu.concatenate %121, %122, %123, %124, %125, %126, %127, %128, %129, %130, %131, %132, %133, %134, %135, %136 in 1 : vector<16x16xf32>, vector<16x16xf32>, vector<16x16xf32>, vector<16x16xf32>, vector<16x16xf32>, vector<16x16xf32>, vector<16x16xf32>, vector<16x16xf32>, vector<16x16xf32>, vector<16x16xf32>, vector<16x16xf32>, vector<16x16xf32>, vector<16x16xf32>, vector<16x16xf32>, vector<16x16xf32>, vector<16x16xf32> -> vector<16x256xf32>
    %154 = tpu.concatenate %137, %138, %139, %140, %141, %142, %143, %144, %145, %146, %147, %148, %149, %150, %151, %152 in 1 : vector<16x16xf32>, vector<16x16xf32>, vector<16x16xf32>, vector<16x16xf32>, vector<16x16xf32>, vector<16x16xf32>, vector<16x16xf32>, vector<16x16xf32>, vector<16x16xf32>, vector<16x16xf32>, vector<16x16xf32>, vector<16x16xf32>, vector<16x16xf32>, vector<16x16xf32>, vector<16x16xf32>, vector<16x16xf32> -> vector<16x256xf32>
    %155 = tpu.concatenate %153, %154 in 1 : vector<16x256xf32>, vector<16x256xf32> -> vector<16x512xf32>
    %156 = tpu.concatenate %120, %155 in 0 : vector<16x512xf32>, vector<16x512xf32> -> vector<32x512xf32>
    %c0_202 = arith.constant 0 : index
    %c0_203 = arith.constant 0 : index
    %157 = vector.load %arg7[%c0_202, %c0_203] : memref<512x32xf32, #tpu.memory_space<vmem>>, vector<512x32xf32>
    %cst_204 = arith.constant dense<0.000000e+00> : vector<32x32xf32>
    %158 = tpu.matmul %156, %157, %cst_204 {dimension_numbers = #tpu.dot_dimension_numbers<[1], [0], [0], [1], [0, 0, 1, 1], [], []>} : vector<32x512xf32>, vector<512x32xf32>, vector<32x32xf32> -> vector<32x32xf32>
    %c0_205 = arith.constant 0 : index
    %c0_206 = arith.constant 0 : index
    %159 = vector.load %arg8[%c0_205, %c0_206] : memref<1x32xf32, #tpu.memory_space<vmem>>, vector<1x32xf32>
    %160 = vector.broadcast %159 : vector<1x32xf32> to vector<32x32xf32>
    %161 = arith.addf %158, %160 : vector<32x32xf32>
    %cst_207 = arith.constant 0.000000e+00 : f32
    %162 = vector.broadcast %cst_207 : f32 to vector<32x32xf32>
    %163 = arith.maximumf %161, %162 : vector<32x32xf32>
    %c0_208 = arith.constant 0 : index
    %c0_209 = arith.constant 0 : index
    %164 = vector.load %arg9[%c0_208, %c0_209] : memref<1x32xf32, #tpu.memory_space<vmem>>, vector<1x32xf32>
    %165 = vector.broadcast %164 : vector<1x32xf32> to vector<32x32xf32>
    %166 = arith.mulf %163, %165 : vector<32x32xf32>
    %c0_210 = arith.constant 0 : index
    %c0_211 = arith.constant 0 : index
    %167 = vector.load %arg10[%c0_210, %c0_211] : memref<1x32xf32, #tpu.memory_space<vmem>>, vector<1x32xf32>
    %168 = vector.broadcast %167 : vector<1x32xf32> to vector<32x32xf32>
    %169 = arith.addf %166, %168 : vector<32x32xf32>
    %170 = vector.extract_strided_slice %169 {offsets = [0, 0], sizes = [16, 32], strides = [1, 1]} : vector<32x32xf32> to vector<16x32xf32>
    %171 = vector.extract_strided_slice %169 {offsets = [16, 0], sizes = [16, 32], strides = [1, 1]} : vector<32x32xf32> to vector<16x32xf32>
    %172 = arith.maximumf %170, %171 : vector<16x32xf32>
    %cst_212 = arith.constant 0.000000e+00 : f32
    %173 = vector.broadcast %cst_212 : f32 to vector<7x32xf32>
    %174 = tpu.concatenate %173, %172, %173 in 0 : vector<7x32xf32>, vector<16x32xf32>, vector<7x32xf32> -> vector<30x32xf32>
    %c0_213 = arith.constant 0 : index
    %c0_214 = arith.constant 0 : index
    %175 = vector.load %arg19[%c0_213, %c0_214] : memref<30x32xf32, #tpu.memory_space<vmem>>, vector<30x32xf32>
    tpu.vector_store %arg19[%c0_213, %c0_214], %174 {strides = array<i32>} : memref<30x32xf32, #tpu.memory_space<vmem>>, vector<30x32xf32>,
    %c0_215 = arith.constant 0 : index
    %c0_216 = arith.constant 0 : index
    %176 = tpu.strided_load %arg19[%c0_215, %c0_216] {strides = array<i32: 2, 1>} : memref<30x32xf32, #tpu.memory_space<vmem>>, vector<8x32xf32>
    %c1_217 = arith.constant 1 : index
    %c0_218 = arith.constant 0 : index
    %177 = tpu.strided_load %arg19[%c1_217, %c0_218] {strides = array<i32: 2, 1>} : memref<30x32xf32, #tpu.memory_space<vmem>>, vector<8x32xf32>
    %c2_219 = arith.constant 2 : index
    %c0_220 = arith.constant 0 : index
    %178 = tpu.strided_load %arg19[%c2_219, %c0_220] {strides = array<i32: 2, 1>} : memref<30x32xf32, #tpu.memory_space<vmem>>, vector<8x32xf32>
    %c3_221 = arith.constant 3 : index
    %c0_222 = arith.constant 0 : index
    %179 = tpu.strided_load %arg19[%c3_221, %c0_222] {strides = array<i32: 2, 1>} : memref<30x32xf32, #tpu.memory_space<vmem>>, vector<8x32xf32>
    %c4_223 = arith.constant 4 : index
    %c0_224 = arith.constant 0 : index
    %180 = tpu.strided_load %arg19[%c4_223, %c0_224] {strides = array<i32: 2, 1>} : memref<30x32xf32, #tpu.memory_space<vmem>>, vector<8x32xf32>
    %c5_225 = arith.constant 5 : index
    %c0_226 = arith.constant 0 : index
    %181 = tpu.strided_load %arg19[%c5_225, %c0_226] {strides = array<i32: 2, 1>} : memref<30x32xf32, #tpu.memory_space<vmem>>, vector<8x32xf32>
    %c6_227 = arith.constant 6 : index
    %c0_228 = arith.constant 0 : index
    %182 = tpu.strided_load %arg19[%c6_227, %c0_228] {strides = array<i32: 2, 1>} : memref<30x32xf32, #tpu.memory_space<vmem>>, vector<8x32xf32>
    %c7_229 = arith.constant 7 : index
    %c0_230 = arith.constant 0 : index
    %183 = tpu.strided_load %arg19[%c7_229, %c0_230] {strides = array<i32: 2, 1>} : memref<30x32xf32, #tpu.memory_space<vmem>>, vector<8x32xf32>
    %c8_231 = arith.constant 8 : index
    %c0_232 = arith.constant 0 : index
    %184 = tpu.strided_load %arg19[%c8_231, %c0_232] {strides = array<i32: 2, 1>} : memref<30x32xf32, #tpu.memory_space<vmem>>, vector<8x32xf32>
    %c9_233 = arith.constant 9 : index
    %c0_234 = arith.constant 0 : index
    %185 = tpu.strided_load %arg19[%c9_233, %c0_234] {strides = array<i32: 2, 1>} : memref<30x32xf32, #tpu.memory_space<vmem>>, vector<8x32xf32>
    %c10_235 = arith.constant 10 : index
    %c0_236 = arith.constant 0 : index
    %186 = tpu.strided_load %arg19[%c10_235, %c0_236] {strides = array<i32: 2, 1>} : memref<30x32xf32, #tpu.memory_space<vmem>>, vector<8x32xf32>
    %c11_237 = arith.constant 11 : index
    %c0_238 = arith.constant 0 : index
    %187 = tpu.strided_load %arg19[%c11_237, %c0_238] {strides = array<i32: 2, 1>} : memref<30x32xf32, #tpu.memory_space<vmem>>, vector<8x32xf32>
    %c12_239 = arith.constant 12 : index
    %c0_240 = arith.constant 0 : index
    %188 = tpu.strided_load %arg19[%c12_239, %c0_240] {strides = array<i32: 2, 1>} : memref<30x32xf32, #tpu.memory_space<vmem>>, vector<8x32xf32>
    %c13_241 = arith.constant 13 : index
    %c0_242 = arith.constant 0 : index
    %189 = tpu.strided_load %arg19[%c13_241, %c0_242] {strides = array<i32: 2, 1>} : memref<30x32xf32, #tpu.memory_space<vmem>>, vector<8x32xf32>
    %c14_243 = arith.constant 14 : index
    %c0_244 = arith.constant 0 : index
    %190 = tpu.strided_load %arg19[%c14_243, %c0_244] {strides = array<i32: 2, 1>} : memref<30x32xf32, #tpu.memory_space<vmem>>, vector<8x32xf32>
    %c15_245 = arith.constant 15 : index
    %c0_246 = arith.constant 0 : index
    %191 = tpu.strided_load %arg19[%c15_245, %c0_246] {strides = array<i32: 2, 1>} : memref<30x32xf32, #tpu.memory_space<vmem>>, vector<8x32xf32>
    %192 = tpu.concatenate %176, %177, %178, %179, %180, %181, %182, %183, %184, %185, %186, %187, %188, %189, %190, %191 in 1 : vector<8x32xf32>, vector<8x32xf32>, vector<8x32xf32>, vector<8x32xf32>, vector<8x32xf32>, vector<8x32xf32>, vector<8x32xf32>, vector<8x32xf32>, vector<8x32xf32>, vector<8x32xf32>, vector<8x32xf32>, vector<8x32xf32>, vector<8x32xf32>, vector<8x32xf32>, vector<8x32xf32>, vector<8x32xf32> -> vector<8x512xf32>
    %c0_247 = arith.constant 0 : index
    %c0_248 = arith.constant 0 : index
    %193 = vector.load %arg11[%c0_247, %c0_248] : memref<512x64xf32, #tpu.memory_space<vmem>>, vector<512x64xf32>
    %cst_249 = arith.constant dense<0.000000e+00> : vector<8x64xf32>
    %194 = tpu.matmul %192, %193, %cst_249 {dimension_numbers = #tpu.dot_dimension_numbers<[1], [0], [0], [1], [0, 0, 1, 1], [], []>} : vector<8x512xf32>, vector<512x64xf32>, vector<8x64xf32> -> vector<8x64xf32>
    %c0_250 = arith.constant 0 : index
    %c0_251 = arith.constant 0 : index
    %195 = vector.load %arg12[%c0_250, %c0_251] : memref<1x64xf32, #tpu.memory_space<vmem>>, vector<1x64xf32>
    %196 = vector.broadcast %195 : vector<1x64xf32> to vector<8x64xf32>
    %197 = arith.addf %194, %196 : vector<8x64xf32>
    %cst_252 = arith.constant 0.000000e+00 : f32
    %198 = vector.broadcast %cst_252 : f32 to vector<8x64xf32>
    %199 = arith.maximumf %197, %198 : vector<8x64xf32>
    %c0_253 = arith.constant 0 : index
    %c0_254 = arith.constant 0 : index
    %200 = vector.load %arg13[%c0_253, %c0_254] : memref<1x64xf32, #tpu.memory_space<vmem>>, vector<1x64xf32>
    %201 = vector.broadcast %200 : vector<1x64xf32> to vector<8x64xf32>
    %202 = arith.mulf %199, %201 : vector<8x64xf32>
    %c0_255 = arith.constant 0 : index
    %c0_256 = arith.constant 0 : index
    %203 = vector.load %arg14[%c0_255, %c0_256] : memref<1x64xf32, #tpu.memory_space<vmem>>, vector<1x64xf32>
    %204 = vector.broadcast %203 : vector<1x64xf32> to vector<8x64xf32>
    %205 = arith.addf %202, %204 : vector<8x64xf32>
    %cst_257 = arith.constant dense<0.000000e+00> : vector<64xf32>
    %206 = vector.multi_reduction <add>, %205, %cst_257 [0] : vector<8x64xf32> to vector<64xf32>
    %207 = vector.shape_cast %206 : vector<64xf32> to vector<1x64xf32>
    %cst_258 = arith.constant 8.000000e+00 : f32
    %208 = vector.broadcast %cst_258 : f32 to vector<1x64xf32>
    %209 = arith.divf %207, %208 : vector<1x64xf32>
    %c0_259 = arith.constant 0 : index
    %c0_260 = arith.constant 0 : index
    %210 = vector.load %arg15[%c0_259, %c0_260] : memref<64x128xf32, #tpu.memory_space<vmem>>, vector<64x128xf32>
    %cst_261 = arith.constant dense<0.000000e+00> : vector<1x128xf32>
    %211 = tpu.matmul %209, %210, %cst_261 {dimension_numbers = #tpu.dot_dimension_numbers<[1], [0], [0], [1], [0, 0, 1, 1], [], []>} : vector<1x64xf32>, vector<64x128xf32>, vector<1x128xf32> -> vector<1x128xf32>
    %c0_262 = arith.constant 0 : index
    %c0_263 = arith.constant 0 : index
    %212 = vector.load %arg16[%c0_262, %c0_263] : memref<1x128xf32, #tpu.memory_space<vmem>>, vector<1x128xf32>
    %213 = arith.addf %211, %212 : vector<1x128xf32>
    %c0_264 = arith.constant 0 : index
    %c0_265 = arith.constant 0 : index
    %c0_266 = arith.constant 0 : index
    %214 = vector.load %arg17[%c0_264, %c0_265, %c0_266] : memref<1x1x128xf32, #tpu.memory_space<vmem>>, vector<1x1x128xf32>
    %215 = vector.shape_cast %214 : vector<1x1x128xf32> to vector<1x128xf32>
    %216 = vector.shape_cast %213 : vector<1x128xf32> to vector<1x1x128xf32>
    tpu.vector_store %arg17[%c0_264, %c0_265, %c0_266], %216 {strides = array<i32>} : memref<1x1x128xf32, #tpu.memory_space<vmem>>, vector<1x1x128xf32>,
    return
  }
  func.func @transform_0(%arg0: i32) -> (i32, i32, i32) {
    %c0_i32 = arith.constant 0 : i32
    %c0_i32_0 = arith.constant 0 : i32
    %c0_i32_1 = arith.constant 0 : i32
    return %arg0, %c0_i32, %c0_i32_0 : i32, i32, i32
  }
  func.func @transform_1(%arg0: i32) -> (i32, i32, i32) {
    %c0_i32 = arith.constant 0 : i32
    %c0_i32_0 = arith.constant 0 : i32
    %c0_i32_1 = arith.constant 0 : i32
    return %arg0, %c0_i32, %c0_i32_0 : i32, i32, i32
  }
  func.func @transform_2(%arg0: i32) -> (i32, i32) {
    %c0_i32 = arith.constant 0 : i32
    %c0_i32_0 = arith.constant 0 : i32
    %c0_i32_1 = arith.constant 0 : i32
    return %c0_i32, %c0_i32_0 : i32, i32
  }
  func.func @transform_3(%arg0: i32) -> (i32, i32) {
    %c0_i32 = arith.constant 0 : i32
    %c0_i32_0 = arith.constant 0 : i32
    %c0_i32_1 = arith.constant 0 : i32
    return %c0_i32, %c0_i32_0 : i32, i32
  }
  func.func @transform_4(%arg0: i32) -> (i32, i32) {
    %c0_i32 = arith.constant 0 : i32
    %c0_i32_0 = arith.constant 0 : i32
    %c0_i32_1 = arith.constant 0 : i32
    return %c0_i32, %c0_i32_0 : i32, i32
  }
  func.func @transform_5(%arg0: i32) -> (i32, i32) {
    %c0_i32 = arith.constant 0 : i32
    %c0_i32_0 = arith.constant 0 : i32
    %c0_i32_1 = arith.constant 0 : i32
    return %c0_i32, %c0_i32_0 : i32, i32
  }
  func.func @transform_6(%arg0: i32) -> (i32, i32) {
    %c0_i32 = arith.constant 0 : i32
    %c0_i32_0 = arith.constant 0 : i32
    %c0_i32_1 = arith.constant 0 : i32
    return %c0_i32, %c0_i32_0 : i32, i32
  }
  func.func @transform_7(%arg0: i32) -> (i32, i32) {
    %c0_i32 = arith.constant 0 : i32
    %c0_i32_0 = arith.constant 0 : i32
    %c0_i32_1 = arith.constant 0 : i32
    return %c0_i32, %c0_i32_0 : i32, i32
  }
  func.func @transform_8(%arg0: i32) -> (i32, i32) {
    %c0_i32 = arith.constant 0 : i32
    %c0_i32_0 = arith.constant 0 : i32
    %c0_i32_1 = arith.constant 0 : i32
    return %c0_i32, %c0_i32_0 : i32, i32
  }
  func.func @transform_9(%arg0: i32) -> (i32, i32) {
    %c0_i32 = arith.constant 0 : i32
    %c0_i32_0 = arith.constant 0 : i32
    %c0_i32_1 = arith.constant 0 : i32
    return %c0_i32, %c0_i32_0 : i32, i32
  }
  func.func @transform_10(%arg0: i32) -> (i32, i32) {
    %c0_i32 = arith.constant 0 : i32
    %c0_i32_0 = arith.constant 0 : i32
    %c0_i32_1 = arith.constant 0 : i32
    return %c0_i32, %c0_i32_0 : i32, i32
  }
  func.func @transform_11(%arg0: i32) -> (i32, i32) {
    %c0_i32 = arith.constant 0 : i32
    %c0_i32_0 = arith.constant 0 : i32
    %c0_i32_1 = arith.constant 0 : i32
    return %c0_i32, %c0_i32_0 : i32, i32
  }
  func.func @transform_12(%arg0: i32) -> (i32, i32) {
    %c0_i32 = arith.constant 0 : i32
    %c0_i32_0 = arith.constant 0 : i32
    %c0_i32_1 = arith.constant 0 : i32
    return %c0_i32, %c0_i32_0 : i32, i32
  }
  func.func @transform_13(%arg0: i32) -> (i32, i32) {
    %c0_i32 = arith.constant 0 : i32
    %c0_i32_0 = arith.constant 0 : i32
    %c0_i32_1 = arith.constant 0 : i32
    return %c0_i32, %c0_i32_0 : i32, i32
  }
  func.func @transform_14(%arg0: i32) -> (i32, i32) {
    %c0_i32 = arith.constant 0 : i32
    %c0_i32_0 = arith.constant 0 : i32
    %c0_i32_1 = arith.constant 0 : i32
    return %c0_i32, %c0_i32_0 : i32, i32
  }
  func.func @transform_15(%arg0: i32) -> (i32, i32) {
    %c0_i32 = arith.constant 0 : i32
    %c0_i32_0 = arith.constant 0 : i32
    %c0_i32_1 = arith.constant 0 : i32
    return %c0_i32, %c0_i32_0 : i32, i32
  }
  func.func @transform_16(%arg0: i32) -> (i32, i32, i32) {
    %c0_i32 = arith.constant 0 : i32
    %c0_i32_0 = arith.constant 0 : i32
    %c0_i32_1 = arith.constant 0 : i32
    return %arg0, %c0_i32, %c0_i32_0 : i32, i32, i32
  }
}

</mosaic_0001>

<bundles_post_ra>
// kernel: tpu_custom_call.1
= control target key start
LH: loop header
LB: loop body
LE: loop exit
PB: predicated region body
PF: predicated region fallthrough
CT: control target
= control target key end

     0   :  { %s7200_s0 = inlined_call_operand.vmem [shape: f32[2,80,4], index: 0, kind: input, shape index: {}]   ;;  %s7201_s1 = inlined_call_operand.vmem [shape: f32[2,80,4], index: 1, kind: input, shape index: {}]   ;;  %s7202_s2 = inlined_call_operand.vmem [shape: f32[64,16], index: 2, kind: input, shape index: {}]   ;;  %s7203_s3 = inlined_call_operand.vmem [shape: f32[1,16], index: 3, kind: input, shape index: {}]   ;;  %s7204_s4 = inlined_call_operand.vmem [shape: f32[1,16], index: 4, kind: input, shape index: {}]   ;;  %s7205_s5 = inlined_call_operand.vmem [shape: f32[1,16], index: 5, kind: input, shape index: {}]   ;;  %s7206_s6 = inlined_call_operand.vmem [shape: f32[512,32], index: 6, kind: input, shape index: {}]   ;;  %s7207_s7 = inlined_call_operand.vmem [shape: f32[1,32], index: 7, kind: input, shape index: {}]   ;;  %s7208_s8 = inlined_call_operand.vmem [shape: f32[1,32], index: 8, kind: input, shape index: {}]   ;;  %s7209_s9 = inlined_call_operand.vmem [shape: f32[1,32], index: 9, kind: input, shape index: {}]   ;;  %s7210_s10 = inlined_call_operand.vmem [shape: f32[512,64], index: 10, kind: input, shape index: {}]   ;;  %s7211_s11 = inlined_call_operand.vmem [shape: f32[1,64], index: 11, kind: input, shape index: {}]   ;;  %s7212_s12 = inlined_call_operand.vmem [shape: f32[1,64], index: 12, kind: input, shape index: {}]   ;;  %s7213_s13 = inlined_call_operand.vmem [shape: f32[1,64], index: 13, kind: input, shape index: {}]   ;;  %s7214_s14 = inlined_call_operand.vmem [shape: f32[64,128], index: 14, kind: input, shape index: {}]   ;;  %s7215_s15 = inlined_call_operand.vmem [shape: f32[1,128], index: 15, kind: input, shape index: {}]   ;;  %s7216_s16 = inlined_call_operand.hbm [shape: f32[2,1,128], index: 16, kind: output, shape index: {}]  }
   0x1   :  { %7273 = sst [smem:[#allocation52_spill]] %s7200_s0 }
   0x2   :  { %7274 = sst [smem:[#allocation53_spill]] %s7211_s11 }
   0x3   :  { %7275 = sst [smem:[#allocation54_spill]] %s7212_s12 }
   0x4   :  { %7276 = sst [smem:[#allocation55_spill]] %s7213_s13 }
   0x5   :  { %7277 = sst [smem:[#allocation56_spill]] %s7214_s14 }
   0x6   :  { %7278 = sst [smem:[#allocation57_spill]] %s7215_s15 }
   0x7   :  { %7279 = sst [smem:[#allocation58_spill]] %s7216_s16 }
   0x8   :  { %21 = vsyncpa [#allocation5], 0 }
   0x9   :  { %23 = vsyncpa [#allocation5 + $0x1], 0  ;;  %s4536_s21 = smov 0   ;;  %s4538_s22 = smov 0  }
   0xa   :  { %s4540_s23 = smov 0   ;;  %s4542_s24 = smov 0  }
   0xb LB: > { %7280 = sst [smem:[#allocation7_spill]] %s4414_s21  ;;  %s4557_s25 = sadd.s32 4294967295, %s4426_s24   ;;  %s4426_s24 = sphi %s4542_s24, %s7419_s24   ;;  %s4422_s23 = sphi %s4540_s23, %s7422_s23   ;;  %s4418_s22 = sphi %s4538_s22, %s7421_s22   ;;  %s4414_s21 = sphi %s4536_s21, %s7420_s21  }
   0xc   : > { %7281 = sst [smem:[#allocation8_spill]] %s4418_s22  ;;  %s3549_s26 = sadd.s32 4294967294, %s4426_s24  }
   0xd   : > { %7282 = sst [smem:[#allocation9_spill]] %s4422_s23  ;;  %s4561_s27 = sadd.s32 1, %s4426_s24  }
   0xe   : > { %7283 = sst [smem:[#allocation10_spill]] %s4426_s24  ;;  %s382_s28 = sadd.s32 1, %s4422_s23 }
   0xf   : > { %7284 = sst [smem:[#allocation11_spill]] %s4557_s25  ;;  %s379_s29 = ssub.s32 %s4426_s24, %s4561_s27 }
  0x10   : > { %7285 = sst [smem:[#allocation12_spill]] %s4561_s27  ;;  %p392_p0 = scmp.ne.s32.totalorder %s4422_s23, %s4418_s22 }
  0x11   : > { %p380_p1 = scmp.eq.s32.totalorder %s379_s29, 0  ;;  %p393_p2 = scmp.eq.s32.totalorder %s4557_s25, 1 }
  0x12   : > { %p398_p3 = scmp.ne.s32.totalorder %s4418_s22, %s4414_s21  ;;  %p399_p4 = scmp.eq.s32.totalorder %s3549_s26, 1 }
  0x13   : > { %s4572_s30 = scalar_select %p380_p1, %s4422_s23, %s382_s28  }
  0x14   : > { %p4574_p5 = por %p393_p2, %p392_p0  ;;  %p4578_p6 = por %p399_p4, %p398_p3 }
  0x15   : > { %7286 = sst [smem:[#allocation13_spill]] %s4572_s30  ;;  %p3552_p7 = scmp.ge.s32.totalorder %s4426_s24, 1 }
  0x16   : > { %s7287_s0 = scalar_select %p4574_p5, 1, 0 }
  0x17   : > { %s7289_s17 = scalar_select %p4578_p6, 1, 0 }
  0x18   : > { %7288 = sst [smem:[#allocation14_spill]] %s7287_s0  ;;  %p475_p8 = scmp.lt.s32.totalorder %s4426_s24, 3 }
  0x19   : > { %7290 = sst [smem:[#allocation15_spill]] %s7289_s17 }
  0x1a   : > { %p476_p9 = pnand %p3552_p7, %p475_p8 }
  0x1c   : > { %479 = sbr.rel (%p476_p9) target bundleno = 1923 (0x783), region = 84 }
  0x23   : > { %p529_p10 = scmp.lt.s32.totalorder %s4557_s25, 1  ;;  %s7291_s28 = sld [smem:[#allocation52_spill]]  ;;  %v1800_v50 = vld [vmem:[%s7202_s2] sm:$0xff]  ;;  %v1801_v51 = vld [vmem:[%s7202_s2 + $0x8] sm:$0xff]  ;;  %v1802_v59 = vld [vmem:[%s7202_s2 + $0x10] sm:$0xff]  ;;  %vm1042_vm0 = vcmask 31744  }
  0x24   : > { %s7221_s30 = smov 8   ;;  %s7219_s23 = smov 4   ;;  %v3834_v54 = vpack.c.bf16 %v1801_v51, %v1800_v50  ;;  %v1803_v60 = vld [vmem:[%s7202_s2 + $0x18] sm:$0xff]  ;;  %vm1051_vm1 = vcmask 64512   ;;  %vm1060_vm2 = vcmask 97280   ;;  %vm1069_vm3 = vcmask 130048  }
  0x25   : > { %s4586_s18 = scalar_select %p529_p10, %s4557_s25, 1  ;;  %v3838_v61 = vpack.c.bf16 %v1803_v60, %v1802_v59  ;;  %vm1078_vm4 = vcmask 162816   ;;  %vm1087_vm5 = vcmask 195584   ;;  %vm1096_vm6 = vcmask 228352  }
  0x26   : > { %s7231_s20 = smov 12   ;;  %s7227_s26 = smov 16   ;;  %3835 = vmatprep.subr.bf16.mxu0 %v3834_v54  ;;  %vm1105_vm7 = vcmask 261120   ;;  %vm1114_vm8 = vcmask 293888   ;;  %vm1123_vm9 = vcmask 326656   ;;  %vm1132_vm10 = vcmask 359424  }
  0x27   : > { %s7218_s19 = smul.u32 80, %s4586_s18  ;;  %s7243_s27 = smov 44   ;;  %3837 = vmatpush3.bf16.msra.mxu0 %v3834_v54  ;;  %vm1141_vm11 = vcmask 392192   ;;  %vm1150_vm12 = vcmask 424960   ;;  %vm1159_vm13 = vcmask 457728   ;;  %vm1168_vm14 = vcmask 490496  }
  0x28   : > { %s7297_s17 = smov 16   ;;  %s7245_s21 = smov 48   ;;  %3839 = vmatprep.subr.bf16.mxu0 %v3838_v61  ;;  %vm1815_vm15 = vcmask 523264  }
  0x29   : > { %s4594_s29 = scalar_lea.vmem %s7291_s28, %s7218_s19  ;;  %s7233_s28 = smov 20  }
  0x2a   : > { %v555_v0 = vld [vmem:[%s4594_s29 + $0x2] sm:$0xff]  ;;  %v4601_v2 = vld [vmem:[%s4594_s29 + $0xa] sm:$0xff]  ;;  %v557_v10 = vld [vmem:[%s4594_s29 + $0x12] sm:$0xff]  ;;  %s7223_s19 = smov 24   ;;  %s7302_s24 = smov 48  }
  0x2b   : > { %v547_v1 = vld [vmem:[%s4594_s29 + $0x1] sm:$0xff]  ;;  %651 = vrot.lane.b32.xlu1 %v555_v0, %s7221_s30  ;;  %v548_v3 = vld [vmem:[%s4594_s29 + $0x9] sm:$0xff]  ;;  %v549_v6 = vld [vmem:[%s4594_s29 + $0x11] sm:$0xff]  ;;  %s7249_s16 = smov 52   ;;  %s7304_s15 = smov 52   ;;  %3841 = vmatpush3.bf16.msra.mxu0 %v3838_v61 }
  0x2c   : > { %619 = vrot.lane.b32.xlu0 %v547_v1, %s7219_s23  ;;  %v4608_v4 = vld [vmem:[%s4594_s29 + $0xb] sm:$0xff]  ;;  %v563_v5 = vld [vmem:[%s4594_s29 + $0x3] sm:$0xff]  ;;  %v4627_v11 = vld [vmem:[%s4594_s29 + $0x19] sm:$0xff]  ;;  %s7255_s0 = smov 56   ;;  %s7305_s25 = smov 44  }
  0x2d   : > { %v571_v7 = vld [vmem:[%s4594_s29 + $0x4] sm:$0xff]  ;;  %v4620_v9 = vld [vmem:[%s4594_s29 + $0xc] sm:$0xff]  ;;  %v4641_v15 = vld [vmem:[%s4594_s29 + $0x1a] sm:$0xff]  ;;  %s7306_s11 = smov 56   ;;  %s4442_s14 = smov 60  }
  0x2e   : > { %v579_v8 = vld [vmem:[%s4594_s29 + $0x5] sm:$0xff]  ;;  %v4634_v13 = vld [vmem:[%s4594_s29 + $0xd] sm:$0xff]  ;;  %v4655_v19 = vld [vmem:[%s4594_s29 + $0x1b] sm:$0xff]  ;;  %s7411_s12 = sld [smem:[#allocation11_spill]] }
  0x2f   : > { %653 = vrot.lane.b32.xlu1 %v4601_v2, %s7221_s30  ;;  %v587_v12 = vld [vmem:[%s4594_s29 + $0x6] sm:$0xff]  ;;  %v565_v14 = vld [vmem:[%s4594_s29 + $0x13] sm:$0xff]  ;;  %v4672_v23 = vld [vmem:[%s4594_s29 + $0x1c] sm:$0xff] }
  0x30   : > { %621 = vrot.lane.b32.xlu0 %v548_v3, %s7219_s23  ;;  %v595_v16 = vld [vmem:[%s4594_s29 + $0x7] sm:$0xff]  ;;  %v573_v18 = vld [vmem:[%s4594_s29 + $0x14] sm:$0xff]  ;;  %v4694_v28 = vld [vmem:[%s4594_s29 + $0x1d] sm:$0xff] }
  0x31   : > { %v4648_v17 = vld [vmem:[%s4594_s29 + $0xe] sm:$0xff]  ;;  %v551_v22 = vld [vmem:[%s4594_s29 + $0x21] sm:$0xff]  ;;  %v4701_v29 = vld [vmem:[%s4594_s29 + $0x16] sm:$0xff] }
  0x32   : > { %v4661_v20 = vld [vmem:[%s4594_s29 + $0xf] sm:$0xff]  ;;  %v4691_v27 = vld [vmem:[%s4594_s29 + $0x22] sm:$0xff]  ;;  %v4724_v33 = vld [vmem:[%s4594_s29 + $0x17] sm:$0xff] }
  0x33   : > { %685 = vrot.lane.b32.xlu1 %v4608_v4, %s7231_s20  ;;  %v4664_v21 = vld [vmem:[%s4594_s29 + $0x8] sm:$0xff]  ;;  %v581_v24 = vld [vmem:[%s4594_s29 + $0x15] sm:$0xff]  ;;  %v4717_v32 = vld [vmem:[%s4594_s29 + $0x1e] sm:$0xff] }
  0x34   : > { %683 = vrot.lane.b32.xlu0 %v563_v5, %s7231_s20  ;;  %v4679_v25 = vld [vmem:[%s4594_s29 + $0x10] sm:$0xff]  ;;  %v4714_v31 = vld [vmem:[%s4594_s29 + $0x23] sm:$0xff]  ;;  %v4747_v37 = vld [vmem:[%s4594_s29 + $0x18] sm:$0xff] }
  0x35   : > { %v4685_v26 = vld [vmem:[%s4594_s29 + $0x29] sm:$0xff]  ;;  %v4740_v36 = vld [vmem:[%s4594_s29 + $0x1f] sm:$0xff]  ;;  %v4753_v38 = vld [vmem:[%s4594_s29 + $0x31] sm:$0xff] }
  0x36   : > { %v4707_v30 = vld [vmem:[%s4594_s29 + $0x2a] sm:$0xff]  ;;  %v4770_v41 = vld [vmem:[%s4594_s29 + $0x20] sm:$0xff]  ;;  %v4783_v43 = vld [vmem:[%s4594_s29 + $0x32] sm:$0xff] }
  0x37   : > { %623 = vrot.lane.b32.xlu1 %v549_v6, %s7219_s23  ;;  %v4730_v34 = vld [vmem:[%s4594_s29 + $0x2b] sm:$0xff]  ;;  %7300 = vst [vmem:[#allocation16_spill] sm:$0xff] %v4770_v41  ;;  %v4780_v42 = vld [vmem:[%s4594_s29 + $0x39] sm:$0xff] }
  0x38   : > { %715 = vrot.lane.b32.xlu0 %v571_v7, %s7227_s26  ;;  %v4737_v35 = vld [vmem:[%s4594_s29 + $0x24] sm:$0xff]  ;;  %v4760_v39 = vld [vmem:[%s4594_s29 + $0x2c] sm:$0xff]  ;;  %v4810_v48 = vld [vmem:[%s4594_s29 + $0x3a] sm:$0xff] }
  0x39   : > { %v4763_v40 = vld [vmem:[%s4594_s29 + $0x25] sm:$0xff]  ;;  %v4790_v44 = vld [vmem:[%s4594_s29 + $0x2d] sm:$0xff]  ;;  %v4962_v54 = vld [vmem:[%s4594_s29 + $0x3d] sm:$0xff] }
  0x3a   : > { %v4793_v45 = vld [vmem:[%s4594_s29 + $0x26] sm:$0xff]  ;;  %v4813_v49 = vld [vmem:[%s4594_s29 + $0x33] sm:$0xff] }
  0x3b   : > { %747 = vrot.lane.b32.xlu1 %v579_v8, %s7233_s28  ;;  %v4830_v55 = vld [vmem:[%s4594_s29 + $0x2e] sm:$0xff]  ;;  %v1804_v0 = vld [vmem:[%s7202_s2 + $0x20] sm:$0xff]  ;;  %v4965_v59 = vld [vmem:[%s4594_s29 + $0x36] sm:$0xff] }
  0x3c   : > { %717 = vrot.lane.b32.xlu0 %v4620_v9, %s7227_s26  ;;  %v4833_v56 = vld [vmem:[%s4594_s29 + $0x27] sm:$0xff]  ;;  %v1806_v5 = vld [vmem:[%s7202_s2 + $0x30] sm:$0xff]  ;;  %v4878_v8 = vld [vmem:[%s4594_s29 + $0x3b] sm:$0xff] }
  0x3d   : > { %v1805_v1 = vld [vmem:[%s7202_s2 + $0x28] sm:$0xff] }
  0x3f   : > { %655 = vrot.lane.b32.xlu1 %v557_v10, %s7221_s30 }
  0x40   : > { %625 = vrot.lane.b32.xlu0 %v4627_v11, %s7219_s23  ;;  %s7225_s23 = smov 28  }
  0x43   : > { %779 = vrot.lane.b32.xlu1 %v587_v12, %s7223_s19  ;;  %v4892_v12 = vld [vmem:[%s4594_s29 + $0x2f] sm:$0xff] }
  0x44   : > { %749 = vrot.lane.b32.xlu0 %v4634_v13, %s7233_s28 }
  0x47   : > { %687 = vrot.lane.b32.xlu1 %v565_v14, %s7231_s20 }
  0x48   : > { %657 = vrot.lane.b32.xlu0 %v4641_v15, %s7221_s30  ;;  %s7229_s30 = smov 32  }
  0x4b   : > { %811 = vrot.lane.b32.xlu1 %v595_v16, %s7225_s23 }
  0x4c   : > { %781 = vrot.lane.b32.xlu0 %v4648_v17, %s7223_s19  ;;  %s7292_s19 = smov 4  }
  0x4f   : > { %719 = vrot.lane.b32.xlu1 %v573_v18, %s7227_s26 }
  0x50   : > { %689 = vrot.lane.b32.xlu0 %v4655_v19, %s7231_s20  ;;  %s7240_s20 = smov 40  }
  0x53   : > { %843 = vrot.lane.b32.xlu1 %v4664_v21, %s7229_s30 }
  0x54   : > { %813 = vrot.lane.b32.xlu0 %v4661_v20, %s7225_s23  ;;  %s7235_s23 = smov 36  }
  0x57   : > { %721 = vrot.lane.b32.xlu1 %v4672_v23, %s7227_s26  ;;  %s7293_s26 = smov 8  }
  0x58   : > { %627 = vrot.lane.b32.xlu0 %v551_v22, %s7292_s19 }
  0x5b   : > { %845 = vrot.lane.b32.xlu1 %v4679_v25, %s7229_s30  ;;  %s7294_s30 = smov 24  }
  0x5c   : > { %751 = vrot.lane.b32.xlu0 %v581_v24, %s7233_s28 }
  0x5f   : > { %629 = vrot.lane.b32.xlu1 %v4685_v26, %s7292_s19 }
  0x60   : > { %868 = vrot.lane.b32.xlu0 %v548_v3, %s7235_s23 }
  0x63   : > { %753 = vrot.lane.b32.xlu1 %v4694_v28, %s7233_s28  ;;  %s7295_s28 = smov 12  }
  0x64   : > { %659 = vrot.lane.b32.xlu0 %v4691_v27, %s7293_s26 }
  0x67   : > { %870 = vrot.lane.b32.xlu1 %v549_v6, %s7235_s23  ;;  %s7296_s23 = smov 28   ;;  %v1807_v6 = vld [vmem:[%s7202_s2 + $0x38] sm:$0xff] }
  0x68   : > { %783 = vrot.lane.b32.xlu0 %v4701_v29, %s7294_s30  ;;  %v3846_v7 = vpack.c.bf16 %v1807_v6, %v1806_v5 }
  0x6b   : > { %661 = vrot.lane.b32.xlu1 %v4707_v30, %s7293_s26 }
  0x6c   : > { %893 = vrot.lane.b32.xlu0 %v4601_v2, %s7240_s20  ;;  %v3842_v2 = vpack.c.bf16 %v1805_v1, %v1804_v0 }
  0x6e   : > { %3843 = vmatprep.subr.bf16.mxu0 %v3842_v2 }
  0x6f   : > { %785 = vrot.lane.b32.xlu1 %v4717_v32, %s7294_s30  ;;  %3845 = vmatpush3.bf16.msra.mxu0 %v3842_v2 }
  0x70   : > { %691 = vrot.lane.b32.xlu0 %v4714_v31, %s7295_s28  ;;  %3847 = vmatprep.subr.bf16.mxu0 %v3846_v7 }
  0x73   : > { %895 = vrot.lane.b32.xlu1 %v557_v10, %s7240_s20  ;;  %s7298_s20 = smov 32   ;;  %3849 = vmatpush3.bf16.msra.mxu0 %v3846_v7 }
  0x74   : > { %815 = vrot.lane.b32.xlu0 %v4724_v33, %s7296_s23 }
  0x77   : > { %693 = vrot.lane.b32.xlu1 %v4730_v34, %s7295_s28 }
  0x78   : > { %918 = vrot.lane.b32.xlu0 %v4608_v4, %s7243_s27 }
  0x7b   : > { %817 = vrot.lane.b32.xlu1 %v4740_v36, %s7296_s23 }
  0x7c   : > { %723 = vrot.lane.b32.xlu0 %v4737_v35, %s7297_s17 }
  0x7f   : > { %920 = vrot.lane.b32.xlu1 %v565_v14, %s7243_s27  ;;  %s7299_s27 = smov 20  }
  0x80   : > { %847 = vrot.lane.b32.xlu0 %v4747_v37, %s7298_s20 }
  0x83   : > { %631 = vrot.lane.b32.xlu1 %v4753_v38, %s7292_s19 }
  0x84   : > { %943 = vrot.lane.b32.xlu0 %v4620_v9, %s7245_s21  ;;  %s7301_s21 = smov 36   ;;  %v4881_v9 = vld [vmem:[%s4594_s29 + $0x34] sm:$0xff] }
  0x87   : > { %755 = vrot.lane.b32.xlu1 %v4763_v40, %s7299_s27 }
  0x88   : > { %725 = vrot.lane.b32.xlu0 %v4760_v39, %s7297_s17 }
  0x8b   : > { %872 = vrot.lane.b32.xlu1 %v4627_v11, %s7301_s21 }
  0x8c   : > { %849 = vrot.lane.b32.xlu0 %v4770_v41, %s7298_s20 }
  0x8f   : > { %968 = vrot.lane.b32.xlu1 %v4634_v13, %s7249_s16  ;;  %s7303_s16 = smov 40   ;;  %v4895_v13 = vld [vmem:[%s4594_s29 + $0x28] sm:$0xff] }
  0x90   : > { %945 = vrot.lane.b32.xlu0 %v573_v18, %s7302_s24  ;;  %7307 = vst [vmem:[#allocation17_spill] sm:$0xff] %v4895_v13  ;;  %v4914_v18 = vld [vmem:[%s4594_s29 + $0x3c] sm:$0xff] }
  0x93   : > { %663 = vrot.lane.b32.xlu1 %v4783_v43, %s7293_s26 }
  0x94   : > { %633 = vrot.lane.b32.xlu0 %v4780_v42, %s7292_s19 }
  0x97   : > { %787 = vrot.lane.b32.xlu1 %v4793_v45, %s7294_s30 }
  0x98   : > { %757 = vrot.lane.b32.xlu0 %v4790_v44, %s7299_s27 }
  0x9b   : > { %897 = vrot.lane.b32.xlu1 %v4641_v15, %s7303_s16 }
  0x9c   : > { %874 = vrot.lane.b32.xlu0 %v551_v22, %s7301_s21  ;;  %v4925_v22 = vld [vmem:[%s4594_s29 + $0x35] sm:$0xff] }
  0x9d   : > { %v4802_v46 = vpop.permute.xlu1 %651 }
  0x9e   : > { %v4804_v47 = vpop.permute.xlu0 %619 }
  0x9f   : > { %993 = vrot.lane.b32.xlu1 %v4648_v17, %s7255_s0  ;;  %s7309_s0 = smul.u32 80, %s4586_s18  ;;  %s7414_s18 = sld [smem:[#allocation57_spill]] }
  0xa0   : > { %970 = vrot.lane.b32.xlu0 %v581_v24, %s7304_s15  ;;  %v4928_v24 = vld [vmem:[%s4594_s29 + $0x30] sm:$0xff] }
  0xa1   : > { %v4821_v52 = vpop.permute.xlu1 %653  ;;  %7308 = vst [vmem:[#allocation18_spill] sm:$0xff] %v4928_v24  ;;  %s4947_s22 = scalar_lea.vmem %s7201_s1, %s7309_s0  ;;  %s4444_s0 = smov 64  }
  0xa2   : > { %v4823_v53 = vpop.permute.xlu0 %621  ;;  %v4992_v1 = vld [vmem:[%s4947_s22 + $0x9] sm:$0xff] }
  0xa3   : > { %695 = vrot.lane.b32.xlu1 %v4813_v49, %s7295_s28  ;;  %v1193_v2 = vld [vmem:[%s4947_s22 + $0x2] sm:$0xff] }
  0xa4   : > { %665 = vrot.lane.b32.xlu0 %v4810_v48, %s7293_s26 }
  0xa5   : > { %v4835_v57 = vpop.permute.xlu1 %685 }
  0xa6   : > { %v4837_v58 = vpop.permute.xlu0 %683 }
  0xa7   : > { %819 = vrot.lane.b32.xlu1 %v4833_v56, %s7296_s23 }
  0xa8   : > { %789 = vrot.lane.b32.xlu0 %v4830_v55, %s7294_s30 }
  0xa9   : > { %v4849_v62 = vpop.permute.xlu1 %623 }
  0xaa   : > { %v4851_v63 = vpop.permute.xlu0 %715 }
  0xab   : > { %922 = vrot.lane.b32.xlu1 %v4655_v19, %s7305_s25 }
  0xac   : > { %899 = vrot.lane.b32.xlu0 %v4691_v27, %s7303_s16 }
  0xad   : > { %v4863_v3 = vpop.permute.xlu1 %747 }
  0xae   : > { %v4865_v4 = vpop.permute.xlu0 %717 }
  0xaf   : > { %1018 = vrot.lane.b32.xlu1 %v4661_v20, %s4442_s14 }
  0xb0   : > { %995 = vrot.lane.b32.xlu0 %v4701_v29, %s7306_s11 }
  0xb1   : > { %v4883_v10 = vpop.permute.xlu1 %655 }
  0xb2   : > { %v4885_v11 = vpop.permute.xlu0 %625 }
  0xb3   : > { %727 = vrot.lane.b32.xlu1 %v4881_v9, %s7297_s17 }
  0xb4   : > { %697 = vrot.lane.b32.xlu0 %v4878_v8, %s7295_s28 }
  0xb5   : > { %v4897_v14 = vpop.permute.xlu1 %779 }
  0xb6   : > { %v4899_v15 = vpop.permute.xlu0 %749 }
  0xb7   : > { %851 = vrot.lane.b32.xlu1 %v4895_v13, %s7298_s20  ;;  %v1201_v13 = vld [vmem:[%s4947_s22 + $0x3] sm:$0xff] }
  0xb8   : > { %821 = vrot.lane.b32.xlu0 %v4892_v12, %s7296_s23 }
  0xb9   : > { %v4905_v16 = vpop.permute.xlu1 %687 }
  0xba   : > { %v4907_v17 = vpop.permute.xlu0 %657 }
  0xbb   : > { %947 = vrot.lane.b32.xlu1 %v4672_v23, %s7302_s24 }
  0xbc   : > { %924 = vrot.lane.b32.xlu0 %v4714_v31, %s7305_s25 }
  0xbd   : > { %v4916_v19 = vpop.permute.xlu1 %811 }
  0xbe   : > { %v4918_v20 = vpop.permute.xlu0 %781 }
  0xbf   : > { %729 = vrot.lane.b32.xlu1 %v4914_v18, %s7297_s17 }
  0xc0   : > { %1020 = vrot.lane.b32.xlu0 %v4724_v33, %s4442_s14  ;;  %v1185_v33 = vld [vmem:[%s4947_s22 + $0x1] sm:$0xff] }
  0xc1   : > { %v4930_v27 = vpop.permute.xlu1 %719 }
  0xc2   : > { %v4932_v23 = vpop.permute.xlu0 %689 }
  0xc3   : > { %853 = vrot.lane.b32.xlu1 %v4928_v24, %s7298_s20 }
  0xc4   : > { %759 = vrot.lane.b32.xlu0 %v4925_v22, %s7299_s27 }
  0xc5   : > { %v4940_v31 = vpop.permute.xlu1 %843 }
  0xc6   : > { %v4938_v29 = vpop.permute.xlu0 %813 }
  0xc7   : > { %949 = vrot.lane.b32.xlu1 %v4737_v35, %s7302_s24 }
  0xc8   : > { %876 = vrot.lane.b32.xlu0 %v4685_v26, %s7301_s21 }
  0xc9   : > { %v4956_v51 = vpop.permute.xlu1 %721 }
  0xca   : > { %v4954_v50 = vpop.permute.xlu0 %627 }
  0xcb   : > { %7310 = vst [vmem:[#allocation19_spill] sm:$0xff] %v4954_v50  ;;  %1257 = vrot.lane.b32.xlu1 %v1185_v33, %s7292_s19 }
  0xcc   : > { %972 = vrot.lane.b32.xlu0 %v4694_v28, %s7304_s15 }
  0xcd   : > { %v4969_v60 = vpop.permute.xlu1 %845 }
  0xce   : > { %v4967_v26 = vpop.permute.xlu0 %751 }
  0xcf   : > { %791 = vrot.lane.b32.xlu1 %v4965_v59, %s7294_s30 }
  0xd0   : > { %761 = vrot.lane.b32.xlu0 %v4962_v54, %s7299_s27 }
  0xd1   : > { %v4977_v35 = vpop.permute.xlu1 %629 }
  0xd2   : > { %v4975_v28 = vpop.permute.xlu0 %868  ;;  %7311 = vst [vmem:[#allocation20_spill] sm:$0xff] %v4977_v35 }
  0xd3   : > { %901 = vrot.lane.b32.xlu1 %v4707_v30, %s7303_s16  ;;  %v5003_v30 = vld [vmem:[%s4594_s29 + $0x3e] sm:$0xff] }
  0xd4   : > { %878 = vrot.lane.b32.xlu0 %v4753_v38, %s7301_s21  ;;  %v5006_v38 = vld [vmem:[%s4594_s29 + $0x37] sm:$0xff] }
  0xd5   : > { %v4985_v0 = vpop.permute.xlu1 %753 }
  0xd6   : > { %v4983_v61 = vpop.permute.xlu0 %659 }
  0xd7   : > { %7312 = vst [vmem:[#allocation21_spill] sm:$0xff] %v4983_v61  ;;  %997 = vrot.lane.b32.xlu1 %v4717_v32, %s7306_s11 }
  0xd8   : > { %974 = vrot.lane.b32.xlu0 %v4763_v40, %s7304_s15 }
  0xd9   : > { %v4997_v6 = vpop.permute.xlu1 %870 }
  0xda   : > { %v4995_v5 = vpop.permute.xlu0 %783 }
  0xdb   : > { %1289 = vrot.lane.b32.xlu1 %v1193_v2, %s7293_s26 }
  0xdc   : > { %1259 = vrot.lane.b32.xlu0 %v4992_v1, %s7292_s19 }
  0xdd   : > { %v5010_v32 = vpop.permute.xlu1 %661 }
  0xde   : > { %v5008_v40 = vpop.permute.xlu0 %893  ;;  %7313 = vst [vmem:[#allocation22_spill] sm:$0xff] %v5010_v32  ;;  %v5033_v32 = vld [vmem:[%s4947_s22 + $0xa] sm:$0xff] }
  0xdf   : > { %823 = vrot.lane.b32.xlu1 %v5006_v38, %s7296_s23 }
  0xe0   : > { %793 = vrot.lane.b32.xlu0 %v5003_v30, %s7294_s30 }
  0xe1   : > { %v5018_v33 = vpop.permute.xlu1 %785 }
  0xe2   : > { %v5016_v7 = vpop.permute.xlu0 %691  ;;  %7315 = vst [vmem:[#allocation24_spill] sm:$0xff] %v5018_v33 }
  0xe3   : > { %7314 = vst [vmem:[#allocation23_spill] sm:$0xff] %v5016_v7  ;;  %926 = vrot.lane.b32.xlu1 %v4730_v34, %s7305_s25  ;;  %v5044_v34 = vld [vmem:[%s4594_s29 + $0x3f] sm:$0xff] }
  0xe4   : > { %903 = vrot.lane.b32.xlu0 %v4783_v43, %s7303_s16 }
  0xe5   : > { %v5026_v24 = vpop.permute.xlu1 %895 }
  0xe6   : > { %v5024_v2 = vpop.permute.xlu0 %815 }
  0xe7   : > { %1022 = vrot.lane.b32.xlu1 %v4740_v36, %s4442_s14 }
  0xe8   : > { %999 = vrot.lane.b32.xlu0 %v4793_v45, %s7306_s11  ;;  %v5047_v45 = vld [vmem:[%s4594_s29 + $0x38] sm:$0xff] }
  0xe9   : > { %v5038_v43 = vpop.permute.xlu1 %693  ;;  %7317 = vst [vmem:[#allocation26_spill] sm:$0xff] %v5047_v45 }
  0xea   : > { %v5036_v35 = vpop.permute.xlu0 %918  ;;  %7316 = vst [vmem:[#allocation25_spill] sm:$0xff] %v5038_v43 }
  0xeb   : > { %1321 = vrot.lane.b32.xlu1 %v1201_v13, %s7295_s28  ;;  %v5066_v13 = vld [vmem:[%s4947_s22 + $0xb] sm:$0xff] }
  0xec   : > { %1291 = vrot.lane.b32.xlu0 %v5033_v32, %s7293_s26  ;;  %7320 = vst [vmem:[#allocation29_spill] sm:$0xff] %v5066_v13 }
  0xed   : > { %v5051_v7 = vpop.permute.xlu1 %817 }
  0xee   : > { %v5049_v36 = vpop.permute.xlu0 %723  ;;  %7319 = vst [vmem:[#allocation28_spill] sm:$0xff] %v5051_v7 }
  0xef   : > { %7318 = vst [vmem:[#allocation27_spill] sm:$0xff] %v5049_v36  ;;  %855 = vrot.lane.b32.xlu1 %v5047_v45, %s7298_s20  ;;  %v1209_v45 = vld [vmem:[%s4947_s22 + $0x4] sm:$0xff] }
  0xf0   : > { %825 = vrot.lane.b32.xlu0 %v5044_v34, %s7296_s23 }
  0xf1   : > { %v5059_v61 = vpop.permute.xlu1 %920 }
  0xf2   : > { %v5057_v43 = vpop.permute.xlu0 %847 }
  0xf3   : > { %951 = vrot.lane.b32.xlu1 %v4760_v39, %s7302_s24 }
  0xf4   : > { %928 = vrot.lane.b32.xlu0 %v4813_v49, %s7305_s25  ;;  %v603_v49 = vld [vmem:[%s4594_s29 + $0x40] sm:$0xff] }
  0xf5   : > { %v5070_v41 = vpop.permute.xlu1 %631 }
  0xf6   : > { %v5068_v36 = vpop.permute.xlu0 %943  ;;  %7321 = vst [vmem:[#allocation30_spill] sm:$0xff] %v5070_v41 }
  0xf7   : > { %1323 = vrot.lane.b32.xlu1 %v5066_v13, %s7295_s28  ;;  %v604_v13 = vld [vmem:[%s4594_s29 + $0x41] sm:$0xff] }
  0xf8   : > { %1024 = vrot.lane.b32.xlu0 %v4833_v56, %s4442_s14  ;;  %v5093_v56 = vld [vmem:[%s4947_s22 + $0x11] sm:$0xff] }
  0xf9   : > { %v5080_v39 = vpop.permute.xlu1 %755 }
  0xfa   : > { %v5078_v50 = vpop.permute.xlu0 %725  ;;  %7323 = vst [vmem:[#allocation32_spill] sm:$0xff] %v5080_v39 }
  0xfb   : > { %7322 = vst [vmem:[#allocation31_spill] sm:$0xff] %v5078_v50  ;;  %857 = vrot.lane.b32.xlu1 %v603_v49, %s7298_s20  ;;  %v1217_v49 = vld [vmem:[%s4947_s22 + $0x5] sm:$0xff] }
  0xfc   : > { %1353 = vrot.lane.b32.xlu0 %v1209_v45, %s7297_s17  ;;  %v5104_v45 = vld [vmem:[%s4947_s22 + $0xc] sm:$0xff] }
  0xfd   : > { %v5086_v7 = vpop.permute.xlu1 %872  ;;  %7325 = vst [vmem:[#allocation34_spill] sm:$0xff] %v5104_v45 }
  0xfe   : > { %v5084_v41 = vpop.permute.xlu0 %849 }
  0xff   : > { %7324 = vst [vmem:[#allocation33_spill] sm:$0xff] %v5084_v41  ;;  %953 = vrot.lane.b32.xlu1 %v4881_v9, %s7302_s24 }
 0x100   : > { %880 = vrot.lane.b32.xlu0 %v4780_v42, %s7301_s21 }
 0x101   : > { %v5097_v39 = vpop.permute.xlu1 %968 }
 0x102   : > { %v5095_v50 = vpop.permute.xlu0 %945 }
 0x103   : > { %1261 = vrot.lane.b32.xlu1 %v5093_v56, %s7292_s19 }
 0x104   : > { %976 = vrot.lane.b32.xlu0 %v4790_v44, %s7304_s15 }
 0x105   : > { %v5109_v9 = vpop.permute.xlu1 %663 }
 0x106   : > { %v5107_v42 = vpop.permute.xlu0 %633  ;;  %7327 = vst [vmem:[#allocation36_spill] sm:$0xff] %v5109_v9  ;;  %v539_v9 = vld [vmem:[%s4594_s29] sm:$0xff] }
 0x107   : > { %7326 = vst [vmem:[#allocation35_spill] sm:$0xff] %v5107_v42  ;;  %1385 = vrot.lane.b32.xlu1 %v1217_v49, %s7299_s27  ;;  %v5132_v49 = vld [vmem:[%s4947_s22 + $0x19] sm:$0xff] }
 0x108   : > { %1355 = vrot.lane.b32.xlu0 %v5104_v45, %s7297_s17  ;;  %7331 = vst [vmem:[#allocation40_spill] sm:$0xff] %v5132_v49 }
 0x109   : > { %v5117_v41 = vpop.permute.xlu1 %787 }
 0x10a   : > { %v5115_v44 = vpop.permute.xlu0 %757  ;;  %7329 = vst [vmem:[#allocation38_spill] sm:$0xff] %v5117_v41  ;;  %v1043_v41 = vsel %vm1042_vm0, %v539_v9, %v4804_v47 }
 0x10b   : > { %7328 = vst [vmem:[#allocation37_spill] sm:$0xff] %v5115_v44  ;;  %905 = vrot.lane.b32.xlu1 %v4810_v48, %s7303_s16  ;;  %v1052_v45 = vsel %vm1051_vm1, %v1043_v41, %v4802_v46  ;;  %v605_v46 = vld [vmem:[%s4594_s29 + $0x42] sm:$0xff] }
 0x10c   : > { %882 = vrot.lane.b32.xlu0 %v604_v13, %s7301_s21  ;;  %v5135_v13 = vld [vmem:[%s4947_s22 + $0x12] sm:$0xff]  ;;  %v1061_v9 = vsel %vm1060_vm2, %v1052_v45, %v4837_v58 }
 0x10d   : > { %v5124_v42 = vpop.permute.xlu1 %897 }
 0x10e   : > { %v5122_v33 = vpop.permute.xlu0 %874 }
 0x10f   : > { %7330 = vst [vmem:[#allocation39_spill] sm:$0xff] %v5122_v33  ;;  %1001 = vrot.lane.b32.xlu1 %v4830_v55, %s7306_s11  ;;  %v5146_v55 = vld [vmem:[%s4947_s22 + $0xd] sm:$0xff] }
 0x110   : > { %978 = vrot.lane.b32.xlu0 %v4925_v22, %s7304_s15  ;;  %v1225_v22 = vld [vmem:[%s4947_s22 + $0x6] sm:$0xff] }
 0x111   : > { %v994_v48 = vpop.permute.xlu1 %993 }
 0x112   : > { %v5137_v44 = vpop.permute.xlu0 %970 }
 0x113   : > { %1293 = vrot.lane.b32.xlu1 %v5135_v13, %s7293_s26 }
 0x114   : > { %1263 = vrot.lane.b32.xlu0 %v5132_v49, %s7292_s19  ;;  %v1070_v49 = vsel %vm1069_vm3, %v1061_v9, %v4851_v63 }
 0x115   : > { %v5153_v47 = vpop.permute.xlu1 %695  ;;  %v1079_v41 = vsel %vm1078_vm4, %v1070_v49, %v4863_v3 }
 0x116   : > { %v5151_v33 = vpop.permute.xlu0 %665 }
 0x117   : > { %7332 = vst [vmem:[#allocation41_spill] sm:$0xff] %v5151_v33  ;;  %1417 = vrot.lane.b32.xlu1 %v1225_v22, %s7294_s30  ;;  %v1088_v33 = vsel %vm1087_vm5, %v1079_v41, %v4897_v14 }
 0x118   : > { %1387 = vrot.lane.b32.xlu0 %v5146_v55, %s7299_s27  ;;  %v1097_v63 = vsel %vm1096_vm6, %v1088_v33, %v4916_v19 }
 0x119   : > { %v5169_v45 = vpop.permute.xlu1 %819  ;;  %v1106_v22 = vsel %vm1105_vm7, %v1097_v63, %v4940_v31 }
 0x11a   : > { %v5167_v58 = vpop.permute.xlu0 %789  ;;  %v1115_v3 = vsel %vm1114_vm8, %v1106_v22, %v4975_v28  ;;  %v5197_v28 = vld [vmem:[%s4947_s22 + $0x1a] sm:$0xff] }
 0x11b   : > { %930 = vrot.lane.b32.xlu1 %v4878_v8, %s7305_s25  ;;  %v1124_v14 = vsel %vm1123_vm9, %v1115_v3, %v5008_v40  ;;  %v5200_v40 = vld [vmem:[%s4947_s22 + $0x13] sm:$0xff] }
 0x11c   : > { %907 = vrot.lane.b32.xlu0 %v605_v46, %s7303_s16  ;;  %v1133_v31 = vsel %vm1132_vm10, %v1124_v14, %v5036_v35 }
 0x11d   : > { %v5184_v33 = vpop.permute.xlu1 %922  ;;  %v1142_v49 = vsel %vm1141_vm11, %v1133_v31, %v5068_v36 }
 0x11e   : > { %v5182_v19 = vpop.permute.xlu0 %899  ;;  %v1151_v8 = vsel %vm1150_vm12, %v1142_v49, %v5097_v39  ;;  %v5213_v39 = vld [vmem:[%s4947_s22 + $0xe] sm:$0xff] }
 0x11f   : > { %1026 = vrot.lane.b32.xlu1 %v4892_v12, %s4442_s14  ;;  %v1160_v35 = vsel %vm1159_vm13, %v1151_v8, %v994_v48  ;;  %v1233_v48 = vld [vmem:[%s4947_s22 + $0x7] sm:$0xff] }
 0x120   : > { %1003 = vrot.lane.b32.xlu0 %v4965_v59, %s7306_s11  ;;  %v1044_v59 = vsel %vm1042_vm0, %v4664_v21, %v4823_v53 }
 0x121   : > { %v1019_v36 = vpop.permute.xlu1 %1018  ;;  %v1053_v41 = vsel %vm1051_vm1, %v1044_v59, %v4821_v52  ;;  %v606_v52 = vld [vmem:[%s4594_s29 + $0x43] sm:$0xff] }
 0x122   : > { %v996_v9 = vpop.permute.xlu0 %995  ;;  %v1169_v12 = vsel %vm1168_vm14, %v1160_v35, %v1019_v36  ;;  %v1062_v53 = vsel %vm1060_vm2, %v1053_v41, %v4835_v57  ;;  %v5270_v35 = vld [vmem:[%s4947_s22 + $0xf] sm:$0xff] }
 0x123   : > { %1325 = vrot.lane.b32.xlu1 %v5200_v40, %s7295_s28  ;;  %3791 = vmatprep.mubr.msk.f32.mxu0 %vm1815_vm15, %v1169_v12  ;;  %v1071_v63 = vsel %vm1069_vm3, %v1062_v53, %v4865_v4 }
 0x124   : > { %1295 = vrot.lane.b32.xlu0 %v5197_v28, %s7293_s26  ;;  %v1080_v22 = vsel %vm1078_vm4, %v1071_v63, %v4899_v15  ;;  %v5304_v63 = vld [vmem:[%s4947_s22 + $0x1c] sm:$0xff] }
 0x125   : > { %v5220_v21 = vpop.permute.xlu1 %727  ;;  %v1089_v3 = vsel %vm1087_vm5, %v1080_v22, %v4918_v20  ;;  %v5248_v20 = vld [vmem:[%s4947_s22 + $0x1b] sm:$0xff] }
 0x126   : > { %v5218_v46 = vpop.permute.xlu0 %697  ;;  %v1098_v57 = vsel %vm1096_vm6, %v1089_v3, %v4938_v29  ;;  %v5307_v22 = vld [vmem:[%s4947_s22 + $0x15] sm:$0xff] }
 0x127   : > { %1449 = vrot.lane.b32.xlu1 %v1233_v48, %s7296_s23  ;;  %v1107_v4 = vsel %vm1105_vm7, %v1098_v57, %v4969_v60  ;;  %v5293_v48 = vld [vmem:[%s4947_s22 + $0x21] sm:$0xff]  ;;  %v5316_v57 = vld [vmem:[%s4947_s22 + $0x10] sm:$0xff] }
 0x128   : > { %1419 = vrot.lane.b32.xlu0 %v5213_v39, %s7294_s30  ;;  %v1116_v15 = vsel %vm1114_vm8, %v1107_v4, %v4997_v6  ;;  %v5267_v6 = vld [vmem:[%s4947_s22 + $0x14] sm:$0xff]  ;;  %7335 = vst [vmem:[#allocation44_spill] sm:$0xff] %v5316_v57 }
 0x129   : > { %v5236_v31 = vpop.permute.xlu1 %851  ;;  %v1125_v49 = vsel %vm1123_vm9, %v1116_v15, %v5026_v24  ;;  %v608_v15 = vld [vmem:[%s4594_s29 + $0x45] sm:$0xff] }
 0x12a   : > { %v5234_v14 = vpop.permute.xlu0 %821  ;;  %v1134_v60 = vsel %vm1132_vm10, %v1125_v49, %v5059_v61 }
 0x12b   : > { %955 = vrot.lane.b32.xlu1 %v4914_v18, %s7302_s24  ;;  %v1143_v18 = vsel %vm1141_vm11, %v1134_v60, %v5095_v50 }
 0x12c   : > { %932 = vrot.lane.b32.xlu0 %v606_v52, %s7305_s25  ;;  %v1152_v24 = vsel %vm1150_vm12, %v1143_v18, %v5137_v44  ;;  %v607_v44 = vld [vmem:[%s4594_s29 + $0x44] sm:$0xff] }
 0x12d   : > { %v5254_v29 = vpop.permute.xlu1 %947  ;;  %v1161_v36 = vsel %vm1159_vm13, %v1152_v24, %v996_v9  ;;  %v5335_v18 = vld [vmem:[%s4947_s22 + $0x29] sm:$0xff] }
 0x12e   : > { %v5252_v8 = vpop.permute.xlu0 %924  ;;  %v5338_v24 = vld [vmem:[%s4947_s22 + $0x22] sm:$0xff] }
 0x12f   : > { %1327 = vrot.lane.b32.xlu1 %v5248_v20, %s7295_s28 }
 0x130   : > { %1028 = vrot.lane.b32.xlu0 %v5006_v38, %s4442_s14  ;;  %v5282_v38 = vld [vmem:[%s4947_s22 + $0x8] sm:$0xff] }
 0x131   : > { %v5273_v59 = vpop.permute.xlu1 %729  ;;  %7333 = vst [vmem:[#allocation42_spill] sm:$0xff] %v5282_v38 }
 0x132   : > { %v1021_v61 = vpop.permute.xlu0 %1020 }
 0x133   : > { %v1170_v50 = vsel %vm1168_vm14, %v1161_v36, %v1021_v61  ;;  %1451 = vrot.lane.b32.xlu1 %v5270_v35, %s7296_s23 }
 0x134   : > { %1357 = vrot.lane.b32.xlu0 %v5267_v6, %s7297_s17  ;;  %3792 = vmatmul.mubr.msk.f32.vlgmr.msra.gmra.mrb[0].mxu0 %vm1815_vm15, %v1170_v50  ;;  %v5350_v50 = vld [vmem:[%s4947_s22 + $0x1d] sm:$0xff] }
 0x135   : > { %v5287_v12 = vpop.permute.xlu1 %853 }
 0x136   : > { %v5285_v9 = vpop.permute.xlu0 %759 }
 0x137   : > { %957 = vrot.lane.b32.xlu1 %v607_v44, %s7302_s24 }
 0x138   : > { %1481 = vrot.lane.b32.xlu0 %v5282_v38, %s7298_s20 }
 0x139   : > { %v5297_v53 = vpop.permute.xlu1 %949 }
 0x13a   : > { %v5295_v41 = vpop.permute.xlu0 %876 }
 0x13b   : > { %1265 = vrot.lane.b32.xlu1 %v5293_v48, %s7292_s19 }
 0x13c   : > { %980 = vrot.lane.b32.xlu0 %v4962_v54, %s7304_s15 }
 0x13d   : > { %v5309_v3 = vpop.permute.xlu1 %1257 }
 0x13e   : > { %v973_v52 = vpop.permute.xlu0 %972  ;;  %7334 = vst [vmem:[#allocation43_spill] sm:$0xff] %v5309_v3 }
 0x13f   : > { %1389 = vrot.lane.b32.xlu1 %v5307_v22, %s7299_s27 }
 0x140   : > { %1359 = vrot.lane.b32.xlu0 %v5304_v63, %s7297_s17 }
 0x141   : > { %v5320_v4 = vpop.permute.xlu1 %791 }
 0x142   : > { %v5318_v54 = vpop.permute.xlu0 %761 }
 0x143   : > { %1506 = vrot.lane.b32.xlu1 %v4992_v1, %s7301_s21  ;;  %v1045_v1 = vsel %vm1042_vm0, %v4679_v25, %v4849_v62 }
 0x144   : > { %1483 = vrot.lane.b32.xlu0 %v5316_v57, %s7298_s20  ;;  %v1054_v44 = vsel %vm1051_vm1, %v1045_v1, %v4883_v10 }
 0x145   : > { %v5329_v60 = vpop.permute.xlu1 %901  ;;  %v1063_v38 = vsel %vm1060_vm2, %v1054_v44, %v4905_v16 }
 0x146   : > { %v5327_v49 = vpop.permute.xlu0 %878  ;;  %v1072_v3 = vsel %vm1069_vm3, %v1063_v38, %v4930_v27 }
 0x147   : > { %1005 = vrot.lane.b32.xlu1 %v5003_v30, %s7306_s11  ;;  %v5353_v30 = vld [vmem:[%s4947_s22 + $0x16] sm:$0xff]  ;;  %v1081_v25 = vsel %vm1078_vm4, %v1072_v3, %v4967_v26 }
 0x148   : > { %982 = vrot.lane.b32.xlu0 %v608_v15, %s7304_s15  ;;  %v1090_v62 = vsel %vm1087_vm5, %v1081_v25, %v4995_v5  ;;  %v609_v5 = vld [vmem:[%s4594_s29 + $0x46] sm:$0xff] }
 0x149   : > { %v998_v61 = vpop.permute.xlu1 %997  ;;  %v1099_v16 = vsel %vm1096_vm6, %v1090_v62, %v5024_v2 }
 0x14a   : > { %v5340_v36 = vpop.permute.xlu0 %974  ;;  %v1108_v27 = vsel %vm1105_vm7, %v1099_v16, %v5057_v43 }
 0x14b   : > { %1297 = vrot.lane.b32.xlu1 %v5338_v24, %s7293_s26  ;;  %v1117_v26 = vsel %vm1114_vm8, %v1108_v27, %v5086_v7  ;;  %v5403_v7 = vld [vmem:[%s4947_s22 + $0x2a] sm:$0xff] }
 0x14c   : > { %1267 = vrot.lane.b32.xlu0 %v5335_v18, %s7292_s19  ;;  %v1126_v38 = vsel %vm1123_vm9, %v1117_v26, %v5124_v42 }
 0x14d   : > { %v5359_v57 = vpop.permute.xlu1 %1289  ;;  %v1135_v2 = vsel %vm1132_vm10, %v1126_v38, %v5184_v33 }
 0x14e   : > { %v5357_v15 = vpop.permute.xlu0 %1259  ;;  %7337 = vst [vmem:[#allocation46_spill] sm:$0xff] %v5359_v57  ;;  %v1144_v43 = vsel %vm1141_vm11, %v1135_v2, %v5254_v29  ;;  %v5419_v29 = vld [vmem:[%s4947_s22 + $0x1e] sm:$0xff] }
 0x14f   : > { %7336 = vst [vmem:[#allocation45_spill] sm:$0xff] %v5357_v15  ;;  %1421 = vrot.lane.b32.xlu1 %v5353_v30, %s7294_s30  ;;  %v7359_v15 = vld [vmem:[#allocation21_spill] sm:$0xff]  ;;  %v7361_v57 = vld [vmem:[#allocation23_spill] sm:$0xff] }
 0x150   : > { %1391 = vrot.lane.b32.xlu0 %v5350_v50, %s7299_s27 }
 0x151   : > { %v5375_v1 = vpop.permute.xlu1 %823 }
 0x152   : > { %v5373_v10 = vpop.permute.xlu0 %793 }
 0x153   : > { %1531 = vrot.lane.b32.xlu1 %v5033_v32, %s7303_s16  ;;  %v1153_v32 = vsel %vm1150_vm12, %v1144_v43, %v973_v52  ;;  %v5422_v52 = vld [vmem:[%s4947_s22 + $0x17] sm:$0xff]  ;;  %v7342_v43 = vld [vmem:[#allocation33_spill] sm:$0xff] }
 0x154   : > { %1508 = vrot.lane.b32.xlu0 %v5093_v56, %s7301_s21  ;;  %v5406_v56 = vld [vmem:[%s4947_s22 + $0x23] sm:$0xff]  ;;  %v1162_v42 = vsel %vm1159_vm13, %v1153_v32, %v998_v61 }
 0x155   : > { %v5392_v44 = vpop.permute.xlu1 %926 }
 0x156   : > { %v5390_v3 = vpop.permute.xlu0 %903 }
 0x157   : > { %1030 = vrot.lane.b32.xlu1 %v5044_v34, %s4442_s14  ;;  %v1046_v34 = vsel %vm1042_vm0, %v4747_v37, %v4885_v11 }
 0x158   : > { %1007 = vrot.lane.b32.xlu0 %v609_v5, %s7306_s11  ;;  %v1055_v61 = vsel %vm1051_vm1, %v1046_v34, %v4907_v17  ;;  %v7340_v17 = vld [vmem:[#allocation24_spill] sm:$0xff]  ;;  %v5458_v34 = vld [vmem:[%s4947_s22 + $0x2b] sm:$0xff] }
 0x159   : > { %v1023_v62 = vpop.permute.xlu1 %1022  ;;  %v1064_v26 = vsel %vm1060_vm2, %v1055_v61, %v4932_v23  ;;  %v7341_v23 = vld [vmem:[#allocation28_spill] sm:$0xff] }
 0x15a   : > { %v1000_v25 = vpop.permute.xlu0 %999  ;;  %v1171_v33 = vsel %vm1168_vm14, %v1162_v42, %v1023_v62  ;;  %v1073_v37 = vsel %vm1069_vm3, %v1064_v26, %v4956_v51  ;;  %v7344_v42 = vld [vmem:[#allocation39_spill] sm:$0xff] }
 0x15b   : > { %1329 = vrot.lane.b32.xlu1 %v5406_v56, %s7295_s28  ;;  %3794 = vmatprep.mubr.msk.f32.mxu0 %vm1815_vm15, %v1171_v33  ;;  %v1082_v11 = vsel %vm1078_vm4, %v1073_v37, %v4985_v0  ;;  %v7343_v0 = vld [vmem:[#allocation29_spill] sm:$0xff] }
 0x15c   : > { %1299 = vrot.lane.b32.xlu0 %v5403_v7, %s7293_s26  ;;  %v1091_v5 = vsel %vm1087_vm5, %v1082_v11, %v7340_v17  ;;  %v610_v33 = vld [vmem:[%s4594_s29 + $0x47] sm:$0xff]  ;;  %s7415_s29 = sld [smem:[#allocation58_spill]] }
 0x15d   : > { %v5428_v27 = vpop.permute.xlu1 %1321  ;;  %v1100_v51 = vsel %vm1096_vm6, %v1091_v5, %v7341_v23  ;;  %v5476_v17 = vld [vmem:[%s4947_s22 + $0x24] sm:$0xff] }
 0x15e   : > { %v5426_v16 = vpop.permute.xlu0 %1291  ;;  %7339 = vst [vmem:[#allocation48_spill] sm:$0xff] %v5428_v27  ;;  %v1109_v32 = vsel %vm1105_vm7, %v1100_v51, %v7342_v43  ;;  %v5479_v5 = vld [vmem:[%s4947_s22 + $0x1f] sm:$0xff] }
 0x15f   : > { %7338 = vst [vmem:[#allocation47_spill] sm:$0xff] %v5426_v16  ;;  %1453 = vrot.lane.b32.xlu1 %v5422_v52, %s7296_s23  ;;  %v1118_v62 = vsel %vm1114_vm8, %v1109_v32, %v7344_v42  ;;  %v5502_v32 = vld [vmem:[%s4947_s22 + $0x31] sm:$0xff] }
 0x160   : > { %1423 = vrot.lane.b32.xlu0 %v5419_v29, %s7294_s30  ;;  %v1127_v61 = vsel %vm1123_vm9, %v1118_v62, %v5182_v19  ;;  %v7348_v62 = vld [vmem:[#allocation34_spill] sm:$0xff] }
 0x161   : > { %v5444_v2 = vpop.permute.xlu1 %855  ;;  %v5559_v16 = vld [vmem:[%s4947_s22 + $0x2d] sm:$0xff] }
 0x162   : > { %v5442_v38 = vpop.permute.xlu0 %825 }
 0x163   : > { %1556 = vrot.lane.b32.xlu1 %v7343_v0, %s7305_s25 }
 0x164   : > { %1533 = vrot.lane.b32.xlu0 %v5135_v13, %s7303_s16  ;;  %v1136_v13 = vsel %vm1132_vm10, %v1127_v61, %v5252_v8  ;;  %v5516_v61 = vld [vmem:[%s4947_s22 + $0x25] sm:$0xff] }
 0x165   : > { %v5464_v37 = vpop.permute.xlu1 %951  ;;  %v1145_v11 = vsel %vm1141_vm11, %v1136_v13, %v5297_v53 }
 0x166   : > { %v5462_v26 = vpop.permute.xlu0 %928  ;;  %v1154_v19 = vsel %vm1150_vm12, %v1145_v11, %v5340_v36  ;;  %v5491_v36 = vld [vmem:[%s4947_s22 + $0x18] sm:$0xff]  ;;  %v5525_v11 = vld [vmem:[%s4947_s22 + $0x20] sm:$0xff] }
 0x167   : > { %1331 = vrot.lane.b32.xlu1 %v5458_v34, %s7295_s28  ;;  %v1163_v23 = vsel %vm1159_vm13, %v1154_v19, %v1000_v25  ;;  %7346 = vst [vmem:[#allocation28_spill] sm:$0xff] %v5491_v36  ;;  %7351 = vst [vmem:[#allocation34_spill] sm:$0xff] %v5525_v11 }
 0x168   : > { %1032 = vrot.lane.b32.xlu0 %v610_v33, %s4442_s14  ;;  %v5513_v33 = vld [vmem:[%s4947_s22 + $0x2c] sm:$0xff] }
 0x169   : > { %v5482_v8 = vpop.permute.xlu1 %1323  ;;  %7349 = vst [vmem:[#allocation29_spill] sm:$0xff] %v5513_v33 }
 0x16a   : > { %v1025_v51 = vpop.permute.xlu0 %1024  ;;  %7345 = vst [vmem:[#allocation24_spill] sm:$0xff] %v5482_v8  ;;  %v7358_v8 = vld [vmem:[#allocation16_spill] sm:$0xff] }
 0x16b   : > { %v1172_v53 = vsel %vm1168_vm14, %v1163_v23, %v1025_v51  ;;  %1455 = vrot.lane.b32.xlu1 %v5479_v5, %s7296_s23  ;;  %v7354_v51 = vld [vmem:[#allocation40_spill] sm:$0xff] }
 0x16c   : > { %1361 = vrot.lane.b32.xlu0 %v5476_v17, %s7297_s17  ;;  %3795 = vmatmul.mubr.msk.f32.gmra.mrb[2].mxu0 %vm1815_vm15, %v1172_v53 }
 0x16d   : > { %v5495_v25 = vpop.permute.xlu1 %857 }
 0x16e   : > { %v5493_v43 = vpop.permute.xlu0 %1353 }
 0x16f   : > { %7347 = vst [vmem:[#allocation33_spill] sm:$0xff] %v5493_v43  ;;  %1558 = vrot.lane.b32.xlu1 %v5200_v40, %s7305_s25 }
 0x170   : > { %1485 = vrot.lane.b32.xlu0 %v5491_v36, %s7298_s20  ;;  %v5544_v36 = vld [vmem:[%s4947_s22 + $0x39] sm:$0xff] }
 0x171   : > { %v5506_v42 = vpop.permute.xlu1 %953  ;;  %7356 = vst [vmem:[#allocation51_spill] sm:$0xff] %v5544_v36 }
 0x172   : > { %v5504_v0 = vpop.permute.xlu0 %880 }
 0x173   : > { %1269 = vrot.lane.b32.xlu1 %v5502_v32, %s7292_s19 }
 0x174   : > { %1581 = vrot.lane.b32.xlu0 %v7348_v62, %s7302_s24 }
 0x175   : > { %v5518_v40 = vpop.permute.xlu1 %1261 }
 0x176   : > { %v977_v13 = vpop.permute.xlu0 %976  ;;  %7350 = vst [vmem:[#allocation39_spill] sm:$0xff] %v5518_v40  ;;  %v5547_v40 = vld [vmem:[%s4947_s22 + $0x32] sm:$0xff] }
 0x177   : > { %1393 = vrot.lane.b32.xlu1 %v5516_v61, %s7299_s27 }
 0x178   : > { %1363 = vrot.lane.b32.xlu0 %v5513_v33, %s7297_s17  ;;  %v7362_v33 = vld [vmem:[#allocation27_spill] sm:$0xff] }
 0x179   : > { %v5529_v23 = vpop.permute.xlu1 %1385 }
 0x17a   : > { %v5527_v19 = vpop.permute.xlu0 %1355  ;;  %7353 = vst [vmem:[#allocation50_spill] sm:$0xff] %v5529_v23 }
 0x17b   : > { %7352 = vst [vmem:[#allocation49_spill] sm:$0xff] %v5527_v19  ;;  %1510 = vrot.lane.b32.xlu1 %v7354_v51, %s7301_s21  ;;  %v7357_v51 = vld [vmem:[#allocation19_spill] sm:$0xff] }
 0x17c   : > { %1487 = vrot.lane.b32.xlu0 %v5525_v11, %s7298_s20 }
 0x17d   : > { %v5537_v62 = vpop.permute.xlu1 %905 }
 0x17e   : > { %v5535_v53 = vpop.permute.xlu0 %882 }
 0x17f   : > { %7355 = vst [vmem:[#allocation40_spill] sm:$0xff] %v5535_v53  ;;  %1606 = vrot.lane.b32.xlu1 %v5146_v55, %s7304_s15  ;;  %v5562_v55 = vld [vmem:[%s4947_s22 + $0x26] sm:$0xff] }
 0x180   : > { %1583 = vrot.lane.b32.xlu0 %v5267_v6, %s7302_s24  ;;  %v1047_v6 = vsel %vm1042_vm0, %v7358_v8, %v7357_v51  ;;  %v7363_v8 = vld [vmem:[#allocation32_spill] sm:$0xff] }
 0x181   : > { %v1002_v11 = vpop.permute.xlu1 %1001  ;;  %v1056_v23 = vsel %vm1051_vm1, %v1047_v6, %v7359_v15  ;;  %v7364_v15 = vld [vmem:[#allocation38_spill] sm:$0xff] }
 0x182   : > { %v5549_v19 = vpop.permute.xlu0 %978 }
 0x183   : > { %1301 = vrot.lane.b32.xlu1 %v5547_v40, %s7293_s26 }
 0x184   : > { %1271 = vrot.lane.b32.xlu0 %v5544_v36, %s7292_s19  ;;  %v1065_v36 = vsel %vm1060_vm2, %v1056_v23, %v7361_v57 }
 0x185   : > { %v5568_v27 = vpop.permute.xlu1 %1293  ;;  %v1074_v53 = vsel %vm1069_vm3, %v1065_v36, %v7362_v33 }
 0x186   : > { %v5566_v43 = vpop.permute.xlu0 %1263  ;;  %v1083_v51 = vsel %vm1078_vm4, %v1074_v53, %v7363_v8 }
 0x187   : > { %7360 = vst [vmem:[#allocation19_spill] sm:$0xff] %v5566_v43  ;;  %1425 = vrot.lane.b32.xlu1 %v5562_v55, %s7294_s30  ;;  %v1092_v6 = vsel %vm1087_vm5, %v1083_v51, %v7364_v15 }
 0x188   : > { %1395 = vrot.lane.b32.xlu0 %v5559_v16, %s7299_s27  ;;  %v1101_v36 = vsel %vm1096_vm6, %v1092_v6, %v5169_v45 }
 0x189   : > { %v5584_v57 = vpop.permute.xlu1 %1417  ;;  %v1110_v33 = vsel %vm1105_vm7, %v1101_v36, %v5236_v31  ;;  %v5631_v36 = vld [vmem:[%s4947_s22 + $0x27] sm:$0xff] }
 0x18a   : > { %v5582_v43 = vpop.permute.xlu0 %1387  ;;  %v1119_v23 = vsel %vm1114_vm8, %v1110_v33, %v5295_v41  ;;  %v5615_v41 = vld [vmem:[%s4947_s22 + $0x33] sm:$0xff] }
 0x18b   : > { %1535 = vrot.lane.b32.xlu1 %v5197_v28, %s7303_s16  ;;  %v1128_v53 = vsel %vm1123_vm9, %v1119_v23, %v5329_v60 }
 0x18c   : > { %1512 = vrot.lane.b32.xlu0 %v5293_v48, %s7301_s21  ;;  %v1137_v45 = vsel %vm1132_vm10, %v1128_v53, %v5392_v44  ;;  %v5612_v48 = vld [vmem:[%s4947_s22 + $0x3a] sm:$0xff] }
 0x18d   : > { %v5600_v51 = vpop.permute.xlu1 %930  ;;  %v1146_v31 = vsel %vm1141_vm11, %v1137_v45, %v5464_v37  ;;  %v7368_v45 = vld [vmem:[#allocation25_spill] sm:$0xff] }
 0x18e   : > { %v5598_v8 = vpop.permute.xlu0 %907  ;;  %v1155_v28 = vsel %vm1150_vm12, %v1146_v31, %v977_v13  ;;  %v5628_v13 = vld [vmem:[%s4947_s22 + $0x2e] sm:$0xff] }
 0x18f   : > { %1631 = vrot.lane.b32.xlu1 %v5213_v39, %s7306_s11  ;;  %v1164_v60 = vsel %vm1159_vm13, %v1155_v28, %v1002_v11  ;;  %v7366_v39 = vld [vmem:[#allocation17_spill] sm:$0xff]  ;;  %v7367_v11 = vld [vmem:[#allocation22_spill] sm:$0xff]  ;;  %v7369_v28 = vld [vmem:[#allocation31_spill] sm:$0xff] }
 0x190   : > { %1608 = vrot.lane.b32.xlu0 %v5307_v22, %s7304_s15  ;;  %v7365_v22 = vld [vmem:[#allocation20_spill] sm:$0xff] }
 0x191   : > { %v1027_v44 = vpop.permute.xlu1 %1026  ;;  %v1048_v37 = vsel %vm1042_vm0, %v7366_v39, %v7365_v22 }
 0x192   : > { %v1004_v15 = vpop.permute.xlu0 %1003  ;;  %v1173_v6 = vsel %vm1168_vm14, %v1164_v60, %v1027_v44  ;;  %v1057_v33 = vsel %vm1051_vm1, %v1048_v37, %v7367_v11  ;;  %v7370_v44 = vld [vmem:[#allocation37_spill] sm:$0xff] }
 0x193   : > { %1333 = vrot.lane.b32.xlu1 %v5615_v41, %s7295_s28  ;;  %3797 = vmatprep.mubr.msk.f32.mxu0 %vm1815_vm15, %v1173_v6  ;;  %v1066_v31 = vsel %vm1060_vm2, %v1057_v33, %v7368_v45 }
 0x194   : > { %1303 = vrot.lane.b32.xlu0 %v5612_v48, %s7293_s26  ;;  %v1075_v60 = vsel %vm1069_vm3, %v1066_v31, %v7369_v28  ;;  %s7408_s26 = sld [smem:[#allocation53_spill]] }
 0x195   : > { %v5637_v53 = vpop.permute.xlu1 %1325  ;;  %v1084_v6 = vsel %vm1078_vm4, %v1075_v60, %v7370_v44 }
 0x196   : > { %v5635_v23 = vpop.permute.xlu0 %1295  ;;  %v1093_v22 = vsel %vm1087_vm5, %v1084_v6, %v5167_v58 }
 0x197   : > { %1457 = vrot.lane.b32.xlu1 %v5631_v36, %s7296_s23  ;;  %v1102_v11 = vsel %vm1096_vm6, %v1093_v22, %v5234_v14  ;;  %v5719_v22 = vld [vmem:[%s4947_s22 + $0x3c] sm:$0xff] }
 0x198   : > { %1427 = vrot.lane.b32.xlu0 %v5628_v13, %s7294_s30  ;;  %v1111_v33 = vsel %vm1105_vm7, %v1102_v11, %v5287_v12 }
 0x199   : > { %v5653_v37 = vpop.permute.xlu1 %1449  ;;  %v1120_v58 = vsel %vm1114_vm8, %v1111_v33, %v5327_v49  ;;  %v5682_v49 = vld [vmem:[%s4947_s22 + $0x3b] sm:$0xff] }
 0x19a   : > { %v5651_v39 = vpop.permute.xlu0 %1419  ;;  %v1129_v45 = vsel %vm1123_vm9, %v1120_v58, %v5390_v3  ;;  %v5728_v58 = vld [vmem:[%s4947_s22 + $0x35] sm:$0xff] }
 0x19b   : > { %1560 = vrot.lane.b32.xlu1 %v5248_v20, %s7305_s25  ;;  %v1138_v14 = vsel %vm1132_vm10, %v1129_v45, %v5462_v26  ;;  %v5731_v45 = vld [vmem:[%s4947_s22 + $0x30] sm:$0xff] }
 0x19c   : > { %1537 = vrot.lane.b32.xlu0 %v5338_v24, %s7303_s16  ;;  %v1147_v12 = vsel %vm1141_vm11, %v1138_v14, %v5506_v42  ;;  %v5685_v24 = vld [vmem:[%s4947_s22 + $0x34] sm:$0xff]  ;;  %7374 = vst [vmem:[#allocation27_spill] sm:$0xff] %v5731_v45 }
 0x19d   : > { %v5669_v28 = vpop.permute.xlu1 %955  ;;  %v1156_v20 = vsel %vm1150_vm12, %v1147_v12, %v5549_v19  ;;  %v5750_v12 = vld [vmem:[%s4947_s22 + $0x3d] sm:$0xff] }
 0x19e   : > { %v5667_v31 = vpop.permute.xlu0 %932  ;;  %v1165_v3 = vsel %vm1159_vm13, %v1156_v20, %v1004_v15 }
 0x19f   : > { %1656 = vrot.lane.b32.xlu1 %v5270_v35, %s4442_s14  ;;  %v5697_v35 = vld [vmem:[%s4947_s22 + $0x2f] sm:$0xff] }
 0x1a0   : > { %1633 = vrot.lane.b32.xlu0 %v5353_v30, %s7306_s11  ;;  %v5700_v30 = vld [vmem:[%s4947_s22 + $0x28] sm:$0xff] }
 0x1a1   : > { %v5688_v26 = vpop.permute.xlu1 %1327  ;;  %7372 = vst [vmem:[#allocation21_spill] sm:$0xff] %v5700_v30 }
 0x1a2   : > { %v1029_v60 = vpop.permute.xlu0 %1028  ;;  %7371 = vst [vmem:[#allocation16_spill] sm:$0xff] %v5688_v26 }
 0x1a3   : > { %v1174_v42 = vsel %vm1168_vm14, %v1165_v3, %v1029_v60  ;;  %1365 = vrot.lane.b32.xlu1 %v5685_v24, %s7297_s17  ;;  %v7376_v60 = vld [vmem:[#allocation30_spill] sm:$0xff] }
 0x1a4   : > { %1335 = vrot.lane.b32.xlu0 %v5682_v49, %s7295_s28  ;;  %3798 = vmatmul.mubr.msk.f32.gmra.mrb[4].mxu0 %vm1815_vm15, %v1174_v42  ;;  %v7377_v42 = vld [vmem:[#allocation18_spill] sm:$0xff]  ;;  %s7409_s28 = sld [smem:[#allocation8_spill]] }
 0x1a5   : > { %v5704_v15 = vpop.permute.xlu1 %1451 }
 0x1a6   : > { %v5702_v19 = vpop.permute.xlu0 %1357 }
 0x1a7   : > { %1489 = vrot.lane.b32.xlu1 %v5700_v30, %s7298_s20  ;;  %v5762_v30 = vld [vmem:[%s4947_s22 + $0x36] sm:$0xff] }
 0x1a8   : > { %1459 = vrot.lane.b32.xlu0 %v5697_v35, %s7296_s23 }
 0x1a9   : > { %v5712_v6 = vpop.permute.xlu1 %957 }
 0x1aa   : > { %v5710_v44 = vpop.permute.xlu0 %1481 }
 0x1ab   : > { %1585 = vrot.lane.b32.xlu1 %v5304_v63, %s7302_s24 }
 0x1ac   : > { %1562 = vrot.lane.b32.xlu0 %v5406_v56, %s7305_s25 }
 0x1ad   : > { %v5721_v33 = vpop.permute.xlu1 %1265 }
 0x1ae   : > { %v981_v11 = vpop.permute.xlu0 %980  ;;  %7373 = vst [vmem:[#allocation23_spill] sm:$0xff] %v5721_v33 }
 0x1af   : > { %1367 = vrot.lane.b32.xlu1 %v5719_v22, %s7297_s17 }
 0x1b0   : > { %1658 = vrot.lane.b32.xlu0 %v5422_v52, %s4442_s14 }
 0x1b1   : > { %v5735_v63 = vpop.permute.xlu1 %1389 }
 0x1b2   : > { %v5733_v56 = vpop.permute.xlu0 %1359 }
 0x1b3   : > { %7375 = vst [vmem:[#allocation32_spill] sm:$0xff] %v5733_v56  ;;  %1491 = vrot.lane.b32.xlu1 %v5731_v45, %s7298_s20  ;;  %v1049_v45 = vsel %vm1042_vm0, %v7377_v42, %v7376_v60 }
 0x1b4   : > { %1397 = vrot.lane.b32.xlu0 %v5728_v58, %s7299_s27 }
 0x1b5   : > { %v5743_v52 = vpop.permute.xlu1 %1506 }
 0x1b6   : > { %v5741_v14 = vpop.permute.xlu0 %1483 }
 0x1b7   : > { %1587 = vrot.lane.b32.xlu1 %v5476_v17, %s7302_s24 }
 0x1b8   : > { %1514 = vrot.lane.b32.xlu0 %v5335_v18, %s7301_s21  ;;  %v7378_v18 = vld [vmem:[#allocation36_spill] sm:$0xff] }
 0x1b9   : > { %v1006_v3 = vpop.permute.xlu1 %1005  ;;  %v1058_v17 = vsel %vm1051_vm1, %v1049_v45, %v7378_v18 }
 0x1ba   : > { %v5752_v20 = vpop.permute.xlu0 %982 }
 0x1bb   : > { %1399 = vrot.lane.b32.xlu1 %v5750_v12, %s7299_s27  ;;  %s4445_s27 = smov 80  }
 0x1bc   : > { %1610 = vrot.lane.b32.xlu0 %v5350_v50, %s7304_s15  ;;  %v1067_v50 = vsel %vm1060_vm2, %v1058_v17, %v5153_v47 }
 0x1bd   : > { %v5768_v56 = vpop.permute.xlu1 %1297  ;;  %v1076_v26 = vsel %vm1069_vm3, %v1067_v50, %v5220_v21 }
 0x1be   : > { %v5766_v33 = vpop.permute.xlu0 %1267  ;;  %v1085_v45 = vsel %vm1078_vm4, %v1076_v26, %v5285_v9 }
 0x1bf   : > { %1516 = vrot.lane.b32.xlu1 %v5502_v32, %s7301_s21  ;;  %v1094_v60 = vsel %vm1087_vm5, %v1085_v45, %v5320_v4  ;;  %v5797_v4 = vld [vmem:[%s4947_s22 + $0x3e] sm:$0xff] }
 0x1c0   : > { %1429 = vrot.lane.b32.xlu0 %v5762_v30, %s7294_s30  ;;  %v1103_v47 = vsel %vm1096_vm6, %v1094_v60, %v5375_v1 }
 0x1c1   : > { %v5784_v18 = vpop.permute.xlu1 %1421  ;;  %v1112_v21 = vsel %vm1105_vm7, %v1103_v47, %v5444_v2 }
 0x1c2   : > { %v5782_v42 = vpop.permute.xlu0 %1391  ;;  %v1121_v9 = vsel %vm1114_vm8, %v1112_v21, %v5504_v0 }
 0x1c3   : > { %1612 = vrot.lane.b32.xlu1 %v5516_v61, %s7304_s15  ;;  %v1130_v32 = vsel %vm1123_vm9, %v1121_v9, %v5537_v62  ;;  %v5815_v61 = vld [vmem:[%s4947_s22 + $0x37] sm:$0xff] }
 0x1c4   : > { %1539 = vrot.lane.b32.xlu0 %v5403_v7, %s7303_s16  ;;  %v1139_v2 = vsel %vm1132_vm10, %v1130_v32, %v5600_v51  ;;  %v5844_v32 = vld [vmem:[%s4947_s22 + $0x3f] sm:$0xff] }
 0x1c5   : > { %v5803_v1 = vpop.permute.xlu1 %1531  ;;  %v1148_v7 = vsel %vm1141_vm11, %v1139_v2, %v5669_v28  ;;  %v7380_v28 = vld [vmem:[#allocation26_spill] sm:$0xff] }
 0x1c6   : > { %v5801_v26 = vpop.permute.xlu0 %1508  ;;  %v1157_v0 = vsel %vm1150_vm12, %v1148_v7, %v981_v11  ;;  %v7381_v11 = vld [vmem:[#allocation41_spill] sm:$0xff] }
 0x1c7   : > { %1431 = vrot.lane.b32.xlu1 %v5797_v4, %s7294_s30  ;;  %v1166_v62 = vsel %vm1159_vm13, %v1157_v0, %v1006_v3 }
 0x1c8   : > { %1635 = vrot.lane.b32.xlu0 %v5419_v29, %s7306_s11  ;;  %v7379_v29 = vld [vmem:[#allocation35_spill] sm:$0xff] }
 0x1c9   : > { %v1031_v50 = vpop.permute.xlu1 %1030  ;;  %v1050_v45 = vsel %vm1042_vm0, %v7380_v28, %v7379_v29  ;;  %v7383_v28 = vld [vmem:[#allocation29_spill] sm:$0xff] }
 0x1ca   : > { %v1008_v17 = vpop.permute.xlu0 %1007  ;;  %v1175_v51 = vsel %vm1168_vm14, %v1166_v62, %v1031_v50  ;;  %v1059_v3 = vsel %vm1051_vm1, %v1050_v45, %v7381_v11 }
 0x1cb   : > { %1541 = vrot.lane.b32.xlu1 %v5547_v40, %s7303_s16  ;;  %3800 = vmatprep.mubr.msk.f32.mxu0 %vm1815_vm15, %v1175_v51  ;;  %v1068_v21 = vsel %vm1060_vm2, %v1059_v3, %v5218_v46 }
 0x1cc   : > { %1461 = vrot.lane.b32.xlu0 %v5815_v61, %s7296_s23  ;;  %v1077_v40 = vsel %vm1069_vm3, %v1068_v21, %v5273_v59 }
 0x1cd   : > { %v5831_v47 = vpop.permute.xlu1 %1329  ;;  %v1086_v9 = vsel %vm1078_vm4, %v1077_v40, %v5318_v54  ;;  %v7382_v54 = vld [vmem:[#allocation40_spill] sm:$0xff] }
 0x1ce   : > { %v5829_v60 = vpop.permute.xlu0 %1299  ;;  %v1095_v2 = vsel %vm1087_vm5, %v1086_v9, %v5373_v10  ;;  %v5863_v10 = vld [vmem:[%s4947_s22 + $0x38] sm:$0xff] }
 0x1cf   : > { %1637 = vrot.lane.b32.xlu1 %v5562_v55, %s7306_s11  ;;  %v1104_v59 = vsel %vm1096_vm6, %v1095_v2, %v5442_v38 }
 0x1d0   : > { %1564 = vrot.lane.b32.xlu0 %v5458_v34, %s7305_s25  ;;  %v1113_v34 = vsel %vm1105_vm7, %v1104_v59, %v5495_v25 }
 0x1d1   : > { %v5850_v46 = vpop.permute.xlu1 %1453  ;;  %v1122_v55 = vsel %vm1114_vm8, %v1113_v34, %v7382_v54 }
 0x1d2   : > { %v5848_v7 = vpop.permute.xlu0 %1423  ;;  %v1131_v0 = vsel %vm1123_vm9, %v1122_v55, %v5598_v8 }
 0x1d3   : > { %1463 = vrot.lane.b32.xlu1 %v5844_v32, %s7296_s23  ;;  %v1140_v25 = vsel %vm1132_vm10, %v1131_v0, %v5667_v31 }
 0x1d4   : > { %1660 = vrot.lane.b32.xlu0 %v5479_v5, %s4442_s14  ;;  %v1149_v5 = vsel %vm1141_vm11, %v1140_v25, %v5712_v6  ;;  %v1177_v25 = vld [vmem:[%s4947_s22] sm:$0xff] }
 0x1d5   : > { %v5869_v38 = vpop.permute.xlu1 %1556  ;;  %v1158_v50 = vsel %vm1150_vm12, %v1149_v5, %v5752_v20 }
 0x1d6   : > { %v5867_v62 = vpop.permute.xlu0 %1533  ;;  %v1167_v8 = vsel %vm1159_vm13, %v1158_v50, %v1008_v17  ;;  %v7384_v17 = vld [vmem:[#allocation51_spill] sm:$0xff] }
 0x1d7   : > { %1566 = vrot.lane.b32.xlu1 %v5615_v41, %s7305_s25  ;;  %v1241_v41 = vld [vmem:[%s4947_s22 + $0x40] sm:$0xff] }
 0x1d8   : > { %1493 = vrot.lane.b32.xlu0 %v5863_v10, %s7298_s20 }
 0x1d9   : > { %v5882_v29 = vpop.permute.xlu1 %1331 }
 0x1da   : > { %v1033_v51 = vpop.permute.xlu0 %1032 }
 0x1db   : > { %v1176_v31 = vsel %vm1168_vm14, %v1167_v8, %v1033_v51  ;;  %1662 = vrot.lane.b32.xlu1 %v5631_v36, %s4442_s14  ;;  %v1242_v36 = vld [vmem:[%s4947_s22 + $0x41] sm:$0xff] }
 0x1dc   : > { %1589 = vrot.lane.b32.xlu0 %v7383_v28, %s7302_s24  ;;  %3801 = vmatmul.mubr.msk.f32.gmra.mrb[6].mxu0 %vm1815_vm15, %v1176_v31  ;;  %v1248_v51 = vld [vmem:[%s4947_s22 + $0x47] sm:$0xff]  ;;  %v7386_v31 = vld [vmem:[#allocation46_spill] sm:$0xff] }
 0x1dd   : > { %v5893_v20 = vpop.permute.xlu1 %1455 }
 0x1de   : > { %v5891_v6 = vpop.permute.xlu0 %1361 }
 0x1df   : > { %1518 = vrot.lane.b32.xlu1 %v7384_v17, %s7301_s21  ;;  %v7387_v17 = vld [vmem:[#allocation48_spill] sm:$0xff] }
 0x1e0   : > { %1495 = vrot.lane.b32.xlu0 %v1241_v41, %s7298_s20 }
 0x1e1   : > { %v5900_v11 = vpop.permute.xlu1 %1558 }
 0x1e2   : > { %v5898_v45 = vpop.permute.xlu0 %1485 }
 0x1e3   : > { %1614 = vrot.lane.b32.xlu1 %v5559_v16, %s7304_s15  ;;  %v1243_v16 = vld [vmem:[%s4947_s22 + $0x42] sm:$0xff] }
 0x1e4   : > { %1591 = vrot.lane.b32.xlu0 %v5685_v24, %s7302_s24 }
 0x1e5   : > { %v5907_v21 = vpop.permute.xlu1 %1269 }
 0x1e6   : > { %v1582_v3 = vpop.permute.xlu0 %1581 }
 0x1e7   : > { %1543 = vrot.lane.b32.xlu1 %v5612_v48, %s7303_s16 }
 0x1e8   : > { %1520 = vrot.lane.b32.xlu0 %v1242_v36, %s7301_s21  ;;  %s527_s21 = sand.u32 1, %s7409_s28  }
 0x1e9   : > { %v5914_v9 = vpop.permute.xlu1 %1393  ;;  %s3470_s28 = scalar_lea.sflag [#allocation5], %s527_s21 }
 0x1ea   : > { %v5912_v40 = vpop.permute.xlu0 %1363 }
 0x1eb   : > { %1639 = vrot.lane.b32.xlu1 %v5628_v13, %s7306_s11  ;;  %v1244_v13 = vld [vmem:[%s4947_s22 + $0x43] sm:$0xff] }
 0x1ec   : > { %1616 = vrot.lane.b32.xlu0 %v5728_v58, %s7304_s15 }
 0x1ed   : > { %v5923_v2 = vpop.permute.xlu1 %1510 }
 0x1ee   : > { %v5921_v24 = vpop.permute.xlu0 %1487 }
 0x1ef   : > { %1568 = vrot.lane.b32.xlu1 %v5682_v49, %s7305_s25  ;;  %v1245_v49 = vld [vmem:[%s4947_s22 + $0x44] sm:$0xff] }
 0x1f0   : > { %1545 = vrot.lane.b32.xlu0 %v1243_v16, %s7303_s16  ;;  %v7388_v16 = vld [vmem:[#allocation33_spill] sm:$0xff]  ;;  %s4447_s16 = smov 96  }
 0x1f1   : > { %v1607_v59 = vpop.permute.xlu1 %1606 }
 0x1f2   : > { %v5928_v48 = vpop.permute.xlu0 %1583 }
 0x1f3   : > { %1664 = vrot.lane.b32.xlu1 %v5697_v35, %s4442_s14  ;;  %v1246_v35 = vld [vmem:[%s4947_s22 + $0x45] sm:$0xff] }
 0x1f4   : > { %1641 = vrot.lane.b32.xlu0 %v5762_v30, %s7306_s11 }
 0x1f5   : > { %v5937_v34 = vpop.permute.xlu1 %1301 }
 0x1f6   : > { %v5935_v58 = vpop.permute.xlu0 %1271 }
 0x1f7   : > { %1593 = vrot.lane.b32.xlu1 %v5719_v22, %s7302_s24  ;;  %v1247_v22 = vld [vmem:[%s4947_s22 + $0x46] sm:$0xff] }
 0x1f8   : > { %1570 = vrot.lane.b32.xlu0 %v1244_v13, %s7305_s25  ;;  %s7410_s25 = sld [smem:[#allocation54_spill]] }
 0x1f9   : > { %v5945_v30 = vpop.permute.xlu1 %1425 }
 0x1fa   : > { %v5943_v54 = vpop.permute.xlu0 %1395 }
 0x1fb   : > { %1595 = vrot.lane.b32.xlu1 %v1245_v49, %s7302_s24  ;;  %v7389_v49 = vld [vmem:[#allocation50_spill] sm:$0xff] }
 0x1fc   : > { %1666 = vrot.lane.b32.xlu0 %v5815_v61, %s4442_s14  ;;  %v7385_v61 = vld [vmem:[#allocation43_spill] sm:$0xff] }
 0x1fd   : > { %v5953_v0 = vpop.permute.xlu1 %1535  ;;  %v1680_v8 = vsel %vm1042_vm0, %v1177_v25, %v7385_v61 }
 0x1fe   : > { %v5951_v55 = vpop.permute.xlu0 %1512  ;;  %v1688_v28 = vsel %vm1051_vm1, %v1680_v8, %v7386_v31 }
 0x1ff   : > { %1620 = vrot.lane.b32.xlu1 %v1246_v35, %s7304_s15  ;;  %v1696_v36 = vsel %vm1060_vm2, %v1688_v28, %v7387_v17 }
 0x200   : > { %1618 = vrot.lane.b32.xlu0 %v5750_v12, %s7304_s15  ;;  %v1704_v13 = vsel %vm1069_vm3, %v1696_v36, %v7388_v16  ;;  %s4446_s15 = smov 112  }
 0x201   : > { %v1632_v50 = vpop.permute.xlu1 %1631  ;;  %v1712_v35 = vsel %vm1078_vm4, %v1704_v13, %v7389_v49 }
 0x202   : > { %v1609_v5 = vpop.permute.xlu0 %1608  ;;  %v1720_v25 = vsel %vm1087_vm5, %v1712_v35, %v5584_v57  ;;  %v7392_v35 = vld [vmem:[#allocation42_spill] sm:$0xff] }
 0x203   : > { %1645 = vrot.lane.b32.xlu1 %v1247_v22, %s7306_s11  ;;  %v1728_v31 = vsel %vm1096_vm6, %v1720_v25, %v5653_v37 }
 0x204   : > { %1643 = vrot.lane.b32.xlu0 %v5797_v4, %s7306_s11  ;;  %s7412_s11 = sld [smem:[#allocation55_spill]] }
 0x205   : > { %v5970_v12 = vpop.permute.xlu1 %1333 }
 0x206   : > { %v5968_v41 = vpop.permute.xlu0 %1303 }
 0x207   : > { %v5976_v4 = vpop.f32.mrb[0].mxu0  ;;  %1670 = vrot.lane.b32.xlu1 %v1248_v51, %s4442_s14 }
 0x208   : > { %1668 = vrot.lane.b32.xlu0 %v5844_v32, %s4442_s14  ;;  %v5983_v22 = vpop.f32.mrb[1].mxu0  ;;  %v1736_v32 = vsel %vm1105_vm7, %v1728_v31, %v5710_v44  ;;  %v7393_v31 = vld [vmem:[#allocation47_spill] sm:$0xff] }
 0x209   : > { %7390 = vst [vmem:[#allocation38_spill] sm:$0xff] %v5983_v22  ;;  %v5989_v8 = vpop.permute.xlu1 %1457  ;;  %v1744_v51 = vsel %vm1114_vm8, %v1736_v32, %v5743_v52 }
 0x20a   : > { %v5987_v61 = vpop.permute.xlu0 %1427  ;;  %v1752_v28 = vsel %vm1123_vm9, %v1744_v51, %v5803_v1  ;;  %v7391_v1 = vld [vmem:[#allocation45_spill] sm:$0xff] }
 0x20b   : > { %v1760_v57 = vsel %vm1132_vm10, %v1752_v28, %v5869_v38  ;;  %v1681_v25 = vsel %vm1042_vm0, %v7392_v35, %v7391_v1  ;;  %v7395_v51 = vld [vmem:[#allocation49_spill] sm:$0xff] }
 0x20c   : > { %v1768_v16 = vsel %vm1141_vm11, %v1760_v57, %v1582_v3  ;;  %v1689_v32 = vsel %vm1051_vm1, %v1681_v25, %v7393_v31 }
 0x20d   : > { %v6001_v36 = vpop.permute.xlu1 %1560  ;;  %v1776_v37 = vsel %vm1150_vm12, %v1768_v16, %v1607_v59  ;;  %v7394_v59 = vld [vmem:[#allocation24_spill] sm:$0xff] }
 0x20e   : > { %v5999_v17 = vpop.permute.xlu0 %1537  ;;  %v1784_v13 = vsel %vm1159_vm13, %v1776_v37, %v1632_v50  ;;  %v1697_v50 = vsel %vm1060_vm2, %v1689_v32, %v7394_v59 }
 0x20f   : > { %v1705_v28 = vsel %vm1069_vm3, %v1697_v50, %v7395_v51 }
 0x210   : > { %v1713_v57 = vsel %vm1078_vm4, %v1705_v28, %v5582_v43 }
 0x211   : > { %v1657_v49 = vpop.permute.xlu1 %1656  ;;  %v1721_v16 = vsel %vm1087_vm5, %v1713_v57, %v5651_v39 }
 0x212   : > { %v1634_v44 = vpop.permute.xlu0 %1633  ;;  %v1792_v52 = vsel %vm1168_vm14, %v1784_v13, %v1657_v49  ;;  %v1729_v49 = vsel %vm1096_vm6, %v1721_v16, %v5704_v15 }
 0x213   : > { %3803 = vmatprep.mubr.msk.f32.mxu0 %vm1815_vm15, %v1792_v52  ;;  %v1737_v52 = vsel %vm1105_vm7, %v1729_v49, %v5741_v14  ;;  %v7396_v49 = vld [vmem:[#allocation39_spill] sm:$0xff] }
 0x214   : > { %v1745_v1 = vsel %vm1114_vm8, %v1737_v52, %v5801_v26  ;;  %v7397_v52 = vld [vmem:[#allocation44_spill] sm:$0xff] }
 0x215   : > { %v6017_v3 = vpop.permute.xlu1 %1365  ;;  %v1753_v35 = vsel %vm1123_vm9, %v1745_v1, %v5867_v62  ;;  %v1682_v1 = vsel %vm1042_vm0, %v7397_v52, %v7396_v49 }
 0x216   : > { %v6015_v38 = vpop.permute.xlu0 %1335  ;;  %v1761_v39 = vsel %vm1132_vm10, %v1753_v35, %v5900_v11  ;;  %v1690_v35 = vsel %vm1051_vm1, %v1682_v1, %v5568_v27  ;;  %v7398_v1 = vld [vmem:[#allocation19_spill] sm:$0xff] }
 0x217   : > { %v1769_v31 = vsel %vm1141_vm11, %v1761_v39, %v5928_v48 }
 0x218   : > { %v1777_v32 = vsel %vm1150_vm12, %v1769_v31, %v1609_v5 }
 0x219   : > { %v6029_v13 = vpop.permute.xlu1 %1489  ;;  %v1785_v15 = vsel %vm1159_vm13, %v1777_v32, %v1634_v44  ;;  %v1698_v32 = vsel %vm1060_vm2, %v1690_v35, %v5637_v53 }
 0x21a   : > { %v6027_v37 = vpop.permute.xlu0 %1459 }
 0x21d   : > { %v1586_v25 = vpop.permute.xlu1 %1585 }
 0x21e   : > { %v1563_v43 = vpop.permute.xlu0 %1562 }
 0x221   : > { %v6045_v14 = vpop.permute.xlu1 %1367 }
 0x222   : > { %v1659_v59 = vpop.permute.xlu0 %1658 }
 0x223   : > { %v1793_v26 = vsel %vm1168_vm14, %v1785_v15, %v1659_v59  ;;  %v1706_v15 = vsel %vm1069_vm3, %v1698_v32, %v5702_v19  ;;  %v7399_v19 = vld [vmem:[#allocation28_spill] sm:$0xff] }
 0x224   : > { %3804 = vmatmul.mubr.msk.f32.gmra.mrb[8].mxu0 %vm1815_vm15, %v1793_v26  ;;  %v1714_v59 = vsel %vm1078_vm4, %v1706_v15, %v5735_v63  ;;  %v1683_v35 = vsel %vm1042_vm0, %v7399_v19, %v7398_v1  ;;  %v7401_v1 = vld [vmem:[#allocation32_spill] sm:$0xff] }
 0x225   : > { %v6051_v50 = vpop.permute.xlu1 %1491  ;;  %v1722_v26 = vsel %vm1087_vm5, %v1714_v59, %v5784_v18  ;;  %v1691_v32 = vsel %vm1051_vm1, %v1683_v35, %v5635_v23 }
 0x226   : > { %v6049_v62 = vpop.permute.xlu0 %1397  ;;  %v1730_v27 = vsel %vm1096_vm6, %v1722_v26, %v5850_v46 }
 0x227   : > { %v1738_v52 = vsel %vm1105_vm7, %v1730_v27, %v5898_v45  ;;  %v7400_v45 = vld [vmem:[#allocation16_spill] sm:$0xff] }
 0x228   : > { %v1746_v63 = vsel %vm1114_vm8, %v1738_v52, %v5923_v2  ;;  %v1699_v26 = vsel %vm1060_vm2, %v1691_v32, %v7400_v45 }
 0x229   : > { %v1588_v11 = vpop.permute.xlu1 %1587  ;;  %v1754_v46 = vsel %vm1123_vm9, %v1746_v63, %v5953_v0  ;;  %v1707_v19 = vsel %vm1069_vm3, %v1699_v26, %v7401_v1 }
 0x22a   : > { %v6053_v51 = vpop.permute.xlu0 %1514  ;;  %v1762_v27 = vsel %vm1132_vm10, %v1754_v46, %v6001_v36  ;;  %v1715_v52 = vsel %vm1078_vm4, %v1707_v19, %v5782_v42 }
 0x22b   : > { %v1770_v2 = vsel %vm1141_vm11, %v1762_v27, %v1586_v25  ;;  %v1723_v0 = vsel %vm1087_vm5, %v1715_v52, %v5848_v7 }
 0x22c   : > { %v1731_v36 = vsel %vm1096_vm6, %v1723_v0, %v5893_v20 }
 0x22d   : > { %v6055_v48 = vpop.permute.xlu1 %1399  ;;  %v1739_v25 = vsel %vm1105_vm7, %v1731_v36, %v5921_v24 }
 0x22e   : > { %v1611_v28 = vpop.permute.xlu0 %1610  ;;  %v1747_v42 = vsel %vm1114_vm8, %v1739_v25, %v5951_v55 }
 0x22f   : > { %v1778_v23 = vsel %vm1150_vm12, %v1770_v2, %v1611_v28  ;;  %v1755_v7 = vsel %vm1123_vm9, %v1747_v42, %v5999_v17 }
 0x230   : > { %v1763_v45 = vsel %vm1132_vm10, %v1755_v7, %v1563_v43  ;;  %v7403_v43 = vld [vmem:[#allocation34_spill] sm:$0xff] }
 0x231   : > { %v6059_v44 = vpop.permute.xlu1 %1516  ;;  %v1771_v20 = vsel %vm1141_vm11, %v1763_v45, %v1588_v11  ;;  %v7404_v45 = vld [vmem:[#allocation21_spill] sm:$0xff] }
 0x232   : > { %v6057_v5 = vpop.permute.xlu0 %1429 }
 0x235   : > { %v1613_v16 = vpop.permute.xlu1 %1612 }
 0x236   : > { %v6061_v57 = vpop.permute.xlu0 %1539  ;;  %v1779_v26 = vsel %vm1150_vm12, %v1771_v20, %v1613_v16 }
 0x239   : > { %v6068_v31 = vpop.permute.xlu1 %1431 }
 0x23a   : > { %v1636_v39 = vpop.permute.xlu0 %1635 }
 0x23b   : > { %v1786_v35 = vsel %vm1159_vm13, %v1778_v23, %v1636_v39  ;;  %v7402_v23 = vld [vmem:[#allocation23_spill] sm:$0xff] }
 0x23c   : > { %v1684_v11 = vsel %vm1042_vm0, %v7403_v43, %v7402_v23 }
 0x23d   : > { %v6080_v49 = vpop.permute.xlu1 %1541  ;;  %v1692_v16 = vsel %vm1051_vm1, %v1684_v11, %v5768_v56 }
 0x23e   : > { %v6078_v22 = vpop.permute.xlu0 %1461 }
 0x23f   : > { %v6086_v53 = vpop.f32.mrb[2].mxu0 }
 0x240   : > { %v6093_v18 = vpop.f32.mrb[3].mxu0 }
 0x241   : > { %v1638_v59 = vpop.permute.xlu1 %1637 }
 0x242   : > { %v1565_v15 = vpop.permute.xlu0 %1564  ;;  %v1787_v27 = vsel %vm1159_vm13, %v1779_v26, %v1638_v59 }
 0x245   : > { %v6112_v32 = vpop.permute.xlu1 %1463 }
 0x246   : > { %v1661_v63 = vpop.permute.xlu0 %1660 }
 0x247   : > { %v1794_v46 = vsel %vm1168_vm14, %v1786_v35, %v1661_v63  ;;  %v1700_v35 = vsel %vm1060_vm2, %v1692_v16, %v5831_v47  ;;  %v1685_v47 = vsel %vm1042_vm0, %v7404_v45, %v5766_v33 }
 0x248   : > { %3806 = vmatprep.mubr.msk.f32.mxu0 %vm1815_vm15, %v1794_v46  ;;  %v1708_v63 = vsel %vm1069_vm3, %v1700_v35, %v5891_v6 }
 0x249   : > { %v1567_v39 = vpop.permute.xlu1 %1566  ;;  %v1716_v36 = vsel %vm1078_vm4, %v1708_v63, %v5914_v9  ;;  %v1693_v9 = vsel %vm1051_vm1, %v1685_v47, %v5829_v60 }
 0x24a   : > { %v6124_v28 = vpop.permute.xlu0 %1493  ;;  %v1724_v46 = vsel %vm1087_vm5, %v1716_v36, %v5945_v30 }
 0x24b   : > { %v1732_v7 = vsel %vm1096_vm6, %v1724_v46, %v5989_v8  ;;  %v1701_v8 = vsel %vm1060_vm2, %v1693_v9, %v5882_v29 }
 0x24c   : > { %v1740_v56 = vsel %vm1105_vm7, %v1732_v7, %v6029_v13 }
 0x24d   : > { %v1663_v1 = vpop.permute.xlu1 %1662  ;;  %v1748_v6 = vsel %vm1114_vm8, %v1740_v56, %v6053_v51 }
 0x24e   : > { %v1590_v24 = vpop.permute.xlu0 %1589  ;;  %v1795_v19 = vsel %vm1168_vm14, %v1787_v27, %v1663_v1  ;;  %v1756_v30 = vsel %vm1123_vm9, %v1748_v6, %v6061_v57  ;;  %v1709_v27 = vsel %vm1069_vm3, %v1701_v8, %v5912_v40 }
 0x24f   : > { %3807 = vmatmul.mubr.msk.f32.gmra.mrb[10].mxu0 %vm1815_vm15, %v1795_v19  ;;  %v1764_v13 = vsel %vm1132_vm10, %v1756_v30, %v1565_v15  ;;  %v1717_v51 = vsel %vm1078_vm4, %v1709_v27, %v5943_v54 }
 0x250   : > { %v1772_v33 = vsel %vm1141_vm11, %v1764_v13, %v1590_v24  ;;  %v1725_v57 = vsel %vm1087_vm5, %v1717_v51, %v5987_v61  ;;  %v4443_v51 = vmov 0.0  }
 0x251   : > { %v6134_v17 = vpop.permute.xlu1 %1518  ;;  %v1733_v29 = vsel %vm1096_vm6, %v1725_v57, %v6027_v37  ;;  %v7405_v37 = vld [vmem:[#allocation27_spill] sm:$0xff]  ;;  %2114 = vst.msk [vmem:[#allocation2] sm:$0xff] %vm1069_vm3, %v4443_v51  ;;  %2124 = vst.msk [vmem:[#allocation2 + $0x50] sm:$0xff] %vm1069_vm3, %v4443_v51 }
 0x252   : > { %v6132_v55 = vpop.permute.xlu0 %1495  ;;  %v1741_v40 = vsel %vm1105_vm7, %v1733_v29, %v6051_v50  ;;  %v1686_v16 = vsel %vm1042_vm0, %v7405_v37, %v5907_v21  ;;  %v1687_v50 = vsel %vm1042_vm0, %v5863_v10, %v5935_v58  ;;  %vm2125_vm0 = vcmask 128000   ;;  %v6266_v29 = vld [vmem:[%s7204_s4] ss:$0 sm:$0xff] }
 0x253   : > { %v1749_v54 = vsel %vm1114_vm8, %v1741_v40, %v6059_v44  ;;  %v1694_v44 = vsel %vm1051_vm1, %v1686_v16, %v5937_v34  ;;  %2126 = vst.msk [vmem:[#allocation2 + $0x58] sm:$0x3f] %vm2125_vm0, %v4443_v51 }
 0x254   : > { %v1757_v61 = vsel %vm1123_vm9, %v1749_v54, %v6080_v49  ;;  %v1695_v49 = vsel %vm1051_vm1, %v1687_v50, %v5968_v41  ;;  %v1702_v36 = vsel %vm1060_vm2, %v1694_v44, %v5970_v12  ;;  %vm2087_vm1 = vcmask 1046528  }
 0x255   : > { %v1615_v52 = vpop.permute.xlu1 %1614  ;;  %v1765_v43 = vsel %vm1132_vm10, %v1757_v61, %v1567_v39  ;;  %v1703_v21 = vsel %vm1060_vm2, %v1695_v49, %v6015_v38  ;;  %v1710_v58 = vsel %vm1069_vm3, %v1702_v36, %v6017_v3  ;;  %vm2374_vm2 = vcmask 654336  }
 0x256   : > { %v1592_v2 = vpop.permute.xlu0 %1591  ;;  %v1780_v60 = vsel %vm1150_vm12, %v1772_v33, %v1615_v52  ;;  %v1711_v34 = vsel %vm1069_vm3, %v1703_v21, %v6045_v14  ;;  %v1718_v41 = vsel %vm1078_vm4, %v1710_v58, %v6049_v62 }
 0x257   : > { %v1773_v11 = vsel %vm1141_vm11, %v1765_v43, %v1592_v2  ;;  %v1719_v46 = vsel %vm1078_vm4, %v1711_v34, %v6055_v48  ;;  %v1726_v12 = vsel %vm1087_vm5, %v1718_v41, %v6057_v5  ;;  %vm2377_vm4 = vcmask 785408  }
 0x258   : > { %v1727_v38 = vsel %vm1087_vm5, %v1719_v46, %v6068_v31  ;;  %v1734_v3 = vsel %vm1096_vm6, %v1726_v12, %v6078_v22  ;;  %vm2380_vm5 = vcmask 916480  }
 0x259   : > { %v1544_v0 = vpop.permute.xlu1 %1543  ;;  %v1735_v14 = vsel %vm1096_vm6, %v1727_v38, %v6112_v32  ;;  %v1742_v62 = vsel %vm1105_vm7, %v1734_v3, %v6124_v28  ;;  %vm4449_vm6 = vmmov 0  }
 0x25a   : > { %v1521_v59 = vpop.permute.xlu0 %1520  ;;  %v1743_v48 = vsel %vm1105_vm7, %v1735_v14, %v6132_v55  ;;  %v1750_v5 = vsel %vm1114_vm8, %v1742_v62, %v6134_v17 }
 0x25b   : > { %v1751_v7 = vsel %vm1114_vm8, %v1743_v48, %v1521_v59  ;;  %v1758_v31 = vsel %vm1123_vm9, %v1750_v5, %v1544_v0 }
 0x25d   : > { %v1640_v42 = vpop.permute.xlu1 %1639 }
 0x25e   : > { %v1617_v25 = vpop.permute.xlu0 %1616  ;;  %v1788_v1 = vsel %vm1159_vm13, %v1780_v60, %v1640_v42  ;;  %v6257_v60 = vld [vmem:[%s7203_s3] ss:$0 sm:$0xff] }
 0x25f   : > { %v1781_v35 = vsel %vm1150_vm12, %v1773_v11, %v1617_v25  ;;  %v1936_v57 = vadd.f32 %v5976_v4, %v6257_v60  ;;  %v6274_v4 = vld [vmem:[%s7205_s5] ss:$0 sm:$0xff]  ;;  %v1946_v34 = vadd.f32 %v6086_v53, %v6257_v60  ;;  %v1941_v41 = vadd.f32 %v6257_v60, %v6093_v18 }
 0x261   : > { %v1569_v26 = vpop.permute.xlu1 %1568  ;;  %v2012_v46 = vmax.f32 %v1946_v34, 0.0  ;;  %v2011_v12 = vmax.f32 %v1941_v41, 0.0  ;;  %v2793_v41 = vld [vmem:[%s7206_s6 + $0x98] sm:$0xff] }
 0x262   : > { %v1546_v20 = vpop.permute.xlu0 %1545  ;;  %v1766_v47 = vsel %vm1132_vm10, %v1758_v31, %v1569_v26 }
 0x263   : > { %v1759_v56 = vsel %vm1123_vm9, %v1751_v7, %v1546_v20  ;;  %v2035_v14 = vmul.f32 %v6266_v29, %v2012_v46  ;;  %v2034_v48 = vmul.f32 %v6266_v29, %v2011_v12  ;;  %v2776_v46 = vld [vmem:[%s7206_s6 + $0x10] sm:$0xff]  ;;  %v2777_v12 = vld [vmem:[%s7206_s6 + $0x18] sm:$0xff] }
 0x265   : > { %v1665_v23 = vpop.permute.xlu1 %1664  ;;  %v2058_v18 = vadd.f32 %v6274_v4, %v2035_v14 }
 0x266   : > { %v1642_v19 = vpop.permute.xlu0 %1641  ;;  %v1796_v15 = vsel %vm1168_vm14, %v1788_v1, %v1665_v23  ;;  %v7406_v1 = vld [vmem:[#allocation38_spill] sm:$0xff]  ;;  %v2010_v23 = vmax.f32 %v1936_v57, 0.0 }
 0x267   : > { %3809 = vmatprep.mubr.msk.f32.mxu0 %vm1815_vm15, %v1796_v15  ;;  %v1789_v39 = vsel %vm1159_vm13, %v1781_v35, %v1642_v19  ;;  %v1931_v19 = vadd.f32 %v6257_v60, %v7406_v1 }
 0x269   : > { %v1594_v52 = vpop.permute.xlu1 %1593  ;;  %v2009_v15 = vmax.f32 %v1931_v19, 0.0 }
 0x26a   : > { %v1571_v24 = vpop.permute.xlu0 %1570  ;;  %v1774_v28 = vsel %vm1141_vm11, %v1766_v47, %v1594_v52  ;;  %v2033_v52 = vmul.f32 %v6266_v29, %v2010_v23 }
 0x26b   : > { %v1767_v32 = vsel %vm1132_vm10, %v1759_v56, %v1571_v24  ;;  %v2032_v11 = vmul.f32 %v6266_v29, %v2009_v15  ;;  %v2057_v56 = vadd.f32 %v6274_v4, %v2034_v48 }
 0x26c   : > { %v2056_v35 = vadd.f32 %v6274_v4, %v2033_v52 }
 0x26d   : > { %v1596_v2 = vpop.permute.xlu1 %1595  ;;  %v2055_v49 = vadd.f32 %v6274_v4, %v2032_v11 }
 0x26e   : > { %v1667_v63 = vpop.permute.xlu0 %1666  ;;  %v1775_v6 = vsel %vm1141_vm11, %v1767_v32, %v1596_v2 }
 0x26f   : > { %v1797_v10 = vsel %vm1168_vm14, %v1789_v39, %v1667_v63 }
 0x270   : > { %3810 = vmatmul.mubr.msk.f32.gmra.mrb[12].mxu0 %vm1815_vm15, %v1797_v10 }
 0x271   : > { %v1621_v42 = vpop.permute.xlu1 %1620 }
 0x272   : > { %v1619_v25 = vpop.permute.xlu0 %1618  ;;  %v1783_v59 = vsel %vm1150_vm12, %v1775_v6, %v1621_v42 }
 0x273   : > { %v1782_v17 = vsel %vm1150_vm12, %v1774_v28, %v1619_v25 }
 0x275   : > { %v1646_v22 = vpop.permute.xlu1 %1645 }
 0x276   : > { %v1644_v45 = vpop.permute.xlu0 %1643  ;;  %v1791_v30 = vsel %vm1159_vm13, %v1783_v59, %v1646_v22 }
 0x277   : > { %v6233_v55 = vpop.f32.mrb[4].mxu0  ;;  %v1790_v0 = vsel %vm1159_vm13, %v1782_v17, %v1644_v45 }
 0x278   : > { %v6237_v9 = vpop.f32.mrb[5].mxu0  ;;  %v1956_v19 = vadd.f32 %v6233_v55, %v6257_v60  ;;  %v2790_v55 = vld [vmem:[%s7206_s6 + $0x80] sm:$0xff] }
 0x279   : > { %v1671_v26 = vpop.permute.xlu1 %1670  ;;  %v1951_v23 = vadd.f32 %v6257_v60, %v6237_v9  ;;  %v2791_v9 = vld [vmem:[%s7206_s6 + $0x88] sm:$0xff] }
 0x27a   : > { %v1669_v20 = vpop.permute.xlu0 %1668  ;;  %v1799_v13 = vsel %vm1168_vm14, %v1791_v30, %v1671_v26  ;;  %v2014_v15 = vmax.f32 %v1956_v19, 0.0 }
 0x27b   : > { %v1798_v8 = vsel %vm1168_vm14, %v1790_v0, %v1669_v20 }
 0x27c   : > { %3812 = vmatprep.mubr.msk.f32.mxu0 %vm1815_vm15, %v1798_v8 }
 0x27d   : > { %3813 = vmatmul.mubr.msk.f32.gmra.mrb[14].mxu0 %vm1815_vm15, %v1799_v13 }
 0x2af   : > { %v6245_v27 = vpop.f32.mrb[6].mxu0 }
 0x2b0   : > { %v6247_v33 = vpop.f32.mrb[7].mxu0 }
 0x2f7   : > { %v3805_v40 = vpop.f32.mrb[8].mxu0 }
 0x2f8   : > { %v1976_v54 = vadd.f32 %v3805_v40, %v6257_v60  ;;  %v1970_v61 = vpop.f32.mrb[9].mxu0  ;;  %v2013_v40 = vmax.f32 %v1951_v23, 0.0  ;;  %v2781_v23 = vld [vmem:[%s7206_s6 + $0x38] sm:$0xff] }
 0x2f9   : > { %v1971_v24 = vadd.f32 %v6257_v60, %v1970_v61 }
 0x2fa   : > { %v2018_v43 = vmax.f32 %v1976_v54, 0.0 }
 0x2fb   : > { %v2017_v37 = vmax.f32 %v1971_v24, 0.0 }
 0x2fc   : > { %v2041_v16 = vmul.f32 %v6266_v29, %v2018_v43  ;;  %v2037_v43 = vmul.f32 %v6266_v29, %v2014_v15 }
 0x2fd   : > { %v2040_v50 = vmul.f32 %v6266_v29, %v2017_v37  ;;  %v2036_v37 = vmul.f32 %v6266_v29, %v2013_v40 }
 0x2fe   : > { %v2064_v44 = vadd.f32 %v6274_v4, %v2041_v16 }
 0x2ff   : > { %v2063_v39 = vadd.f32 %v6274_v4, %v2040_v50  ;;  %v3850_v50 = vpack.c.bf16 %v2791_v9, %v2790_v55  ;;  %v2823_v9 = vld [vmem:[%s7206_s6 + $0x188] sm:$0xff] }
 0x300   : > { %v2072_v63 = vmax.f32 %v2056_v35, %v2064_v44 }
 0x301   : > { %v2071_v2 = vmax.f32 %v2055_v49, %v2063_v39  ;;  %3851 = vmatprep.subr.bf16.mxu1 %v3850_v50  ;;  %v2060_v49 = vadd.f32 %v6274_v4, %v2037_v43 }
 0x302   : > { %v2089_v36 = vrot.slane %v2072_v63, 1  ;;  %v2774_v63 = vld [vmem:[%s7206_s6] sm:$0xff] }
 0x303   : > { %v2088_v21 = vrot.slane %v2071_v2, 1  ;;  %v2775_v2 = vld [vmem:[%s7206_s6 + $0x8] sm:$0xff] }
 0x304   : > { %v3852_v34 = vpack.c.bf16 %v2775_v2, %v2774_v63 }
 0x305   : > { %v2090_v10 = vsel %vm2087_vm1, %v2088_v21, %v2089_v36  ;;  %v2112_v58 = vsel %vm2087_vm1, 0.0, %v2088_v21  ;;  %v2059_v21 = vadd.f32 %v6274_v4, %v2036_v37  ;;  %v2782_v37 = vld [vmem:[%s7206_s6 + $0x40] sm:$0xff] }
 0x306   : > { %2115 = vst.msk [vmem:[#allocation2 + $0x8] sm:$0xff] %vm1069_vm3, %v2112_v58  ;;  %2116 = vst.msk [vmem:[#allocation2 + $0x10] sm:$0xff] %vm1069_vm3, %v2090_v10  ;;  %v1966_v10 = vadd.f32 %v6245_v27, %v6257_v60  ;;  %3853 = vmatpush3.bf16.msra.mxu1 %v3852_v34 }
 0x322   : > { %v3808_v38 = vpop.f32.mrb[10].mxu0 }
 0x323   : > { %v1986_v25 = vadd.f32 %v3808_v38, %v6257_v60  ;;  %v1980_v42 = vpop.f32.mrb[11].mxu0  ;;  %v1961_v38 = vadd.f32 %v6257_v60, %v6247_v33 }
 0x324   : > { %v1981_v3 = vadd.f32 %v6257_v60, %v1980_v42 }
 0x325   : > { %v2020_v62 = vmax.f32 %v1986_v25, 0.0 }
 0x326   : > { %v2019_v5 = vmax.f32 %v1981_v3, 0.0  ;;  %v3856_v3 = vpack.c.bf16 %v2777_v12, %v2776_v46  ;;  %v2806_v46 = vld [vmem:[%s7206_s6 + $0x100] sm:$0xff]  ;;  %v2807_v12 = vld [vmem:[%s7206_s6 + $0x108] sm:$0xff] }
 0x327   : > { %v2043_v7 = vmul.f32 %v6266_v29, %v2020_v62  ;;  %v2016_v62 = vmax.f32 %v1966_v10, 0.0 }
 0x328   : > { %v2042_v53 = vmul.f32 %v6266_v29, %v2019_v5  ;;  %v2015_v5 = vmax.f32 %v1961_v38, 0.0 }
 0x329   : > { %v2066_v31 = vadd.f32 %v6274_v4, %v2043_v7 }
 0x32a   : > { %v2065_v45 = vadd.f32 %v6274_v4, %v2042_v53 }
 0x32b   : > { %v2074_v22 = vmax.f32 %v2058_v18, %v2066_v31 }
 0x32c   : > { %v2073_v47 = vmax.f32 %v2057_v56, %v2065_v45  ;;  %v2794_v56 = vld [vmem:[%s7206_s6 + $0xa0] sm:$0xff]  ;;  %v2795_v45 = vld [vmem:[%s7206_s6 + $0xa8] sm:$0xff] }
 0x32d   : > { %v2093_v32 = vrot.slane %v2074_v22, 1  ;;  %v2778_v22 = vld [vmem:[%s7206_s6 + $0x20] sm:$0xff] }
 0x32e   : > { %v2091_v28 = vrot.slane %v2073_v47, 1 }
 0x330   : > { %v2092_v6 = vsel %vm2087_vm1, %v2089_v36, %v2091_v28  ;;  %v2094_v17 = vsel %vm2087_vm1, %v2091_v28, %v2093_v32  ;;  %v2792_v36 = vld [vmem:[%s7206_s6 + $0x90] sm:$0xff]  ;;  %v2779_v28 = vld [vmem:[%s7206_s6 + $0x28] sm:$0xff] }
 0x331   : > { %2117 = vst.msk [vmem:[#allocation2 + $0x18] sm:$0xff] %vm1069_vm3, %v2092_v6  ;;  %2118 = vst.msk [vmem:[#allocation2 + $0x20] sm:$0xff] %vm1069_vm3, %v2094_v17  ;;  %v3854_v27 = vpack.c.bf16 %v2793_v41, %v2792_v36  ;;  %v2039_v6 = vmul.f32 %v6266_v29, %v2016_v62 }
 0x333   : > { %3855 = vmatprep.subr.bf16.mxu1 %v3854_v27  ;;  %v2062_v15 = vadd.f32 %v6274_v4, %v2039_v6  ;;  %v2802_v6 = vld [vmem:[%s7206_s6 + $0xe0] sm:$0xff] }
 0x334   : > { %3857 = vmatpush3.bf16.msra.mxu1 %v3856_v3 }
 0x338   : > { %v2135_v59 = vld [vmem:[#allocation2 + $0x2] ss:$4 sm:$0xff]  ;;  %v2131_v30 = vld [vmem:[#allocation2 + $0x1] ss:$4 sm:$0xff]  ;;  %v2139_v8 = vld [vmem:[#allocation2 + $0x3] ss:$4 sm:$0xff] }
 0x339   : > { %v2167_v0 = vld [vmem:[#allocation2 + $0xa] ss:$4 sm:$0xff]  ;;  %v6305_v26 = vld [vmem:[#allocation2 + $0x9] ss:$4 sm:$0xff]  ;;  %v2171_v13 = vld [vmem:[#allocation2 + $0xb] ss:$4 sm:$0xff] }
 0x33a   : > { %v4057_v20 = vpack.i.bf16 %v2135_v59, %v2167_v0  ;;  %v4052_v57 = vpack.i.bf16 %v2131_v30, %v6305_v26  ;;  %v6308_v1 = vpack.i.bf16 %v2139_v8, %v2171_v13  ;;  %v3860_v59 = vpack.c.bf16 %v2779_v28, %v2778_v22  ;;  %v2797_v8 = vld [vmem:[%s7206_s6 + $0xb8] sm:$0xff]  ;;  %v2780_v13 = vld [vmem:[%s7206_s6 + $0x30] sm:$0xff] }
 0x33b   : > { %v2038_v0 = vmul.f32 %v6266_v29, %v2015_v5  ;;  %v2147_v3 = vld [vmem:[#allocation2 + $0x5] ss:$4 sm:$0xff] }
 0x33c   : > { %4058 = vrot.lane.b32.xlu1 %v4057_v20, %s7298_s20  ;;  %4053 = vrot.lane.b32.xlu0 %v4052_v57, %s7297_s17  ;;  %v2800_v5 = vld [vmem:[%s7206_s6 + $0xd0] sm:$0xff]  ;;  %v2809_v22 = vld [vmem:[%s7206_s6 + $0x118] sm:$0xff] }
 0x33d   : > { %v2061_v43 = vadd.f32 %v6274_v4, %v2038_v0 }
 0x340   : > { %4063 = vrot.lane.b32.xlu0 %v6308_v1, %s7302_s24 }
 0x343   : > { %v3811_v54 = vpop.f32.mrb[12].mxu0 }
 0x344   : > { %v1996_v61 = vadd.f32 %v3811_v54, %v6257_v60  ;;  %v1990_v24 = vpop.f32.mrb[13].mxu0  ;;  %v2143_v54 = vld [vmem:[#allocation2 + $0x4] ss:$4 sm:$0xff] }
 0x345   : > { %v1991_v52 = vadd.f32 %v6257_v60, %v1990_v24  ;;  %v2798_v24 = vld [vmem:[%s7206_s6 + $0xc0] sm:$0xff] }
 0x346   : > { %v2022_v11 = vmax.f32 %v1996_v61, 0.0  ;;  %v3864_v61 = vpack.c.bf16 %v2781_v23, %v2780_v13 }
 0x347   : > { %v2021_v16 = vmax.f32 %v1991_v52, 0.0  ;;  %v2799_v52 = vld [vmem:[%s7206_s6 + $0xc8] sm:$0xff] }
 0x348   : > { %v2045_v35 = vmul.f32 %v6266_v29, %v2022_v11  ;;  %v3866_v55 = vpack.c.bf16 %v2799_v52, %v2798_v24 }
 0x349   : > { %v2044_v44 = vmul.f32 %v6266_v29, %v2021_v16  ;;  %v2783_v16 = vld [vmem:[%s7206_s6 + $0x48] sm:$0xff] }
 0x34a   : > { %v2068_v39 = vadd.f32 %v6274_v4, %v2045_v35 }
 0x34b   : > { %v2067_v58 = vadd.f32 %v6274_v4, %v2044_v44 }
 0x34c   : > { %v2076_v25 = vmax.f32 %v2060_v49, %v2068_v39  ;;  %v3868_v39 = vpack.c.bf16 %v2783_v16, %v2782_v37 }
 0x34d   : > { %v2075_v42 = vmax.f32 %v2059_v21, %v2067_v58 }
 0x34e   : > { %v6356_v14 = vrot.slane %v2076_v25, 1 }
 0x34f   : > { %v2095_v48 = vrot.slane %v2075_v42, 1 }
 0x350   : > { %v3814_v7 = vpop.f32.mrb[14].mxu0 }
 0x351   : > { %v2096_v53 = vsel %vm2087_vm1, %v2093_v32, %v2095_v48  ;;  %v2098_v18 = vsel %vm2087_vm1, %v2095_v48, %v6356_v14  ;;  %v2006_v31 = vadd.f32 %v3814_v7, %v6257_v60  ;;  %v2000_v33 = vpop.f32.mrb[15].mxu0  ;;  %v3858_v32 = vpack.c.bf16 %v2795_v45, %v2794_v56  ;;  %v2785_v56 = vld [vmem:[%s7206_s6 + $0x58] sm:$0xff]  ;;  %v2808_v45 = vld [vmem:[%s7206_s6 + $0x110] sm:$0xff] }
 0x352   : > { %2119 = vst.msk [vmem:[#allocation2 + $0x28] sm:$0xff] %vm1069_vm3, %v2096_v53  ;;  %2120 = vst.msk [vmem:[#allocation2 + $0x30] sm:$0xff] %vm1069_vm3, %v2098_v18  ;;  %v2001_v47 = vadd.f32 %v6257_v60, %v2000_v33  ;;  %v2796_v60 = vld [vmem:[%s7206_s6 + $0xb0] sm:$0xff]  ;;  %v3884_v48 = vpack.c.bf16 %v2807_v12, %v2806_v46  ;;  %v2825_v18 = vld [vmem:[%s7206_s6 + $0x198] sm:$0xff]  ;;  %v3888_v28 = vpack.c.bf16 %v2809_v22, %v2808_v45 }
 0x353   : > { %v2024_v17 = vmax.f32 %v2006_v31, 0.0  ;;  %3859 = vmatprep.subr.bf16.mxu1 %v3858_v32  ;;  %v3862_v19 = vpack.c.bf16 %v2797_v8, %v2796_v60  ;;  %v2824_v53 = vld [vmem:[%s7206_s6 + $0x190] sm:$0xff]  ;;  %v2787_v60 = vld [vmem:[%s7206_s6 + $0x68] sm:$0xff]  ;;  %v2813_v22 = vld [vmem:[%s7206_s6 + $0x138] sm:$0xff] }
 0x354   : > { %v2023_v30 = vmax.f32 %v2001_v47, 0.0  ;;  %3861 = vmatpush3.bf16.msra.mxu1 %v3860_v59  ;;  %v2784_v31 = vld [vmem:[%s7206_s6 + $0x50] sm:$0xff]  ;;  %v3886_v33 = vpack.c.bf16 %v2825_v18, %v2824_v53  ;;  %v2826_v59 = vld [vmem:[%s7206_s6 + $0x1a0] sm:$0xff]  ;;  %v2829_v53 = vld [vmem:[%s7206_s6 + $0x1b8] sm:$0xff] }
 0x355   : > { %v2047_v20 = vmul.f32 %v6266_v29, %v2024_v17  ;;  %3863 = vmatprep.subr.bf16.mxu1 %v3862_v19  ;;  %v3872_v32 = vpack.c.bf16 %v2785_v56, %v2784_v31  ;;  %v2803_v17 = vld [vmem:[%s7206_s6 + $0xe8] sm:$0xff]  ;;  %v2804_v12 = vld [vmem:[%s7206_s6 + $0xf0] sm:$0xff]  ;;  %v2789_v56 = vld [vmem:[%s7206_s6 + $0x78] sm:$0xff] }
 0x356   : > { %v2046_v57 = vmul.f32 %v6266_v29, %v2023_v30  ;;  %v2822_v29 = vld [vmem:[%s7206_s6 + $0x180] sm:$0xff]  ;;  %v3874_v0 = vpack.c.bf16 %v2803_v17, %v2802_v6  ;;  %v2827_v30 = vld [vmem:[%s7206_s6 + $0x1a8] sm:$0xff]  ;;  %v2788_v18 = vld [vmem:[%s7206_s6 + $0x70] sm:$0xff] }
 0x357   : > { %v2070_v40 = vadd.f32 %v6274_v4, %v2047_v20  ;;  %v3882_v49 = vpack.c.bf16 %v2823_v9, %v2822_v29  ;;  %v2786_v20 = vld [vmem:[%s7206_s6 + $0x60] sm:$0xff]  ;;  %v3890_v8 = vpack.c.bf16 %v2827_v30, %v2826_v59  ;;  %v2811_v19 = vld [vmem:[%s7206_s6 + $0x128] sm:$0xff]  ;;  %v2812_v45 = vld [vmem:[%s7206_s6 + $0x130] sm:$0xff] }
 0x358   : > { %v2069_v11 = vadd.f32 %v6274_v4, %v2046_v57  ;;  %3865 = vmatpush3.bf16.msra.mxu1 %v3864_v61  ;;  %v3876_v13 = vpack.c.bf16 %v2787_v60, %v2786_v20  ;;  %v2810_v57 = vld [vmem:[%s7206_s6 + $0x120] sm:$0xff]  ;;  %v2831_v17 = vld [vmem:[%s7206_s6 + $0x1c8] sm:$0xff]  ;;  %v2832_v20 = vld [vmem:[%s7206_s6 + $0x1d0] sm:$0xff] }
 0x359   : > { %v2078_v50 = vmax.f32 %v2062_v15, %v2070_v40  ;;  %v6415_v35 = vld [vmem:[#allocation2 + $0x11] ss:$4 sm:$0xff]  ;;  %v2175_v4 = vld [vmem:[#allocation2 + $0xc] ss:$4 sm:$0xff]  ;;  %3867 = vmatprep.subr.bf16.mxu1 %v3866_v55  ;;  %v6423_v10 = vld [vmem:[#allocation2 + $0x12] ss:$4 sm:$0xff]  ;;  %3883 = vmatprep.subr.bf16.mxu0 %v3882_v49 }
 0x35a   : > { %v6417_v44 = vld [vmem:[#allocation2 + $0x19] ss:$4 sm:$0xff]  ;;  %v2077_v63 = vmax.f32 %v2061_v43, %v2069_v11  ;;  %v6421_v36 = vpack.i.bf16 %v2143_v54, %v2175_v4  ;;  %v6425_v58 = vld [vmem:[#allocation2 + $0x1a] ss:$4 sm:$0xff]  ;;  %v4257_v41 = vpack.i.bf16 %v6305_v26, %v6415_v35  ;;  %3885 = vmatpush3.bf16.msra.mxu0 %v3884_v48  ;;  %v3892_v54 = vpack.c.bf16 %v2811_v19, %v2810_v57  ;;  %v2203_v11 = vld [vmem:[#allocation2 + $0x13] ss:$4 sm:$0xff] }
 0x35b   : > { %v4067_v2 = vpack.i.bf16 %v6415_v35, %v6417_v44  ;;  %v2101_v21 = vrot.slane %v2078_v50, 1  ;;  %v4077_v42 = vpack.i.bf16 %v6423_v10, %v6425_v58  ;;  %v2179_v62 = vld [vmem:[#allocation2 + $0xd] ss:$4 sm:$0xff]  ;;  %3887 = vmatprep.subr.bf16.mxu0 %v3886_v33  ;;  %v2235_v55 = vld [vmem:[#allocation2 + $0x1b] ss:$4 sm:$0xff] }
 0x35c   : > { %v2099_v34 = vrot.slane %v2077_v63, 1  ;;  %4073 = vrot.lane.b32.xlu0 %v6421_v36, %s4444_s0  ;;  %3869 = vmatpush3.bf16.msra.mxu1 %v3868_v39  ;;  %v6472_v47 = vpack.i.bf16 %v2147_v3, %v2179_v62  ;;  %v2207_v37 = vld [vmem:[#allocation2 + $0x14] ss:$4 sm:$0xff]  ;;  %v6522_v4 = vpack.i.bf16 %v2203_v11, %v2235_v55  ;;  %v2187_v49 = vld [vmem:[#allocation2 + $0xf] ss:$4 sm:$0xff] }
 0x35d   : > { %4068 = vrot.lane.b32.xlu1 %v4067_v2, %s7297_s17  ;;  %v2113_v38 = vsel %vm2087_vm1, %v2101_v21, 0.0  ;;  %v2183_v39 = vld [vmem:[#allocation2 + $0xe] ss:$4 sm:$0xff]  ;;  %v2155_v63 = vld [vmem:[#allocation2 + $0x7] ss:$4 sm:$0xff] }
 0x35e   : > { %2123 = vst.msk [vmem:[#allocation2 + $0x48] sm:$0xff] %vm1069_vm3, %v2113_v38  ;;  %v2100_v25 = vsel %vm2087_vm1, %v6356_v14, %v2099_v34  ;;  %v2102_v27 = vsel %vm2087_vm1, %v2099_v34, %v2101_v21  ;;  %v2801_v14 = vld [vmem:[%s7206_s6 + $0xd8] sm:$0xff]  ;;  %3889 = vmatpush3.bf16.msra.mxu0 %v3888_v28  ;;  %v6528_v2 = vpack.i.bf16 %v2155_v63, %v2187_v49  ;;  %v2830_v6 = vld [vmem:[%s7206_s6 + $0x1c0] sm:$0xff]  ;;  %v2815_v30 = vld [vmem:[%s7206_s6 + $0x148] sm:$0xff] }
 0x35f   : > { %2121 = vst.msk [vmem:[#allocation2 + $0x38] sm:$0xff] %vm1069_vm3, %v2100_v25  ;;  %2122 = vst.msk [vmem:[#allocation2 + $0x40] sm:$0xff] %vm1069_vm3, %v2102_v27  ;;  %v3870_v7 = vpack.c.bf16 %v2801_v14, %v2800_v5  ;;  %3891 = vmatprep.subr.bf16.mxu0 %v3890_v8  ;;  %v2151_v21 = vld [vmem:[#allocation2 + $0x6] ss:$4 sm:$0xff]  ;;  %v2211_v38 = vld [vmem:[#allocation2 + $0x15] ss:$4 sm:$0xff]  ;;  %v3896_v28 = vpack.c.bf16 %v2813_v22, %v2812_v45 }
 0x360   : > { %v6530_v34 = vpack.i.bf16 %v2151_v21, %v2183_v39  ;;  %v2805_v62 = vld [vmem:[%s7206_s6 + $0xf8] sm:$0xff]  ;;  %v2814_v59 = vld [vmem:[%s7206_s6 + $0x140] sm:$0xff]  ;;  %v2835_v49 = vld [vmem:[%s7206_s6 + $0x1e8] sm:$0xff] }
 0x361   : > { %4078 = vrot.lane.b32.xlu1 %v4077_v42, %s7298_s20  ;;  %3871 = vmatprep.subr.bf16.mxu1 %v3870_v7  ;;  %v3878_v14 = vpack.c.bf16 %v2805_v62, %v2804_v12  ;;  %v2828_v7 = vld [vmem:[%s7206_s6 + $0x1b0] sm:$0xff]  ;;  %v2833_v60 = vld [vmem:[%s7206_s6 + $0x1d8] sm:$0xff]  ;;  %v3900_v19 = vpack.c.bf16 %v2815_v30, %v2814_v59 }
 0x362   : > { %3873 = vmatpush3.bf16.msra.mxu1 %v3872_v32  ;;  %3893 = vmatpush3.bf16.msra.mxu0 %v3892_v54  ;;  %v3894_v33 = vpack.c.bf16 %v2829_v53, %v2828_v7  ;;  %v3880_v32 = vpack.c.bf16 %v2789_v56, %v2788_v18  ;;  %v2817_v11 = vld [vmem:[%s7206_s6 + $0x158] sm:$0xff]  ;;  %v2836_v62 = vld [vmem:[%s7206_s6 + $0x1f0] sm:$0xff] }
 0x363   : > { %3875 = vmatprep.subr.bf16.mxu1 %v3874_v0  ;;  %v3898_v0 = vpack.c.bf16 %v2831_v17, %v2830_v6  ;;  %v2219_v7 = vld [vmem:[#allocation2 + $0x17] ss:$4 sm:$0xff]  ;;  %v2215_v18 = vld [vmem:[#allocation2 + $0x16] ss:$4 sm:$0xff] }
 0x364   : > { %3895 = vmatprep.subr.bf16.mxu0 %v3894_v33  ;;  %v2821_v6 = vld [vmem:[%s7206_s6 + $0x178] sm:$0xff] }
 0x365   : > { %4088 = vrot.lane.b32.xlu1 %v6472_v47, %s4445_s27 }
 0x366   : > { %v6500_v23 = vld [vmem:[#allocation2 + $0x22] ss:$4 sm:$0xff]  ;;  %v6504_v40 = vld [vmem:[#allocation2 + $0x21] ss:$4 sm:$0xff]  ;;  %v2239_v43 = vld [vmem:[#allocation2 + $0x1c] ss:$4 sm:$0xff]  ;;  %3877 = vmatpush3.bf16.msra.mxu1 %v3876_v13  ;;  %3897 = vmatpush3.bf16.msra.mxu0 %v3896_v28 }
 0x367   : > { %v6502_v15 = vld [vmem:[#allocation2 + $0x2a] ss:$4 sm:$0xff]  ;;  %v6508_v24 = vld [vmem:[#allocation2 + $0x29] ss:$4 sm:$0xff]  ;;  %v4297_v52 = vpack.i.bf16 %v6417_v44, %v6504_v40  ;;  %v6520_v50 = vpack.i.bf16 %v2207_v37, %v2239_v43  ;;  %v2141_v25 = vld [vmem:[#allocation2 + $0x23] ss:$4 sm:$0xff]  ;;  %3879 = vmatprep.subr.bf16.mxu1 %v3878_v14  ;;  %3899 = vmatprep.subr.bf16.mxu0 %v3898_v0 }
 0x368   : > { %v4097_v61 = vpack.i.bf16 %v6500_v23, %v6502_v15  ;;  %v4082_v29 = vpack.i.bf16 %v6504_v40, %v6508_v24  ;;  %v6515_v9 = vld [vmem:[#allocation2 + $0x31] ss:$4 sm:$0xff]  ;;  %v2173_v27 = vld [vmem:[#allocation2 + $0x2b] ss:$4 sm:$0xff]  ;;  %v6539_v42 = vld [vmem:[#allocation2 + $0x32] ss:$4 sm:$0xff] }
 0x369   : > { %v4312_v16 = vpack.i.bf16 %v6508_v24, %v6515_v9  ;;  %v2243_v46 = vld [vmem:[#allocation2 + $0x1d] ss:$4 sm:$0xff]  ;;  %v6541_v3 = vld [vmem:[#allocation2 + $0x3a] ss:$4 sm:$0xff]  ;;  %v6559_v31 = vpack.i.bf16 %v2141_v25, %v2173_v27  ;;  %v2177_v55 = vld [vmem:[#allocation2 + $0x2c] ss:$4 sm:$0xff] }
 0x36a   : > { %4098 = vrot.lane.b32.xlu1 %v4097_v61, %s7298_s20  ;;  %4083 = vrot.lane.b32.xlu0 %v4082_v29, %s7297_s17  ;;  %v6546_v48 = vpack.i.bf16 %v2211_v38, %v2243_v46  ;;  %v6548_v5 = vld [vmem:[#allocation2 + $0x39] ss:$4 sm:$0xff]  ;;  %v4137_v8 = vpack.i.bf16 %v6539_v42, %v6541_v3  ;;  %v2145_v61 = vld [vmem:[#allocation2 + $0x24] ss:$4 sm:$0xff]  ;;  %v3902_v29 = vpack.c.bf16 %v2833_v60, %v2832_v20  ;;  %v2251_v46 = vld [vmem:[#allocation2 + $0x1f] ss:$4 sm:$0xff] }
 0x36b   : > { %v2149_v13 = vld [vmem:[#allocation2 + $0x25] ss:$4 sm:$0xff]  ;;  %3881 = vmatpush3.bf16.msra.mxu1 %v3880_v32  ;;  %v4122_v54 = vpack.i.bf16 %v6515_v9, %v6548_v5  ;;  %3901 = vmatpush3.bf16.msra.mxu0 %v3900_v19  ;;  %v4132_v21 = vpack.i.bf16 %v2145_v61, %v2177_v55  ;;  %v2247_v27 = vld [vmem:[#allocation2 + $0x1e] ss:$4 sm:$0xff]  ;;  %v4157_v53 = vpack.i.bf16 %v2219_v7, %v2251_v46  ;;  %v2205_v17 = vld [vmem:[#allocation2 + $0x33] ss:$4 sm:$0xff] }
 0x36c   : > { %v2181_v57 = vld [vmem:[#allocation2 + $0x2d] ss:$4 sm:$0xff]  ;;  %3903 = vmatprep.subr.bf16.mxu0 %v3902_v29  ;;  %v2153_v33 = vld [vmem:[#allocation2 + $0x26] ss:$4 sm:$0xff]  ;;  %v4142_v45 = vpack.i.bf16 %v2215_v18, %v2247_v27  ;;  %v2237_v59 = vld [vmem:[#allocation2 + $0x3b] ss:$4 sm:$0xff] }
 0x36d   : > { %v2816_v43 = vld [vmem:[%s7206_s6 + $0x150] sm:$0xff]  ;;  %v2834_v37 = vld [vmem:[%s7206_s6 + $0x1e0] sm:$0xff]  ;;  %v6610_v39 = vpack.i.bf16 %v2149_v13, %v2181_v57  ;;  %v2819_v25 = vld [vmem:[%s7206_s6 + $0x168] sm:$0xff]  ;;  %v4152_v20 = vpack.i.bf16 %v2205_v17, %v2237_v59 }
 0x36e   : > { %4108 = vrot.lane.b32.xlu1 %v6520_v50, %s4444_s0  ;;  %4093 = vrot.lane.b32.xlu0 %v6522_v4, %s7302_s24  ;;  %v3904_v63 = vpack.c.bf16 %v2817_v11, %v2816_v43  ;;  %v3906_v12 = vpack.c.bf16 %v2835_v49, %v2834_v37  ;;  %v2818_v38 = vld [vmem:[%s7206_s6 + $0x160] sm:$0xff]  ;;  %v2837_v14 = vld [vmem:[%s7206_s6 + $0x1f8] sm:$0xff] }
 0x36f   : > { %v3908_v56 = vpack.c.bf16 %v2819_v25, %v2818_v38  ;;  %v2185_v22 = vld [vmem:[#allocation2 + $0x2e] ss:$4 sm:$0xff]  ;;  %v3910_v32 = vpack.c.bf16 %v2837_v14, %v2836_v62  ;;  %v2213_v60 = vld [vmem:[#allocation2 + $0x35] ss:$4 sm:$0xff]  ;;  %v2209_v13 = vld [vmem:[#allocation2 + $0x34] ss:$4 sm:$0xff] }
 0x370   : > { %3905 = vmatpush3.bf16.msra.mxu0 %v3904_v63  ;;  %v2820_v28 = vld [vmem:[%s7206_s6 + $0x170] sm:$0xff]  ;;  %v4167_v0 = vpack.i.bf16 %v2153_v33, %v2185_v22 }
 0x371   : > { %3907 = vmatprep.subr.bf16.mxu0 %v3906_v12  ;;  %v3912_v30 = vpack.c.bf16 %v2821_v6, %v2820_v28  ;;  %v2241_v57 = vld [vmem:[#allocation2 + $0x3c] ss:$4 sm:$0xff]  ;;  %v2157_v61 = vld [vmem:[#allocation2 + $0x27] ss:$4 sm:$0xff]  ;;  %v2249_v55 = vld [vmem:[#allocation2 + $0x3e] ss:$4 sm:$0xff] }
 0x372   : > { %4118 = vrot.lane.b32.xlu1 %v6528_v2, %s4446_s15  ;;  %4103 = vrot.lane.b32.xlu0 %v6530_v34, %s4447_s16  ;;  %v2189_v29 = vld [vmem:[#allocation2 + $0x2f] ss:$4 sm:$0xff]  ;;  %v6689_v35 = vld [vmem:[#allocation2 + $0x28] ss:$4 sm:$0xff] }
 0x373   : > { %v4182_v43 = vpack.i.bf16 %v2157_v61, %v2189_v29  ;;  %v2253_v11 = vld [vmem:[#allocation2 + $0x3f] ss:$4 sm:$0xff]  ;;  %v6700_v40 = vld [vmem:[#allocation2 + $0x38] ss:$4 sm:$0xff] }
 0x374   : > { %3909 = vmatpush3.bf16.msra.mxu0 %v3908_v56  ;;  %v2127_v9 = vld [vmem:[#allocation2] ss:$4 sm:$0xff] }
 0x375   : > { %3911 = vmatprep.subr.bf16.mxu0 %v3910_v32 }
 0x376   : > { %4128 = vrot.lane.b32.xlu1 %v6546_v48, %s4445_s27  ;;  %4113 = vrot.lane.b32.xlu0 %v6559_v31, %s7302_s24 }
 0x378   : > { %3913 = vmatpush3.bf16.msra.mxu0 %v3912_v30 }
 0x37a   : > { %4138 = vrot.lane.b32.xlu1 %v4137_v8, %s7298_s20  ;;  %4123 = vrot.lane.b32.xlu0 %v4122_v54, %s7297_s17  ;;  %v2245_v8 = vld [vmem:[#allocation2 + $0x3d] ss:$4 sm:$0xff]  ;;  %v4172_v54 = vpack.i.bf16 %v2209_v13, %v2241_v57 }
 0x37b   : > { %v4187_v19 = vpack.i.bf16 %v2213_v60, %v2245_v8 }
 0x37e   : > { %4148 = vrot.lane.b32.xlu1 %v6610_v39, %s4445_s27  ;;  %4133 = vrot.lane.b32.xlu0 %v4132_v21, %s4444_s0 }
 0x382   : > { %4158 = vrot.lane.b32.xlu1 %v4157_v53, %s4446_s15  ;;  %4143 = vrot.lane.b32.xlu0 %v4142_v45, %s4447_s16 }
 0x386   : > { %4168 = vrot.lane.b32.xlu1 %v4167_v0, %s4447_s16  ;;  %4153 = vrot.lane.b32.xlu0 %v4152_v20, %s7302_s24 }
 0x38a   : > { %4178 = vrot.lane.b32.xlu1 %v6421_v36, %s7298_s20  ;;  %4163 = vrot.lane.b32.xlu0 %v6308_v1, %s7297_s17  ;;  %v2221_v36 = vld [vmem:[#allocation2 + $0x37] ss:$4 sm:$0xff]  ;;  %v2217_v1 = vld [vmem:[#allocation2 + $0x36] ss:$4 sm:$0xff] }
 0x38b   : > { %v4217_v37 = vpack.i.bf16 %v2221_v36, %v2253_v11  ;;  %v4202_v49 = vpack.i.bf16 %v2217_v1, %v2249_v55 }
 0x38e   : > { %4188 = vrot.lane.b32.xlu1 %v4187_v19, %s4445_s27  ;;  %4173 = vrot.lane.b32.xlu0 %v4172_v54, %s4444_s0 }
 0x392   : > { %4198 = vrot.lane.b32.xlu1 %v6522_v4, %s7297_s17  ;;  %4183 = vrot.lane.b32.xlu0 %v4182_v43, %s4446_s15  ;;  %v2159_v4 = vld [vmem:[#allocation2 + $0x8] ss:$4 sm:$0xff] }
 0x396   : > { %4208 = vrot.lane.b32.xlu1 %v6530_v34, %s4444_s0  ;;  %4193 = vrot.lane.b32.xlu0 %v6472_v47, %s7302_s24  ;;  %v6660_v47 = vld [vmem:[#allocation2 + $0x10] ss:$4 sm:$0xff] }
 0x397   : > { %v4242_v34 = vpack.i.bf16 %v2159_v4, %v6660_v47 }
 0x39a   : > { %4218 = vrot.lane.b32.xlu1 %v4217_v37, %s4446_s15  ;;  %4203 = vrot.lane.b32.xlu0 %v4202_v49, %s4447_s16 }
 0x39e   : > { %4228 = vrot.lane.b32.xlu1 %v6528_v2, %s4445_s27  ;;  %4213 = vrot.lane.b32.xlu0 %v6520_v50, %s7298_s20  ;;  %v6676_v50 = vld [vmem:[#allocation2 + $0x20] ss:$4 sm:$0xff] }
 0x39f   : > { %v6679_v2 = vld [vmem:[#allocation2 + $0x18] ss:$4 sm:$0xff] }
 0x3a0   : > { %v4282_v26 = vpack.i.bf16 %v6679_v2, %v6676_v50 }
 0x3a2   : > { %4238 = vrot.lane.b32.xlu1 %v4132_v21, %s7298_s20  ;;  %4223 = vrot.lane.b32.xlu0 %v6559_v31, %s7297_s17  ;;  %v2540_v31 = vld [vmem:[#allocation2 + $0x41] ss:$4 sm:$0xff] }
 0x3a3   : > { %v4327_v44 = vpack.i.bf16 %v6548_v5, %v2540_v31 }
 0x3a6   : > { %4248 = vrot.lane.b32.xlu1 %v4142_v45, %s4444_s0  ;;  %4233 = vrot.lane.b32.xlu0 %v6546_v48, %s7302_s24 }
 0x3aa   : > { %4258 = vrot.lane.b32.xlu1 %v4257_v41, %s4446_s15  ;;  %4243 = vrot.lane.b32.xlu0 %v4242_v34, %s4447_s16  ;;  %v6691_v41 = vld [vmem:[#allocation2 + $0x30] ss:$4 sm:$0xff] }
 0x3ab   : > { %v4302_v48 = vpack.i.bf16 %v6689_v35, %v6691_v41 }
 0x3ae   : > { %4268 = vrot.lane.b32.xlu1 %v4157_v53, %s4445_s27  ;;  %4253 = vrot.lane.b32.xlu0 %v6610_v39, %s7302_s24  ;;  %v4059_v63 = vpop.permute.xlu1 %4058  ;;  %v4054_v21 = vpop.permute.xlu0 %4053 }
 0x3af   : > { %v4056_v62 = vunpack.i.h.bf16 %v4054_v21  ;;  %v4055_v14 = vunpack.i.l.bf16 %v4054_v21  ;;  %v4061_v53 = vunpack.i.h.bf16 %v4059_v63  ;;  %v4060_v24 = vunpack.i.l.bf16 %v4059_v63 }
 0x3b1   : > { %v2366_v18 = vsel %vm1069_vm3, %v2127_v9, %v4056_v62  ;;  %v2383_v33 = vsel %vm1069_vm3, %v2159_v4, %v4055_v14 }
 0x3b2   : > { %4278 = vrot.lane.b32.xlu1 %v4172_v54, %s7298_s20  ;;  %4263 = vrot.lane.b32.xlu0 %v4152_v20, %s7297_s17  ;;  %v4064_v38 = vpop.permute.xlu0 %4063  ;;  %v2368_v59 = vsel %vm1105_vm7, %v2366_v18, %v4061_v53  ;;  %s528_s17 = scalar_lea.vmem [#allocation4], %s527_s21 }
 0x3b3   : > { %v4066_v56 = vunpack.i.h.bf16 %v4064_v38  ;;  %v4065_v45 = vunpack.i.l.bf16 %v4064_v38 }
 0x3b5   : > { %v2370_v20 = vsel %vm1141_vm11, %v2368_v59, %v4066_v56 }
 0x3b6   : > { %4288 = vrot.lane.b32.xlu1 %v4182_v43, %s4445_s27  ;;  %4273 = vrot.lane.b32.xlu0 %v4167_v0, %s4444_s0  ;;  %v2385_v0 = vsel %vm1105_vm7, %v2383_v33, %v4060_v24 }
 0x3b7   : > { %v2387_v60 = vsel %vm1141_vm11, %v2385_v0, %v4065_v45 }
 0x3ba   : > { %4298 = vrot.lane.b32.xlu1 %v4297_v52, %s4446_s15  ;;  %4283 = vrot.lane.b32.xlu0 %v4282_v26, %s4447_s16  ;;  %v2538_v52 = vld [vmem:[#allocation2 + $0x40] ss:$4 sm:$0xff] }
 0x3bb   : > { %v4322_v39 = vpack.i.bf16 %v6700_v40, %v2538_v52 }
 0x3be   : > { %4308 = vrot.lane.b32.xlu1 %v4202_v49, %s4444_s0  ;;  %4293 = vrot.lane.b32.xlu0 %v4187_v19, %s7302_s24  ;;  %s3581_s24 = sshll.u32 %s7411_s12, 4 }
 0x3c2   : > { %4318 = vrot.lane.b32.xlu1 %v4217_v37, %s4445_s27  ;;  %4303 = vrot.lane.b32.xlu0 %v4302_v48, %s4447_s16  ;;  %s3482_s27 = sshll.u32 %s528_s17, 4  ;;  %s7160_s27 = int_to_ptr.vmem [resolvable:$true] %s3482_s27 }
 0x3c6   : > { %4328 = vrot.lane.b32.xlu1 %v4327_v44, %s4446_s15  ;;  %4313 = vrot.lane.b32.xlu0 %v4312_v16, %s4446_s15 }
 0x3ca   : > { %4323 = vrot.lane.b32.xlu0 %v4322_v39, %s4447_s16 }
 0x3ce   : > { %v4074_v25 = vpop.permute.xlu0 %4073 }
 0x3cf   : > { %v4069_v46 = vpop.permute.xlu1 %4068  ;;  %v4076_v32 = vunpack.i.h.bf16 %v4074_v25  ;;  %v4075_v28 = vunpack.i.l.bf16 %v4074_v25 }
 0x3d0   : > { %v4071_v26 = vunpack.i.h.bf16 %v4069_v46  ;;  %v4070_v48 = vunpack.i.l.bf16 %v4069_v46 }
 0x3d1   : > { %v2372_v19 = vsel %vm1815_vm15, %v2370_v20, %v4076_v32  ;;  %v2389_v54 = vsel %vm1815_vm15, %v2387_v60, %v4075_v28 }
 0x3d2   : > { %v2509_v38 = vsel %vm1069_vm3, %v6660_v47, %v4071_v26 }
 0x3d3   : > { %v4079_v12 = vpop.permute.xlu1 %4078 }
 0x3d4   : > { %v4081_v44 = vunpack.i.h.bf16 %v4079_v12  ;;  %v4080_v52 = vunpack.i.l.bf16 %v4079_v12 }
 0x3d6   : > { %v2511_v62 = vsel %vm1105_vm7, %v2509_v38, %v4081_v44 }
 0x3d7   : > { %v4089_v5 = vpop.permute.xlu1 %4088 }
 0x3d8   : > { %v4091_v6 = vunpack.i.h.bf16 %v4089_v5  ;;  %v4090_v17 = vunpack.i.l.bf16 %v4089_v5  ;;  %v2523_v5 = vsel %vm1069_vm3, %v6679_v2, %v4070_v48 }
 0x3d9   : > { %v2525_v14 = vsel %vm1105_vm7, %v2523_v5, %v4080_v52 }
 0x3da   : > { %v2391_v43 = vsel %vm2374_vm2, %v2389_v54, %v4090_v17  ;;  %v2375_v36 = vsel %vm2374_vm2, %v2372_v19, %v4091_v6 }
 0x3dc   : > { %v6708_v27 = vpop.permute.xlu1 %4098  ;;  %v6710_v7 = vpop.permute.xlu0 %4083 }
 0x3dd   : > { %v4101_v19 = vunpack.i.h.bf16 %v6708_v27  ;;  %v4100_v54 = vunpack.i.l.bf16 %v6708_v27 }
 0x3e0   : > { %v6712_v16 = vpop.permute.xlu1 %4108  ;;  %v4094_v22 = vpop.permute.xlu0 %4093 }
 0x3e1   : > { %v4096_v39 = vunpack.i.h.bf16 %v4094_v22  ;;  %v4095_v63 = vunpack.i.l.bf16 %v4094_v22  ;;  %v4111_v46 = vunpack.i.h.bf16 %v6712_v16  ;;  %v4110_v53 = vunpack.i.l.bf16 %v6712_v16 }
 0x3e3   : > { %v2513_v12 = vsel %vm1141_vm11, %v2511_v62, %v4096_v39  ;;  %v2527_v24 = vsel %vm1141_vm11, %v2525_v14, %v4095_v63 }
 0x3e4   : > { %v4119_v30 = vpop.permute.xlu1 %4118  ;;  %v4104_v57 = vpop.permute.xlu0 %4103  ;;  %v2515_v2 = vsel %vm1815_vm15, %v2513_v12, %v4111_v46  ;;  %v2529_v28 = vsel %vm1815_vm15, %v2527_v24, %v4110_v53 }
 0x3e5   : > { %v4121_v8 = vunpack.i.h.bf16 %v4119_v30  ;;  %v4120_v13 = vunpack.i.l.bf16 %v4119_v30  ;;  %v4106_v61 = vunpack.i.h.bf16 %v4104_v57  ;;  %v4105_v29 = vunpack.i.l.bf16 %v4104_v57 }
 0x3e7   : > { %v2393_v1 = vsel %vm2377_vm4, %v2391_v43, %v4105_v29  ;;  %v2378_v55 = vsel %vm2377_vm4, %v2375_v36, %v4106_v61 }
 0x3e8   : > { %v4129_v11 = vpop.permute.xlu1 %4128  ;;  %v6726_v37 = vpop.permute.xlu0 %4113  ;;  %v2395_v49 = vsel %vm2380_vm5, %v2393_v1, %v4120_v13  ;;  %v2381_v4 = vsel %vm2380_vm5, %v2378_v55, %v4121_v8  ;;  %v4086_v8 = vunpack.i.h.bf16 %v6710_v7  ;;  %v4085_v13 = vunpack.i.l.bf16 %v6710_v7 }
 0x3e9   : > { %2909 = vmatprep.mubr.f32.mxu1 %v2395_v49  ;;  %v4131_v9 = vunpack.i.h.bf16 %v4129_v11  ;;  %v4130_v18 = vunpack.i.l.bf16 %v4129_v11  ;;  %v4116_v36 = vunpack.i.h.bf16 %v6726_v37  ;;  %v4115_v7 = vunpack.i.l.bf16 %v6726_v37 }
 0x3ea   : > { %2910 = vmatmul.mubr.f32.vlgmr.msra.gmra.mrb[0].mxu1 %v2381_v4  ;;  %v2367_v29 = vsel %vm1069_vm3, %v6676_v50, %v4086_v8  ;;  %v2384_v43 = vsel %vm1069_vm3, %v6689_v35, %v4085_v13 }
 0x3eb   : > { %v2517_v6 = vsel %vm2374_vm2, %v2515_v2, %v4131_v9  ;;  %v2531_v16 = vsel %vm2374_vm2, %v2529_v28, %v4130_v18  ;;  %v2369_v49 = vsel %vm1105_vm7, %v2367_v29, %v4101_v19  ;;  %v2386_v4 = vsel %vm1105_vm7, %v2384_v43, %v4100_v54 }
 0x3ec   : > { %v6730_v34 = vpop.permute.xlu1 %4138  ;;  %v6732_v31 = vpop.permute.xlu0 %4123  ;;  %v2371_v50 = vsel %vm1141_vm11, %v2369_v49, %v4116_v36  ;;  %v2388_v35 = vsel %vm1141_vm11, %v2386_v4, %v4115_v7 }
 0x3ed   : > { %v4126_v27 = vunpack.i.h.bf16 %v6732_v31  ;;  %v4125_v26 = vunpack.i.l.bf16 %v6732_v31  ;;  %v4140_v31 = vunpack.i.l.bf16 %v6730_v34 }
 0x3ef   : > { %v2510_v62 = vsel %vm1069_vm3, %v6691_v41, %v4126_v27  ;;  %v2524_v14 = vsel %vm1069_vm3, %v6700_v40, %v4125_v26 }
 0x3f0   : > { %v6734_v21 = vpop.permute.xlu1 %4148  ;;  %v4134_v25 = vpop.permute.xlu0 %4133 }
 0x3f1   : > { %v4136_v11 = vunpack.i.h.bf16 %v4134_v25  ;;  %v4135_v1 = vunpack.i.l.bf16 %v4134_v25  ;;  %v4151_v44 = vunpack.i.h.bf16 %v6734_v21  ;;  %v4150_v37 = vunpack.i.l.bf16 %v6734_v21 }
 0x3f2   : > { %v4141_v25 = vunpack.i.h.bf16 %v6730_v34 }
 0x3f3   : > { %v2373_v52 = vsel %vm1815_vm15, %v2371_v50, %v4136_v11  ;;  %v2390_v39 = vsel %vm1815_vm15, %v2388_v35, %v4135_v1  ;;  %v4362_v35 = vld [vmem:[#allocation2 + $0x2] ss:$4 sm:$0xff] }
 0x3f4   : > { %v4159_v33 = vpop.permute.xlu1 %4158  ;;  %v4144_v45 = vpop.permute.xlu0 %4143  ;;  %v2392_v12 = vsel %vm2374_vm2, %v2390_v39, %v4150_v37  ;;  %v2376_v24 = vsel %vm2374_vm2, %v2373_v52, %v4151_v44  ;;  %v4363_v37 = vld [vmem:[#allocation2 + $0xa] ss:$4 sm:$0xff] }
 0x3f5   : > { %v4161_v47 = vunpack.i.h.bf16 %v4159_v33  ;;  %v4160_v56 = vunpack.i.l.bf16 %v4159_v33  ;;  %v4146_v22 = vunpack.i.h.bf16 %v4144_v45  ;;  %v4145_v32 = vunpack.i.l.bf16 %v4144_v45 }
 0x3f7   : > { %v2519_v17 = vsel %vm2377_vm4, %v2517_v6, %v4146_v22  ;;  %v2533_v0 = vsel %vm2377_vm4, %v2531_v16, %v4145_v32  ;;  %v2512_v22 = vsel %vm1105_vm7, %v2510_v62, %v4141_v25  ;;  %v2526_v32 = vsel %vm1105_vm7, %v2524_v14, %v4140_v31 }
 0x3f8   : > { %v4169_v59 = vpop.permute.xlu1 %4168  ;;  %v4154_v30 = vpop.permute.xlu0 %4153  ;;  %v2535_v20 = vsel %vm2380_vm5, %v2533_v0, %v4160_v56  ;;  %v2521_v60 = vsel %vm2380_vm5, %v2519_v17, %v4161_v47 }
 0x3f9   : > { %2994 = vmatprep.mubr.f32.mxu0 %v2535_v20  ;;  %v4171_v63 = vunpack.i.h.bf16 %v4169_v59  ;;  %v4170_v38 = vunpack.i.l.bf16 %v4169_v59  ;;  %v4156_v9 = vunpack.i.h.bf16 %v4154_v30  ;;  %v4155_v18 = vunpack.i.l.bf16 %v4154_v30 }
 0x3fa   : > { %2995 = vmatmul.mubr.f32.vlgmr.msra.gmra.mrb[16].mxu0 %v2521_v60 }
 0x3fb   : > { %v2394_v33 = vsel %vm2377_vm4, %v2392_v12, %v4170_v38  ;;  %v2379_v47 = vsel %vm2377_vm4, %v2376_v24, %v4171_v63  ;;  %v2514_v28 = vsel %vm1141_vm11, %v2512_v22, %v4156_v9  ;;  %v2528_v6 = vsel %vm1141_vm11, %v2526_v32, %v4155_v18 }
 0x3fc   : > { %v6756_v57 = vpop.permute.xlu1 %4178  ;;  %v6760_v61 = vpop.permute.xlu0 %4163 }
 0x3fd   : > { %v4166_v49 = vunpack.i.h.bf16 %v6760_v61  ;;  %v4165_v4 = vunpack.i.l.bf16 %v6760_v61  ;;  %v4180_v50 = vunpack.i.l.bf16 %v6756_v57 }
 0x3ff   : > { %v2629_v44 = vsel %vm1069_vm3, %v4362_v35, %v4166_v49  ;;  %v2643_v52 = vsel %vm1069_vm3, %v4363_v37, %v4165_v4 }
 0x400   : > { %v4189_v55 = vpop.permute.xlu1 %4188  ;;  %v4174_v48 = vpop.permute.xlu0 %4173  ;;  %v2645_v14 = vsel %vm1105_vm7, %v2643_v52, %v4180_v50 }
 0x401   : > { %v4176_v34 = vunpack.i.h.bf16 %v4174_v48  ;;  %v4175_v56 = vunpack.i.l.bf16 %v4174_v48  ;;  %v4191_v16 = vunpack.i.h.bf16 %v4189_v55  ;;  %v4190_v17 = vunpack.i.l.bf16 %v4189_v55 }
 0x402   : > { %v4181_v48 = vunpack.i.h.bf16 %v6756_v57 }
 0x403   : > { %v2516_v59 = vsel %vm1815_vm15, %v2514_v28, %v4176_v34  ;;  %v2530_v0 = vsel %vm1815_vm15, %v2528_v6, %v4175_v56 }
 0x404   : > { %v6778_v5 = vpop.permute.xlu1 %4198  ;;  %v4184_v46 = vpop.permute.xlu0 %4183  ;;  %v2532_v54 = vsel %vm2374_vm2, %v2530_v0, %v4190_v17  ;;  %v2518_v29 = vsel %vm2374_vm2, %v2516_v59, %v4191_v16  ;;  %v2631_v62 = vsel %vm1105_vm7, %v2629_v44, %v4181_v48 }
 0x405   : > { %v4186_v21 = vunpack.i.h.bf16 %v4184_v46  ;;  %v4185_v53 = vunpack.i.l.bf16 %v4184_v46  ;;  %v4201_v16 = vunpack.i.h.bf16 %v6778_v5  ;;  %v4200_v17 = vunpack.i.l.bf16 %v6778_v5 }
 0x407   : > { %v2396_v41 = vsel %vm2380_vm5, %v2394_v33, %v4185_v53  ;;  %v2382_v40 = vsel %vm2380_vm5, %v2379_v47, %v4186_v21 }
 0x408   : > { %v4209_v45 = vpop.permute.xlu1 %4208  ;;  %v4194_v2 = vpop.permute.xlu0 %4193  ;;  %2914 = vmatprep.mubr.f32.mxu1 %v2396_v41 }
 0x409   : > { %2915 = vmatmul.mubr.f32.gmra.mrb[2].mxu1 %v2382_v40  ;;  %v4196_v39 = vunpack.i.h.bf16 %v4194_v2  ;;  %v4195_v63 = vunpack.i.l.bf16 %v4194_v2  ;;  %v4211_v61 = vunpack.i.h.bf16 %v4209_v45  ;;  %v4210_v31 = vunpack.i.l.bf16 %v4209_v45 }
 0x40b   : > { %v2633_v46 = vsel %vm1141_vm11, %v2631_v62, %v4196_v39  ;;  %v2647_v57 = vsel %vm1141_vm11, %v2645_v14, %v4195_v63 }
 0x40c   : > { %v4219_v30 = vpop.permute.xlu1 %4218  ;;  %v4204_v8 = vpop.permute.xlu0 %4203  ;;  %v2649_v34 = vsel %vm1815_vm15, %v2647_v57, %v4210_v31  ;;  %v2635_v56 = vsel %vm1815_vm15, %v2633_v46, %v4211_v61 }
 0x40d   : > { %v4221_v20 = vunpack.i.h.bf16 %v4219_v30  ;;  %v4220_v60 = vunpack.i.l.bf16 %v4219_v30  ;;  %v4206_v13 = vunpack.i.h.bf16 %v4204_v8  ;;  %v4205_v19 = vunpack.i.l.bf16 %v4204_v8 }
 0x40f   : > { %v2534_v36 = vsel %vm2377_vm4, %v2532_v54, %v4205_v19  ;;  %v2520_v7 = vsel %vm2377_vm4, %v2518_v29, %v4206_v13  ;;  %v2746_v13 = vsel %vm1069_vm3, %v6423_v10, %v4201_v16  ;;  %v2760_v19 = vsel %vm1069_vm3, %v6425_v58, %v4200_v17 }
 0x410   : > { %v4229_v43 = vpop.permute.xlu1 %4228  ;;  %v4214_v11 = vpop.permute.xlu0 %4213  ;;  %v2536_v1 = vsel %vm2380_vm5, %v2534_v36, %v4220_v60  ;;  %v2522_v55 = vsel %vm2380_vm5, %v2520_v7, %v4221_v20 }
 0x411   : > { %2999 = vmatprep.mubr.f32.mxu0 %v2536_v1  ;;  %v4231_v21 = vunpack.i.h.bf16 %v4229_v43  ;;  %v4230_v53 = vunpack.i.l.bf16 %v4229_v43  ;;  %v4216_v0 = vunpack.i.h.bf16 %v4214_v11  ;;  %v4215_v30 = vunpack.i.l.bf16 %v4214_v11 }
 0x412   : > { %3000 = vmatmul.mubr.f32.gmra.mrb[18].mxu0 %v2522_v55 }
 0x413   : > { %v2651_v45 = vsel %vm2374_vm2, %v2649_v34, %v4230_v53  ;;  %v2637_v41 = vsel %vm2374_vm2, %v2635_v56, %v4231_v21  ;;  %v2748_v29 = vsel %vm1105_vm7, %v2746_v13, %v4216_v0  ;;  %v2762_v43 = vsel %vm1105_vm7, %v2760_v19, %v4215_v30 }
 0x414   : > { %v6806_v27 = vpop.permute.xlu1 %4238  ;;  %v6808_v26 = vpop.permute.xlu0 %4223 }
 0x415   : > { %v4226_v36 = vunpack.i.h.bf16 %v6808_v26  ;;  %v4225_v7 = vunpack.i.l.bf16 %v6808_v26  ;;  %v4241_v48 = vunpack.i.h.bf16 %v6806_v27  ;;  %v4240_v50 = vunpack.i.l.bf16 %v6806_v27 }
 0x418   : > { %v4249_v38 = vpop.permute.xlu1 %4248  ;;  %v4234_v25 = vpop.permute.xlu0 %4233 }
 0x419   : > { %v4236_v60 = vunpack.i.h.bf16 %v4234_v25  ;;  %v4235_v8 = vunpack.i.l.bf16 %v4234_v25  ;;  %v4251_v11 = vunpack.i.h.bf16 %v4249_v38  ;;  %v4250_v1 = vunpack.i.l.bf16 %v4249_v38 }
 0x41a   : > { %v2630_v38 = vsel %vm1069_vm3, %v6500_v23, %v4226_v36  ;;  %v2644_v25 = vsel %vm1069_vm3, %v6502_v15, %v4225_v7 }
 0x41b   : > { %v2750_v55 = vsel %vm1141_vm11, %v2748_v29, %v4236_v60  ;;  %v2764_v10 = vsel %vm1141_vm11, %v2762_v43, %v4235_v8 }
 0x41c   : > { %v4259_v12 = vpop.permute.xlu1 %4258  ;;  %v4244_v18 = vpop.permute.xlu0 %4243  ;;  %v2766_v26 = vsel %vm1815_vm15, %v2764_v10, %v4250_v1  ;;  %v2752_v63 = vsel %vm1815_vm15, %v2750_v55, %v4251_v11 }
 0x41d   : > { %v4261_v24 = vunpack.i.h.bf16 %v4259_v12  ;;  %v4260_v9 = vunpack.i.l.bf16 %v4259_v12  ;;  %v4246_v33 = vunpack.i.h.bf16 %v4244_v18  ;;  %v4245_v47 = vunpack.i.l.bf16 %v4244_v18 }
 0x41e   : > { %v2632_v18 = vsel %vm1105_vm7, %v2630_v38, %v4241_v48 }
 0x41f   : > { %v2653_v2 = vsel %vm2377_vm4, %v2651_v45, %v4245_v47  ;;  %v2639_v22 = vsel %vm2377_vm4, %v2637_v41, %v4246_v33  ;;  %v2646_v33 = vsel %vm1105_vm7, %v2644_v25, %v4240_v50 }
 0x420   : > { %v4269_v40 = vpop.permute.xlu1 %4268  ;;  %v4254_v32 = vpop.permute.xlu0 %4253  ;;  %v2655_v28 = vsel %vm2380_vm5, %v2653_v2, %v4260_v9  ;;  %v2641_v6 = vsel %vm2380_vm5, %v2639_v22, %v4261_v24 }
 0x421   : > { %2919 = vmatprep.mubr.f32.mxu1 %v2655_v28  ;;  %v4271_v49 = vunpack.i.h.bf16 %v4269_v40  ;;  %v4270_v4 = vunpack.i.l.bf16 %v4269_v40  ;;  %v4256_v27 = vunpack.i.h.bf16 %v4254_v32  ;;  %v4255_v62 = vunpack.i.l.bf16 %v4254_v32 }
 0x422   : > { %2920 = vmatmul.mubr.f32.gmra.mrb[4].mxu1 %v2641_v6 }
 0x423   : > { %v2768_v61 = vsel %vm2374_vm2, %v2766_v26, %v4270_v4  ;;  %v2754_v31 = vsel %vm2374_vm2, %v2752_v63, %v4271_v49  ;;  %v2634_v47 = vsel %vm1141_vm11, %v2632_v18, %v4256_v27  ;;  %v2648_v34 = vsel %vm1141_vm11, %v2646_v33, %v4255_v62  ;;  %v3149_v27 = vld [vmem:[%s7210_s10] sm:$0xff]  ;;  %v3182_v18 = vld [vmem:[%s7210_s10 + $0x108] sm:$0xff] }
 0x424   : > { %v6828_v59 = vpop.permute.xlu1 %4278  ;;  %v4264_v20 = vpop.permute.xlu0 %4263 }
 0x425   : > { %v4266_v21 = vunpack.i.h.bf16 %v4264_v20  ;;  %v4265_v53 = vunpack.i.l.bf16 %v4264_v20  ;;  %v4281_v56 = vunpack.i.h.bf16 %v6828_v59  ;;  %v4280_v45 = vunpack.i.l.bf16 %v6828_v59 }
 0x427   : > { %v2747_v41 = vsel %vm1069_vm3, %v6539_v42, %v4266_v21  ;;  %v2761_v40 = vsel %vm1069_vm3, %v6541_v3, %v4265_v53  ;;  %vm3056_vm3 = vcmask 259072  }
 0x428   : > { %v6834_v54 = vpop.permute.xlu1 %4288  ;;  %v4274_v5 = vpop.permute.xlu0 %4273  ;;  %v2749_v20 = vsel %vm1105_vm7, %v2747_v41, %v4281_v56  ;;  %v2763_v42 = vsel %vm1105_vm7, %v2761_v40, %v4280_v45  ;;  %3057 = vst.msk [vmem:[#allocation3 + $0x18] sm:$0x3f] %vm3056_vm3, %v4443_v51  ;;  %v3169_v45 = vld [vmem:[%s7210_s10 + $0xa0] sm:$0xff]  ;;  %v3170_v41 = vld [vmem:[%s7210_s10 + $0xa8] sm:$0xff] }
 0x429   : > { %v4276_v9 = vunpack.i.h.bf16 %v4274_v5  ;;  %v4275_v15 = vunpack.i.l.bf16 %v4274_v5  ;;  %v4291_v2 = vunpack.i.h.bf16 %v6834_v54  ;;  %v4290_v22 = vunpack.i.l.bf16 %v6834_v54  ;;  %v3153_v40 = vld [vmem:[%s7210_s10 + $0x20] sm:$0xff] }
 0x42b   : > { %v2636_v28 = vsel %vm1815_vm15, %v2634_v47, %v4276_v9  ;;  %v2650_v6 = vsel %vm1815_vm15, %v2648_v34, %v4275_v15  ;;  %v3198_v9 = vld [vmem:[%s7210_s10 + $0x188] sm:$0xff]  ;;  %v3181_v15 = vld [vmem:[%s7210_s10 + $0x100] sm:$0xff] }
 0x42c   : > { %v4299_v58 = vpop.permute.xlu1 %4298  ;;  %v4284_v37 = vpop.permute.xlu0 %4283  ;;  %v2652_v13 = vsel %vm2374_vm2, %v2650_v6, %v4290_v22  ;;  %v2638_v19 = vsel %vm2374_vm2, %v2636_v28, %v4291_v2  ;;  %v3948_v56 = vpack.c.bf16 %v3182_v18, %v3181_v15  ;;  %v3922_v22 = vpack.c.bf16 %v3170_v41, %v3169_v45  ;;  %v3199_v28 = vld [vmem:[%s7210_s10 + $0x190] sm:$0xff]  ;;  %v3200_v6 = vld [vmem:[%s7210_s10 + $0x198] sm:$0xff] }
 0x42d   : > { %v4301_v35 = vunpack.i.h.bf16 %v4299_v58  ;;  %v4300_v44 = vunpack.i.l.bf16 %v4299_v58  ;;  %v4286_v52 = vunpack.i.h.bf16 %v4284_v37  ;;  %v4285_v39 = vunpack.i.l.bf16 %v4284_v37 }
 0x42f   : > { %v2770_v46 = vsel %vm2377_vm4, %v2768_v61, %v4285_v39  ;;  %v2756_v57 = vsel %vm2377_vm4, %v2754_v31, %v4286_v52  ;;  %v3165_v61 = vld [vmem:[%s7210_s10 + $0x80] sm:$0xff]  ;;  %v3166_v31 = vld [vmem:[%s7210_s10 + $0x88] sm:$0xff] }
 0x430   : > { %v4309_v14 = vpop.permute.xlu1 %4308  ;;  %v4294_v12 = vpop.permute.xlu0 %4293  ;;  %v2772_v24 = vsel %vm2380_vm5, %v2770_v46, %v4300_v44  ;;  %v2758_v23 = vsel %vm2380_vm5, %v2756_v57, %v4301_v35  ;;  %v3914_v62 = vpack.c.bf16 %v3166_v31, %v3165_v61  ;;  %v3167_v46 = vld [vmem:[%s7210_s10 + $0x90] sm:$0xff]  ;;  %v3168_v57 = vld [vmem:[%s7210_s10 + $0x98] sm:$0xff]  ;;  %v3190_v61 = vld [vmem:[%s7210_s10 + $0x148] sm:$0xff] }
 0x431   : > { %3004 = vmatprep.mubr.f32.mxu0 %v2772_v24  ;;  %v4296_v16 = vunpack.i.h.bf16 %v4294_v12  ;;  %v4295_v17 = vunpack.i.l.bf16 %v4294_v12  ;;  %v4311_v60 = vunpack.i.h.bf16 %v4309_v14  ;;  %v4310_v3 = vunpack.i.l.bf16 %v4309_v14  ;;  %v3150_v14 = vld [vmem:[%s7210_s10 + $0x8] sm:$0xff]  ;;  %v3151_v12 = vld [vmem:[%s7210_s10 + $0x10] sm:$0xff]  ;;  %v3152_v24 = vld [vmem:[%s7210_s10 + $0x18] sm:$0xff] }
 0x432   : > { %3005 = vmatmul.mubr.f32.gmra.mrb[20].mxu0 %v2758_v23  ;;  %v3916_v21 = vpack.c.bf16 %v3150_v14, %v3149_v27  ;;  %v3918_v53 = vpack.c.bf16 %v3168_v57, %v3167_v46  ;;  %v3197_v23 = vld [vmem:[%s7210_s10 + $0x180] sm:$0xff]  ;;  %3915 = vmatprep.subr.bf16.mxu1 %v3914_v62  ;;  %v3920_v47 = vpack.c.bf16 %v3152_v24, %v3151_v12  ;;  %v3159_v27 = vld [vmem:[%s7210_s10 + $0x50] sm:$0xff]  ;;  %v3160_v62 = vld [vmem:[%s7210_s10 + $0x58] sm:$0xff] }
 0x433   : > { %v2751_v54 = vsel %vm1141_vm11, %v2749_v20, %v4296_v16  ;;  %v2765_v29 = vsel %vm1141_vm11, %v2763_v42, %v4295_v17  ;;  %v3946_v34 = vpack.c.bf16 %v3198_v9, %v3197_v23  ;;  %v3950_v17 = vpack.c.bf16 %v3200_v6, %v3199_v28  ;;  %v3172_v42 = vld [vmem:[%s7210_s10 + $0xb8] sm:$0xff]  ;;  %v3574_v14 = vld [vmem:[%s7207_s7] ss:$0 sm:$0xff] }
 0x434   : > { %v4304_v32 = vpop.permute.xlu0 %4303  ;;  %v4319_v0 = vpop.permute.xlu1 %4318  ;;  %v2767_v50 = vsel %vm1815_vm15, %v2765_v29, %v4310_v3  ;;  %v2753_v35 = vsel %vm1815_vm15, %v2751_v54, %v4311_v60  ;;  %3917 = vmatpush3.bf16.msra.mxu1 %v3916_v21  ;;  %v3201_v3 = vld [vmem:[%s7210_s10 + $0x1a0] sm:$0xff]  ;;  %v3155_v54 = vld [vmem:[%s7210_s10 + $0x30] sm:$0xff]  ;;  %v3156_v29 = vld [vmem:[%s7210_s10 + $0x38] sm:$0xff]  ;;  %v3936_v21 = vpack.c.bf16 %v3160_v62, %v3159_v27 }
 0x435   : > { %v4306_v30 = vunpack.i.h.bf16 %v4304_v32  ;;  %v4305_v59 = vunpack.i.l.bf16 %v4304_v32  ;;  %v4321_v36 = vunpack.i.h.bf16 %v4319_v0  ;;  %v4320_v7 = vunpack.i.l.bf16 %v4319_v0  ;;  %3919 = vmatprep.subr.bf16.mxu1 %v3918_v53  ;;  %v3154_v32 = vld [vmem:[%s7210_s10 + $0x28] sm:$0xff]  ;;  %3947 = vmatprep.subr.bf16.mxu0 %v3946_v34  ;;  %v3183_v0 = vld [vmem:[%s7210_s10 + $0x110] sm:$0xff] }
 0x436   : > { %3949 = vmatpush3.bf16.msra.mxu0 %v3948_v56  ;;  %v3924_v60 = vpack.c.bf16 %v3154_v32, %v3153_v40  ;;  %v3191_v62 = vld [vmem:[%s7210_s10 + $0x150] sm:$0xff] }
 0x437   : > { %v2654_v11 = vsel %vm2377_vm4, %v2652_v13, %v4305_v59  ;;  %v2640_v1 = vsel %vm2377_vm4, %v2638_v19, %v4306_v30  ;;  %v2769_v52 = vsel %vm2374_vm2, %v2767_v50, %v4320_v7  ;;  %v2755_v39 = vsel %vm2374_vm2, %v2753_v35, %v4321_v36  ;;  %v3184_v30 = vld [vmem:[%s7210_s10 + $0x118] sm:$0xff]  ;;  %v3171_v59 = vld [vmem:[%s7210_s10 + $0xb0] sm:$0xff]  ;;  %3951 = vmatprep.subr.bf16.mxu0 %v3950_v17  ;;  %v3185_v13 = vld [vmem:[%s7210_s10 + $0x120] sm:$0xff] }
 0x438   : > { %v4314_v8 = vpop.permute.xlu0 %4313  ;;  %v4329_v55 = vpop.permute.xlu1 %4328  ;;  %v3952_v20 = vpack.c.bf16 %v3184_v30, %v3183_v0  ;;  %3921 = vmatpush3.bf16.msra.mxu1 %v3920_v47  ;;  %v3926_v19 = vpack.c.bf16 %v3172_v42, %v3171_v59  ;;  %v3173_v36 = vld [vmem:[%s7210_s10 + $0xc0] sm:$0xff]  ;;  %v3174_v7 = vld [vmem:[%s7210_s10 + $0xc8] sm:$0xff] }
 0x439   : > { %v4316_v43 = vunpack.i.h.bf16 %v4314_v8  ;;  %v4315_v5 = vunpack.i.l.bf16 %v4314_v8  ;;  %v4331_v44 = vunpack.i.h.bf16 %v4329_v55  ;;  %v4330_v37 = vunpack.i.l.bf16 %v4329_v55  ;;  %v3202_v8 = vld [vmem:[%s7210_s10 + $0x1a8] sm:$0xff]  ;;  %3923 = vmatprep.subr.bf16.mxu1 %v3922_v22  ;;  %v3204_v55 = vld [vmem:[%s7210_s10 + $0x1b8] sm:$0xff]  ;;  %v3575_v17 = vld [vmem:[%s7208_s8] ss:$0 sm:$0xff] }
 0x43a   : > { %3953 = vmatpush3.bf16.msra.mxu0 %v3952_v20  ;;  %v3930_v50 = vpack.c.bf16 %v3174_v7, %v3173_v36  ;;  %v3158_v35 = vld [vmem:[%s7210_s10 + $0x48] sm:$0xff]  ;;  %v3576_v20 = vld [vmem:[%s7209_s9] ss:$0 sm:$0xff] }
 0x43b   : > { %v2656_v10 = vsel %vm2380_vm5, %v2654_v11, %v4315_v5  ;;  %v2642_v49 = vsel %vm2380_vm5, %v2640_v1, %v4316_v43  ;;  %v3954_v43 = vpack.c.bf16 %v3202_v8, %v3201_v3  ;;  %v3186_v5 = vld [vmem:[%s7210_s10 + $0x128] sm:$0xff]  ;;  %v3203_v11 = vld [vmem:[%s7210_s10 + $0x1b0] sm:$0xff] }
 0x43c   : > { %v4324_v4 = vpop.permute.xlu0 %4323  ;;  %2924 = vmatprep.mubr.f32.mxu1 %v2656_v10  ;;  %v3956_v1 = vpack.c.bf16 %v3186_v5, %v3185_v13  ;;  %3925 = vmatpush3.bf16.msra.mxu1 %v3924_v60  ;;  %v3928_v10 = vpack.c.bf16 %v3156_v29, %v3155_v54 }
 0x43d   : > { %v4326_v58 = vunpack.i.h.bf16 %v4324_v4  ;;  %v4325_v48 = vunpack.i.l.bf16 %v4324_v4  ;;  %2925 = vmatmul.mubr.f32.gmra.mrb[6].mxu1 %v2642_v49  ;;  %3955 = vmatprep.subr.bf16.mxu0 %v3954_v43  ;;  %v3157_v49 = vld [vmem:[%s7210_s10 + $0x40] sm:$0xff]  ;;  %v3958_v4 = vpack.c.bf16 %v3204_v55, %v3203_v11 }
 0x43e   : > { %3927 = vmatprep.subr.bf16.mxu1 %v3926_v19  ;;  %3957 = vmatpush3.bf16.msra.mxu0 %v3956_v1 }
 0x43f   : > { %v2771_v26 = vsel %vm2377_vm4, %v2769_v52, %v4325_v48  ;;  %v2757_v63 = vsel %vm2377_vm4, %v2755_v39, %v4326_v58  ;;  %v3187_v58 = vld [vmem:[%s7210_s10 + $0x130] sm:$0xff]  ;;  %v3188_v48 = vld [vmem:[%s7210_s10 + $0x138] sm:$0xff]  ;;  %3959 = vmatprep.subr.bf16.mxu0 %v3958_v4 }
 0x440   : > { %v2773_v38 = vsel %vm2380_vm5, %v2771_v26, %v4330_v37  ;;  %v2759_v25 = vsel %vm2380_vm5, %v2757_v63, %v4331_v44  ;;  %v3205_v44 = vld [vmem:[%s7210_s10 + $0x1c0] sm:$0xff]  ;;  %v3206_v37 = vld [vmem:[%s7210_s10 + $0x1c8] sm:$0xff]  ;;  %v3175_v52 = vld [vmem:[%s7210_s10 + $0xd0] sm:$0xff]  ;;  %v3960_v26 = vpack.c.bf16 %v3188_v48, %v3187_v58  ;;  %3929 = vmatpush3.bf16.msra.mxu1 %v3928_v10  ;;  %v3932_v63 = vpack.c.bf16 %v3158_v35, %v3157_v49 }
 0x441   : > { %3009 = vmatprep.mubr.f32.mxu0 %v2773_v38  ;;  %v3176_v39 = vld [vmem:[%s7210_s10 + $0xd8] sm:$0xff]  ;;  %v3962_v38 = vpack.c.bf16 %v3206_v37, %v3205_v44  ;;  %3931 = vmatprep.subr.bf16.mxu1 %v3930_v50 }
 0x442   : > { %3010 = vmatmul.mubr.f32.gmra.mrb[22].mxu0 %v2759_v25  ;;  %v3189_v25 = vld [vmem:[%s7210_s10 + $0x140] sm:$0xff]  ;;  %v3934_v31 = vpack.c.bf16 %v3176_v39, %v3175_v52  ;;  %v3178_v39 = vld [vmem:[%s7210_s10 + $0xe8] sm:$0xff] }
 0x443   : > { %3961 = vmatpush3.bf16.msra.mxu0 %v3960_v26  ;;  %v3964_v46 = vpack.c.bf16 %v3190_v61, %v3189_v25  ;;  %v3177_v52 = vld [vmem:[%s7210_s10 + $0xe0] sm:$0xff]  ;;  %v3207_v25 = vld [vmem:[%s7210_s10 + $0x1d0] sm:$0xff]  ;;  %v3208_v61 = vld [vmem:[%s7210_s10 + $0x1d8] sm:$0xff] }
 0x444   : > { %3933 = vmatpush3.bf16.msra.mxu1 %v3932_v63  ;;  %3963 = vmatprep.subr.bf16.mxu0 %v3962_v38  ;;  %v3161_v26 = vld [vmem:[%s7210_s10 + $0x60] sm:$0xff]  ;;  %v3938_v63 = vpack.c.bf16 %v3178_v39, %v3177_v52  ;;  %v3162_v38 = vld [vmem:[%s7210_s10 + $0x68] sm:$0xff]  ;;  %v3966_v27 = vpack.c.bf16 %v3208_v61, %v3207_v25 }
 0x445   : > { %3935 = vmatprep.subr.bf16.mxu1 %v3934_v31  ;;  %v3940_v31 = vpack.c.bf16 %v3162_v38, %v3161_v26 }
 0x447   : > { %3965 = vmatpush3.bf16.msra.mxu0 %v3964_v46 }
 0x448   : > { %3937 = vmatpush3.bf16.msra.mxu1 %v3936_v21  ;;  %v3180_v21 = vld [vmem:[%s7210_s10 + $0xf8] sm:$0xff]  ;;  %3967 = vmatprep.subr.bf16.mxu0 %v3966_v27 }
 0x449   : > { %3939 = vmatprep.subr.bf16.mxu1 %v3938_v63 }
 0x44c   : > { %3941 = vmatpush3.bf16.msra.mxu1 %v3940_v31 }
 0x4bd   : > { %v3640_v33 = vpop.f32.mrb[0].mxu1 }
 0x4be   : > { %v3641_v2 = vpop.f32.mrb[1].mxu1 }
 0x4bf   : > { %v3642_v16 = vadd.f32 %v3641_v2, %v3640_v33 }
 0x4c1   : > { %v2912_v12 = vadd.f32 %v3642_v16, %v3574_v14 }
 0x4cd   : > { %v3684_v57 = vpop.f32.mrb[16].mxu0 }
 0x4ce   : > { %v3685_v53 = vpop.f32.mrb[17].mxu0 }
 0x4cf   : > { %v3686_v24 = vadd.f32 %v3685_v53, %v3684_v57  ;;  %v3179_v57 = vld [vmem:[%s7210_s10 + $0xf0] sm:$0xff] }
 0x4d0   : > { %v3163_v53 = vld [vmem:[%s7210_s10 + $0x70] sm:$0xff] }
 0x4d1   : > { %v2997_v23 = vadd.f32 %v3686_v24, %v2912_v12  ;;  %v3942_v12 = vpack.c.bf16 %v3180_v21, %v3179_v57  ;;  %v3164_v24 = vld [vmem:[%s7210_s10 + $0x78] sm:$0xff] }
 0x4d3   : > { %v3015_v28 = vmax.f32 %v2997_v23, 0.0  ;;  %v3209_v23 = vld [vmem:[%s7210_s10 + $0x1e0] sm:$0xff]  ;;  %3943 = vmatprep.subr.bf16.mxu1 %v3942_v12 }
 0x4d5   : > { %v3026_v30 = vmul.f32 %v3575_v17, %v3015_v28 }
 0x4d7   : > { %v3037_v60 = vadd.f32 %v3576_v20, %v3026_v30  ;;  %v3212_v30 = vld [vmem:[%s7210_s10 + $0x1f8] sm:$0xff] }
 0x4dc   : > { %v3643_v9 = vpop.f32.mrb[2].mxu1 }
 0x4dd   : > { %v3644_v15 = vpop.f32.mrb[3].mxu1 }
 0x4de   : > { %v3645_v18 = vadd.f32 %v3644_v15, %v3643_v9  ;;  %v3210_v9 = vld [vmem:[%s7210_s10 + $0x1e8] sm:$0xff]  ;;  %v3944_v15 = vpack.c.bf16 %v3164_v24, %v3163_v53 }
 0x4e0   : > { %v2917_v34 = vadd.f32 %v3645_v18, %v3574_v14  ;;  %v3970_v18 = vpack.c.bf16 %v3210_v9, %v3209_v23  ;;  %3945 = vmatpush3.bf16.msra.mxu1 %v3944_v15 }
 0x4e5   : > { %v3687_v33 = vpop.f32.mrb[18].mxu0 }
 0x4e6   : > { %v3688_v47 = vpop.f32.mrb[19].mxu0 }
 0x4e7   : > { %v3689_v56 = vadd.f32 %v3688_v47, %v3687_v33  ;;  %v3193_v33 = vld [vmem:[%s7210_s10 + $0x160] sm:$0xff]  ;;  %v3194_v47 = vld [vmem:[%s7210_s10 + $0x168] sm:$0xff] }
 0x4e9   : > { %v3002_v45 = vadd.f32 %v3689_v56, %v2917_v34  ;;  %v3972_v34 = vpack.c.bf16 %v3194_v47, %v3193_v33  ;;  %v4448_v47 = vmov 0.0|0.0  }
 0x4ea   : > { %3978 = vmatprep.subr.bf16.mxu1 %v4448_v47 }
 0x4eb   : > { %v3016_v7 = vmax.f32 %v3002_v45, 0.0 }
 0x4ed   : > { %v3027_v10 = vmul.f32 %v3575_v17, %v3016_v7 }
 0x4ef   : > { %v3038_v58 = vadd.f32 %v3576_v20, %v3027_v10 }
 0x4f5   : > { %v3646_v41 = vpop.f32.mrb[4].mxu1 }
 0x4f6   : > { %v3647_v40 = vpop.f32.mrb[5].mxu1 }
 0x4f7   : > { %v3648_v2 = vadd.f32 %v3647_v40, %v3646_v41 }
 0x4f9   : > { %v2922_v6 = vadd.f32 %v3648_v2, %v3574_v14 }
 0x505   : > { %v3690_v22 = vpop.f32.mrb[20].mxu0 }
 0x506   : > { %v3691_v32 = vpop.f32.mrb[21].mxu0 }
 0x507   : > { %v3692_v16 = vadd.f32 %v3691_v32, %v3690_v22 }
 0x509   : > { %v3007_v0 = vadd.f32 %v3692_v16, %v2922_v6 }
 0x50b   : > { %v3017_v59 = vmax.f32 %v3007_v0, 0.0  ;;  %v3211_v0 = vld [vmem:[%s7210_s10 + $0x1f0] sm:$0xff] }
 0x50d   : > { %v3028_v42 = vmul.f32 %v3575_v17, %v3017_v59  ;;  %v3195_v59 = vld [vmem:[%s7210_s10 + $0x170] sm:$0xff] }
 0x50f   : > { %v3039_v3 = vadd.f32 %v3576_v20, %v3028_v42 }
 0x510   : > { %v3649_v8 = vpop.f32.mrb[6].mxu1 }
 0x511   : > { %v3041_v13 = vmax.f32 %v3037_v60, %v3039_v3  ;;  %v3650_v19 = vpop.f32.mrb[7].mxu1  ;;  %v3974_v3 = vpack.c.bf16 %v3212_v30, %v3211_v0 }
 0x512   : > { %v3651_v54 = vadd.f32 %v3650_v19, %v3649_v8  ;;  %v3196_v8 = vld [vmem:[%s7210_s10 + $0x178] sm:$0xff] }
 0x513   : > { %v3045_v29 = vrot.slane %v3041_v13, 1 }
 0x514   : > { %v2927_v11 = vadd.f32 %v3651_v54, %v3574_v14  ;;  %v3192_v14 = vld [vmem:[%s7210_s10 + $0x158] sm:$0xff]  ;;  %v3976_v54 = vpack.c.bf16 %v3196_v8, %v3195_v59  ;;  %v3579_v8 = vld [vmem:[%s7412_s11] ss:$0 sm:$0xff] }
 0x515   : > { %v3051_v43 = vsel %vm2087_vm1, 0.0, %v3045_v29  ;;  %v3693_v5 = vpop.f32.mrb[22].mxu0  ;;  %v3968_v46 = vpack.c.bf16 %v3192_v14, %v3191_v62 }
 0x516   : > { %3053 = vst.msk [vmem:[#allocation3] sm:$0xff] %vm1105_vm7, %v3051_v43  ;;  %v3694_v36 = vpop.f32.mrb[23].mxu0 }
 0x517   : > { %v3695_v1 = vadd.f32 %v3694_v36, %v3693_v5  ;;  %3969 = vmatpush3.bf16.msra.mxu0 %v3968_v46 }
 0x518   : > { %3971 = vmatprep.subr.bf16.mxu0 %v3970_v18 }
 0x519   : > { %v3012_v55 = vadd.f32 %v3695_v1, %v2927_v11 }
 0x51b   : > { %v3018_v49 = vmax.f32 %v3012_v55, 0.0  ;;  %3973 = vmatpush3.bf16.msra.mxu0 %v3972_v34 }
 0x51c   : > { %3975 = vmatprep.subr.bf16.mxu0 %v3974_v3 }
 0x51d   : > { %v3029_v4 = vmul.f32 %v3575_v17, %v3018_v49 }
 0x51f   : > { %v3040_v48 = vadd.f32 %v3576_v20, %v3029_v4  ;;  %3977 = vmatpush3.bf16.msra.mxu0 %v3976_v54 }
 0x521   : > { %v3042_v50 = vmax.f32 %v3038_v58, %v3040_v48 }
 0x523   : > { %v3046_v35 = vrot.slane %v3042_v50, 1 }
 0x525   : > { %v3047_v44 = vsel %vm2087_vm1, %v3045_v29, %v3046_v35  ;;  %v3052_v37 = vsel %vm2087_vm1, %v3046_v35, 0.0 }
 0x526   : > { %3054 = vst.msk [vmem:[#allocation3 + $0x8] sm:$0xff] %vm1105_vm7, %v3047_v44  ;;  %3055 = vst.msk [vmem:[#allocation3 + $0x10] sm:$0xff] %vm1105_vm7, %v3052_v37 }
 0x52d   : > { %v3062_v56 = vld [vmem:[#allocation3 + $0x2] ss:$2 sm:$0xff]  ;;  %v3060_v41 = vld [vmem:[#allocation3 + $0x1] ss:$2 sm:$0xff] }
 0x52e   : > { %v3070_v45 = vld [vmem:[#allocation3 + $0x6] ss:$2 sm:$0xff]  ;;  %v3068_v2 = vld [vmem:[#allocation3 + $0x5] ss:$2 sm:$0xff] }
 0x52f   : > { %v4337_v40 = vpack.i.bf16 %v3062_v56, %v3070_v45  ;;  %v4332_v22 = vpack.i.bf16 %v3060_v41, %v3068_v2  ;;  %v3076_v32 = vld [vmem:[#allocation3 + $0x9] ss:$2 sm:$0xff]  ;;  %v3078_v13 = vld [vmem:[#allocation3 + $0xa] ss:$2 sm:$0xff] }
 0x530   : > { %v3084_v28 = vld [vmem:[#allocation3 + $0xd] ss:$2 sm:$0xff]  ;;  %v3086_v19 = vld [vmem:[#allocation3 + $0xe] ss:$2 sm:$0xff] }
 0x531   : > { %4338 = vrot.lane.b32.xlu1 %v4337_v40, %s4444_s0  ;;  %v3064_v6 = vld [vmem:[#allocation3 + $0x3] ss:$2 sm:$0xff]  ;;  %4333 = vrot.lane.b32.xlu0 %v4332_v22, %s7298_s20  ;;  %v4347_v17 = vpack.i.bf16 %v3076_v32, %v3084_v28  ;;  %v4352_v43 = vpack.i.bf16 %v3078_v13, %v3086_v19  ;;  %v3058_v10 = vld [vmem:[#allocation3] ss:$2 sm:$0xff] }
 0x532   : > { %v3072_v16 = vld [vmem:[#allocation3 + $0x7] ss:$2 sm:$0xff]  ;;  %v3066_v49 = vld [vmem:[#allocation3 + $0x4] ss:$2 sm:$0xff] }
 0x533   : > { %v4342_v20 = vpack.i.bf16 %v3064_v6, %v3072_v16  ;;  %v3080_v42 = vld [vmem:[#allocation3 + $0xb] ss:$2 sm:$0xff]  ;;  %v3074_v62 = vld [vmem:[#allocation3 + $0x8] ss:$2 sm:$0xff] }
 0x534   : > { %v3088_v60 = vld [vmem:[#allocation3 + $0xf] ss:$2 sm:$0xff]  ;;  %v3082_v57 = vld [vmem:[#allocation3 + $0xc] ss:$2 sm:$0xff] }
 0x535   : > { %4348 = vrot.lane.b32.xlu1 %v4347_v17, %s7298_s20  ;;  %4343 = vrot.lane.b32.xlu0 %v4342_v20, %s4447_s16  ;;  %v4357_v29 = vpack.i.bf16 %v3080_v42, %v3088_v60  ;;  %v3577_v17 = vld [vmem:[%s7408_s26] ss:$0 sm:$0xff]  ;;  %s7158_s26 = scalar_lea.hbm %s7415_s29, %s3581_s24  ;;  %s4364_s20 = scalar_lea.vmem %s7160_s27, 16 }
 0x536   : > { %v3578_v60 = vld [vmem:[%s7410_s25] ss:$0 sm:$0xff]  ;;  %p4365_p11 = scmp.ne.s32.totalorder %s7160_s27, %s4364_s20 }
 0x538   : > { %p4366_p12 = pnand %p4365_p11, %p4574_p5 }
 0x539   : > { %4358 = vrot.lane.b32.xlu1 %v4357_v29, %s4447_s16  ;;  %4353 = vrot.lane.b32.xlu0 %v4352_v43, %s4444_s0  ;;  %s7407_s16 = sld [smem:[#allocation56_spill]]  ;;  %s4450_s0 = smov [#allocation4]  }
 0x53a   : > { %p4367_p13 = pneg %p4366_p12  ;;  %s4368_s25 = sshll.u32 %s4450_s0, 4  ;;  %s4369_s25 = int_to_ptr.vmem [resolvable:$false] %s4368_s25 }
 0x53b   : > { %s4370_s12 = scalar_lea.vmem %s4369_s25, 32  ;;  %p4371_p0 = scmp.lt.s32.totalorder %s7160_s27, %s4369_s25 }
 0x53c   : > { %p4372_p1 = scmp.lt.s32.totalorder %s4370_s12, %s4364_s20 }
 0x53e   : > { %p4373_p2 = por %p4372_p1, %p4371_p0 }
 0x53f   : > { %v3386_v15 = vld [vmem:[%s7407_s16] sm:$0xff]  ;;  %v3387_v18 = vld [vmem:[%s7407_s16 + $0x8] sm:$0xff]  ;;  %v3388_v34 = vld [vmem:[%s7407_s16 + $0x10] sm:$0xff] }
 0x540   : > { %v3979_v33 = vpack.c.bf16 %v3387_v18, %v3386_v15  ;;  %v3389_v56 = vld [vmem:[%s7407_s16 + $0x18] sm:$0xff]  ;;  %v3390_v41 = vld [vmem:[%s7407_s16 + $0x20] sm:$0xff]  ;;  %v3391_v40 = vld [vmem:[%s7407_s16 + $0x28] sm:$0xff]  ;;  %p4374_p3 = pnand %p4373_p2, %p4367_p13 }
 0x541   : > { %v3982_v45 = vpack.c.bf16 %v3389_v56, %v3388_v34  ;;  %v3985_v2 = vpack.c.bf16 %v3391_v40, %v3390_v41  ;;  %v3392_v22 = vld [vmem:[%s7407_s16 + $0x30] sm:$0xff] }
 0x5a3   : > { %v4339_v5 = vpop.permute.xlu1 %4338  ;;  %v4334_v36 = vpop.permute.xlu0 %4333 }
 0x5a4   : > { %v4336_v7 = vunpack.i.h.bf16 %v4334_v36  ;;  %v4335_v11 = vunpack.i.l.bf16 %v4334_v36  ;;  %v4341_v1 = vunpack.i.h.bf16 %v4339_v5  ;;  %v4340_v55 = vunpack.i.l.bf16 %v4339_v5 }
 0x5a6   : > { %v3137_v4 = vsel %vm1105_vm7, %v3058_v10, %v4336_v7  ;;  %v3140_v48 = vsel %vm1105_vm7, %v3066_v49, %v4335_v11 }
 0x5a7   : > { %v4349_v58 = vpop.permute.xlu1 %4348  ;;  %v4344_v50 = vpop.permute.xlu0 %4343  ;;  %v3141_v39 = vsel %vm1815_vm15, %v3140_v48, %v4340_v55  ;;  %v3138_v26 = vsel %vm1815_vm15, %v3137_v4, %v4341_v1  ;;  %v3394_v55 = vld [vmem:[%s7414_s18] sm:$0x1] }
 0x5a8   : > { %v4346_v35 = vunpack.i.h.bf16 %v4344_v50  ;;  %v4345_v44 = vunpack.i.l.bf16 %v4344_v50  ;;  %v4351_v37 = vunpack.i.h.bf16 %v4349_v58  ;;  %v4350_v52 = vunpack.i.l.bf16 %v4349_v58 }
 0x5aa   : > { %v3142_v38 = vsel %vm2377_vm4, %v3141_v39, %v4345_v44  ;;  %v3139_v25 = vsel %vm2377_vm4, %v3138_v26, %v4346_v35  ;;  %v3143_v21 = vsel %vm1105_vm7, %v3074_v62, %v4351_v37  ;;  %v3146_v53 = vsel %vm1105_vm7, %v3082_v57, %v4350_v52 }
 0x5ab   : > { %v4359_v63 = vpop.permute.xlu1 %4358  ;;  %v4354_v27 = vpop.permute.xlu0 %4353  ;;  %3284 = vmatprep.mubr.f32.mxu1 %v3142_v38 }
 0x5ac   : > { %v4361_v61 = vunpack.i.h.bf16 %v4359_v63  ;;  %v4360_v31 = vunpack.i.l.bf16 %v4359_v63  ;;  %v4356_v14 = vunpack.i.h.bf16 %v4354_v27  ;;  %v4355_v46 = vunpack.i.l.bf16 %v4354_v27  ;;  %3285 = vmatmul.mubr.f32.vlgmr.msra.gmra.mrb[8].mxu1 %v3139_v25 }
 0x5ad   : > { %3980 = vmatpush3.bf16.msra.mxu1 %v3979_v33  ;;  %3831 = vmatprep.mubr.msk.f32.mxu1 %vm4449_vm6, %v4443_v51  ;;  %v3393_v51 = vld [vmem:[%s7407_s16 + $0x38] sm:$0xff] }
 0x5ae   : > { %v3144_v12 = vsel %vm1815_vm15, %v3143_v21, %v4356_v14  ;;  %v3147_v24 = vsel %vm1815_vm15, %v3146_v53, %v4355_v46  ;;  %3981 = vmatprep.subr.bf16.mxu1 %v4448_v47  ;;  %v3988_v32 = vpack.c.bf16 %v3393_v51, %v3392_v22 }
 0x5af   : > { %v3148_v23 = vsel %vm2377_vm4, %v3147_v24, %v4360_v31  ;;  %v3145_v9 = vsel %vm2377_vm4, %v3144_v12, %v4361_v61 }
 0x5b0   : > { %3354 = vmatprep.mubr.f32.mxu0 %v3148_v23 }
 0x5b1   : > { %3355 = vmatmul.mubr.f32.vlgmr.msra.gmra.mrb[24].mxu0 %v3145_v9  ;;  %3983 = vmatpush3.bf16.msra.mxu1 %v3982_v45 }
 0x5b2   : > { %3984 = vmatprep.subr.bf16.mxu1 %v4448_v47 }
 0x5b5   : > { %3986 = vmatpush3.bf16.msra.mxu1 %v3985_v2 }
 0x5b6   : > { %3987 = vmatprep.subr.bf16.mxu1 %v4448_v47 }
 0x5b9   : > { %3989 = vmatpush3.bf16.msra.mxu1 %v3988_v32 }
 0x67f   : > { %v3728_v28 = vpop.f32.mrb[8].mxu1 }
 0x680   : > { %v3729_v6 = vpop.f32.mrb[9].mxu1 }
 0x681   : > { %v3730_v16 = vadd.f32 %v3729_v6, %v3728_v28 }
 0x683   : > { %v3287_v59 = vadd.f32 %v3730_v16, %v3577_v17 }
 0x684   : > { %v3763_v0 = vpop.f32.mrb[24].mxu0 }
 0x685   : > { %v3764_v30 = vpop.f32.mrb[25].mxu0 }
 0x686   : > { %v3765_v20 = vadd.f32 %v3764_v30, %v3763_v0 }
 0x688   : > { %v3357_v42 = vadd.f32 %v3765_v20, %v3287_v59 }
 0x68a   : > { %v3360_v3 = vmax.f32 %v3357_v42, 0.0 }
 0x68c   : > { %v3368_v13 = vmul.f32 %v3578_v60, %v3360_v3 }
 0x68e   : > { %v3376_v19 = vadd.f32 %v3579_v8, %v3368_v13 }
 0x690   : > { %v3377_v54 = vsel %vm1815_vm15, %v3376_v19, 0.0 }
 0x691   : > { %v3378_v29 = vrot.slane %v3377_v54, 4 }
 0x693   : > { %v3379_v43 = vadd.f32 %v3378_v29, %v3377_v54 }
 0x695   : > { %v3380_v5 = vrot.slane %v3379_v43, 2 }
 0x697   : > { %v3381_v36 = vadd.f32 %v3380_v5, %v3379_v43 }
 0x699   : > { %v3382_v7 = vrot.slane %v3381_v36, 1 }
 0x69b   : > { %v3383_v11 = vadd.f32 %v3382_v7, %v3381_v36 }
 0x69d   : > { %v3385_v1 = vmul.f32 0.125, %v3383_v11 }
 0x69f   : > { %3832 = vmatmul.mubr.msk.f32.vlgmr.msra.gmra.mrb[10].mxu1 %vm1815_vm15, %v3385_v1 }
 0x772   : > { %v3464_v10 = vpop.f32.mrb[10].mxu1 }
 0x773   : > { %v3465_v49 = vadd.f32 %v3464_v10, %v3394_v55  ;;  %v3833_v4 = vpop.f32.mrb[11].mxu1 }
 0x775   : > { %3468 = vst [vmem:[%s528_s17] sm:$0x1] %v3465_v49 }
 0x776   : > { %4377 = shalt.err (!%p4374_p3)
}
 0x777   : > { %s4378_s13 = scalar_lea.hbm %s7158_s26, 16  ;;  %s4382_s21 = scalar_lea.hbm %s7415_s29, 32 }
 0x778   : > { %p4379_p4 = scmp.ne.s32.totalorder %s7158_s26, %s4378_s13  ;;  %p4383_p9 = scmp.lt.u32.totalorder %s7158_s26, %s7415_s29 }
 0x779   : > { %p4384_p10 = scmp.lt.u32.totalorder %s4382_s21, %s4378_s13  ;;  %p4386_p12 = scmp.lt.u32.totalorder %s4378_s13, %s7158_s26 }
 0x77a   : > { %p4380_p7 = pnand %p4379_p4, %p4574_p5 }
 0x77b   : > { %p4385_p11 = por %p4384_p10, %p4383_p9 }
 0x77c   : > { %p4381_p8 = pneg %p4380_p7 }
 0x77d   : > { %p4387_p13 = por %p4386_p12, %p4385_p11 }
 0x77f   : > { %p4388_p0 = pnand %p4387_p13, %p4381_p8 }
 0x781   : > { %4391 = shalt.err (!%p4388_p0)
}
 0x782   : > { %3991 = dma.vmem_to_hbm [thread:$0]  (%p4574_p5), %s7160_s27, 16, %s7158_s26, %s3470_s28  }
 0x783 PF: > { %s7416_s18 = sld [smem:[#allocation10_spill]]  ;;  %s7417_s24 = sld [smem:[#allocation7_spill]] }
 0x789   : > { %p3997_p1 = scmp.ge.s32.totalorder %s7416_s18, 2  ;;  %s3494_s15 = sand.u32 1, %s7417_s24  }
 0x78a   : > { %s3495_s19 = scalar_lea.sflag [#allocation5], %s3494_s15 }
 0x78b   : > { %p3994_p2 = pnand %p3997_p1, %p4578_p6 }
 0x78d   : > { %4409 = dma.done.wait (!%p3994_p2), %s3495_s19, 16  }
 0x78e   : > { %4411 = vsyncadd (!%p3994_p2), %s3495_s19, 4294967280  ;;  %s7419_s24 = sld [smem:[#allocation12_spill]]  ;;  %s7420_s21 = sld [smem:[#allocation8_spill]] }
 0x78f   : > { %s7421_s22 = sld [smem:[#allocation9_spill]]  ;;  %s7422_s23 = sld [smem:[#allocation13_spill]] }
 0x794   : > { %p26_p3 = scmp.ge.s32.totalorder %s7419_s24, 4  }
 0x796   :  { %28 = sbr.rel (!%p26_p3) target bundleno = 11 (0xb), region = 202 }
 0x79d   :  { %3499 = vsyncpa [#allocation5], 1 }
 0x79e   :  { %3501 = vsyncpa [#allocation5 + $0x1], 1 }

</bundles_post_ra>
